<compile_context>
chip_gen: v5e
topology: v5e:2x2
jax: 0.10.0
libtpu: 0.0.40
codegen_flags: <defaults>
</compile_context>

<pallas_src>
import math
import functools

import jax
import jax.numpy as jnp
from jax import lax
from jax.experimental import pallas as pl
from jax.experimental.pallas import tpu as pltpu  # noqa: F401  (kept for TPU-specific tweaks)

# ----------------------- model hyper-parameters (small) -----------------------
VOCAB = 50          # input_dim
NUM_FEATURES = 32   # num_features == d_model
NHEAD = 4
NUM_LAYERS = 2      # num_encoder_layers
OUTPUT_DIM = 1
DIM_FF = 2048       # nn.Transformer default dim_feedforward
LN_EPS = 1e-5       # nn.LayerNorm default eps
NEG_INF = -1e30     # additive mask value (finite -> no inf-inf NaNs)

B, S, L = 2, 8, 3   # batch, sequence length, tokens per bag


# ------------------------------ fused Pallas kernel ----------------------------

def _layer_norm(x, g, b):
    mu = jnp.mean(x, axis=-1, keepdims=True)
    var = jnp.mean((x - mu) ** 2, axis=-1, keepdims=True)
    return (x - mu) * lax.rsqrt(var + LN_EPS) * g + b


def fused_forward_kernel(tok_ref, table_ref, pe_ref, bias_ref, pool_ref,
                         w_in_ref, b_in_ref, w_out_ref, b_out_ref,
                         g1_ref, be1_ref, w1_ref, b1_ref, w2_ref, b2_ref,
                         g2_ref, be2_ref,
                         gf_ref, bf_ref, wfc_ref, bfc_ref,
                         out_ref, *, nhead, bag, num_layers):
    """Whole TransformerModel forward for the flattened (B*S, F) activation.

    All weights live in VMEM for the single invocation; heavy weights are bf16
    (MXU operands), elementwise math is f32.  Attention of all rows is computed
    at once per head; `bias_ref` is a (N, N) block-diagonal additive mask that
    forbids cross-batch attention, so no reshapes/transposes are needed.
    """
    tok = tok_ref[...]                               # (N, L) int32
    table = table_ref[...]                           # (V, F) f32
    n = tok.shape[0]
    v, f = table.shape
    dh = f // nhead
    scale = 1.0 / math.sqrt(dh)

    # ---- EmbeddingBag(mode='mean'): (mean one-hot) @ table on the MXU ----
    iota = lax.broadcasted_iota(jnp.int32, (n, v), 1)
    oh = jnp.zeros((n, v), jnp.float32)
    for j in range(bag):                             # bag is tiny & static
        oh = oh + (iota == tok[:, j:j + 1]).astype(jnp.float32)
    x = jnp.dot(oh * (1.0 / bag), table, preferred_element_type=jnp.float32)

    # ---- PositionalEncoding (pe pre-tiled to (N, F) in the wrapper) ----
    x = x + pe_ref[...]

    bias = bias_ref[...]                             # (N, N) f32, 0 / -1e30

    # ---- encoder stack (post-norm; dropout is eval no-op) ----
    for layer in range(num_layers):
        w_out_l = w_out_ref[layer]                   # (F, F) bf16, pre-transposed

        # fused QKV projection: (N, F) @ (F, 3F) -> (N, 3F)
        qkv = jnp.dot(x.astype(jnp.bfloat16), w_in_ref[layer],
                      preferred_element_type=jnp.float32) + b_in_ref[layer]

        attn = jnp.zeros((n, f), jnp.float32)
        for h in range(nhead):
            q = qkv[:, h * dh:(h + 1) * dh]                      # (N, dh)
            k = qkv[:, f + h * dh:f + (h + 1) * dh]              # (N, dh)
            vv = qkv[:, 2 * f + h * dh:2 * f + (h + 1) * dh]     # (N, dh)

            s = lax.dot_general(q, k, (((1,), (1,)), ((), ())),
                                preferred_element_type=jnp.float32) * scale
            s = s + bias                                         # mask cross-batch
            s = s - jnp.max(s, axis=-1, keepdims=True)
            p = jnp.exp(s)
            p = p * pl.reciprocal(jnp.sum(p, axis=-1, keepdims=True), approx=True)

            ctx = jnp.dot(p, vv, preferred_element_type=jnp.float32)      # (N, dh)
            # per-head out-projection accumulation (rows slice of W_out^T)
            attn = attn + jnp.dot(ctx.astype(jnp.bfloat16),
                                  w_out_l[h * dh:(h + 1) * dh, :],
                                  preferred_element_type=jnp.float32)
        attn = attn + b_out_ref[layer]

        # residual + norm1
        y = _layer_norm(x + attn, g1_ref[layer], be1_ref[layer])

        # feed-forward: linear1 -> relu -> linear2, residual + norm2
        h1 = jnp.dot(y.astype(jnp.bfloat16), w1_ref[layer],
                     preferred_element_type=jnp.float32) + b1_ref[layer]
        h1 = jnp.maximum(h1, 0.0)
        h2 = jnp.dot(h1.astype(jnp.bfloat16), w2_ref[layer],
                     preferred_element_type=jnp.float32) + b2_ref[layer]
        x = _layer_norm(y + h2, g2_ref[layer], be2_ref[layer])

    # ---- final encoder LayerNorm + mean over sequence (via pooling matmul) + fc
    xf = _layer_norm(x, gf_ref[...], bf_ref[...])                         # (N, F)
    pooled = jnp.dot(pool_ref[...], xf, preferred_element_type=jnp.float32)  # (B, F)
    out_ref[...] = jnp.dot(pooled.astype(jnp.bfloat16), wfc_ref[...],
                           preferred_element_type=jnp.float32) + bfc_ref[...]


# ------------------------------ wrapper / glue ---------------------------------

def positional_encoding(max_len, d_model):
    position = jnp.arange(max_len, dtype=jnp.float32)[:, None]
    div_term = jnp.exp(jnp.arange(0, d_model, 2, dtype=jnp.float32)
                       * (-math.log(10000.0) / d_model))
    pe = jnp.zeros((max_len, d_model), jnp.float32)
    pe = pe.at[:, 0::2].set(jnp.sin(position * div_term))
    pe = pe.at[:, 1::2].set(jnp.cos(position * div_term))
    return pe                                             # (max_len, d_model)


def _full_spec(a):
    nd = a.ndim
    return pl.BlockSpec(a.shape, lambda i, _nd=nd: (0,) * _nd)


def transformer_forward(tokens, params):
    b, s, bag = tokens.shape
    f = NUM_FEATURES
    n = b * s
    tok2 = tokens.reshape(n, bag).astype(jnp.int32)

    # constant structural tensors (host/XLA side, free)
    pe_tiled = jnp.tile(positional_encoding(1000, f)[:s], (b, 1))          # (N, F)
    row_batch = jnp.arange(n, dtype=jnp.int32) // s                        # (N,)
    same = row_batch[:, None] == row_batch[None, :]
    attn_bias = jnp.where(same, 0.0, NEG_INF).astype(jnp.float32)          # (N, N)
    pool_mat = (jnp.arange(b, dtype=jnp.int32)[:, None]
                == row_batch[None, :]).astype(jnp.float32) / s             # (B, N)

    # stack layers and pre-transpose weights so every contraction is ((1,),(0,));
    # heavy matmul operands cast to bf16 (f32 accumulation in-kernel).
    lp = params["layers"]
    stk = lambda key: jnp.stack([p[key] for p in lp])
    stk_t = lambda key: jnp.stack([p[key].T for p in lp]).astype(jnp.bfloat16)
    w_in_t, w_out_t = stk_t("w_in"), stk_t("w_out")      # (NL,F,3F), (NL,F,F)
    w1_t, w2_t = stk_t("w1"), stk_t("w2")                # (NL,F,DFF), (NL,DFF,F)
    b_in, b_out = stk("b_in"), stk("b_out")
    g1, be1, b1 = stk("g1"), stk("be1"), stk("b1")
    b2, g2, be2 = stk("b2"), stk("g2"), stk("be2")
    wfc_t = params["wfc"].T.astype(jnp.bfloat16)         # (F, O)

    args = (tok2, params["embedding"], pe_tiled, attn_bias, pool_mat,
            w_in_t, b_in, w_out_t, b_out, g1, be1, w1_t, b1, w2_t, b2, g2, be2,
            params["enc_norm_g"], params["enc_norm_b"], wfc_t, params["bfc"])

    kernel = functools.partial(fused_forward_kernel, nhead=NHEAD, bag=bag,
                               num_layers=len(lp))
    out = pl.pallas_call(
        kernel,
        out_shape=jax.ShapeDtypeStruct((b, OUTPUT_DIM), jnp.float32),
        grid=(1,),
        in_specs=[_full_spec(a) for a in args],
        out_specs=pl.BlockSpec((b, OUTPUT_DIM), lambda i: (0, 0)),
    )(*args)
    return jnp.squeeze(out)                              # .squeeze() in reference


# ------------------------------ parameters -------------------------------------

def init_params(key):
    f, dff = NUM_FEATURES, DIM_FF
    keys = jax.random.split(key, 2 + NUM_LAYERS)
    params = {"embedding": jax.random.normal(keys[0], (VOCAB, f), jnp.float32)}
    layers = []
    for i in range(NUM_LAYERS):
        lk = jax.random.split(keys[1 + i], 4)
        layers.append(dict(
            w_in=jax.random.normal(lk[0], (3 * f, f), jnp.float32) / math.sqrt(f),
            b_in=jnp.zeros((1, 3 * f), jnp.float32),
            w_out=jax.random.normal(lk[1], (f, f), jnp.float32) / math.sqrt(f),
            b_out=jnp.zeros((1, f), jnp.float32),
            g1=jnp.ones((1, f), jnp.float32), be1=jnp.zeros((1, f), jnp.float32),
            w1=jax.random.normal(lk[2], (dff, f), jnp.float32) / math.sqrt(f),
            b1=jnp.zeros((1, dff), jnp.float32),
            w2=jax.random.normal(lk[3], (f, dff), jnp.float32) / math.sqrt(dff),
            b2=jnp.zeros((1, f), jnp.float32),
            g2=jnp.ones((1, f), jnp.float32), be2=jnp.zeros((1, f), jnp.float32),
        ))
    params["layers"] = layers
    params["enc_norm_g"] = jnp.ones((1, f), jnp.float32)
    params["enc_norm_b"] = jnp.zeros((1, f), jnp.float32)
    params["wfc"] = jax.random.normal(keys[-1], (OUTPUT_DIM, f), jnp.float32) / math.sqrt(f)
    params["bfc"] = jnp.zeros((1, OUTPUT_DIM), jnp.float32)
    return params


if __name__ == "__main__":
    key = jax.random.PRNGKey(0)
    pkey, tkey = jax.random.split(key)
    params = init_params(pkey)
    tokens = jax.random.randint(tkey, (B, S, L), 0, VOCAB, dtype=jnp.int32)

    out = jax.jit(transformer_forward)(tokens, params)
    jax.block_until_ready(out)
    assert out.shape == (B,), out.shape
    print("KERNEL_OK")
</pallas_src>

<mosaic_0001>
module attributes {stable_mosaic.version = 11 : i64} {
  func.func @fused_forward_kernel(%arg0: i32, %arg1: memref<16x3xi32, #tpu.memory_space<vmem>>, %arg2: memref<50x32xf32, #tpu.memory_space<vmem>>, %arg3: memref<16x32xf32, #tpu.memory_space<vmem>>, %arg4: memref<16x16xf32, #tpu.memory_space<vmem>>, %arg5: memref<2x16xf32, #tpu.memory_space<vmem>>, %arg6: memref<2x32x96xbf16, #tpu.memory_space<vmem>>, %arg7: memref<2x1x96xf32, #tpu.memory_space<vmem>>, %arg8: memref<2x32x32xbf16, #tpu.memory_space<vmem>>, %arg9: memref<2x1x32xf32, #tpu.memory_space<vmem>>, %arg10: memref<2x1x32xf32, #tpu.memory_space<vmem>>, %arg11: memref<2x1x32xf32, #tpu.memory_space<vmem>>, %arg12: memref<2x32x2048xbf16, #tpu.memory_space<vmem>>, %arg13: memref<2x1x2048xf32, #tpu.memory_space<vmem>>, %arg14: memref<2x2048x32xbf16, #tpu.memory_space<vmem>>, %arg15: memref<2x1x32xf32, #tpu.memory_space<vmem>>, %arg16: memref<2x1x32xf32, #tpu.memory_space<vmem>>, %arg17: memref<2x1x32xf32, #tpu.memory_space<vmem>>, %arg18: memref<1x32xf32, #tpu.memory_space<vmem>>, %arg19: memref<1x32xf32, #tpu.memory_space<vmem>>, %arg20: memref<32x1xbf16, #tpu.memory_space<vmem>>, %arg21: memref<1x1xf32, #tpu.memory_space<vmem>>, %arg22: memref<2x1xf32, #tpu.memory_space<vmem>>) attributes {dimension_semantics = [#tpu.dimension_semantics<arbitrary>], iteration_bounds = array<i64: 1>, scalar_prefetch = 0 : i64, scratch_operands = 0 : i64, tpu.core_type = #tpu.core_type<tc>, window_params = [{pipeline_mode = #tpu.pipeline_mode<synchronous>, transform_indices = @transform_0, window_bounds = array<i64: 16, 3>}, {pipeline_mode = #tpu.pipeline_mode<synchronous>, transform_indices = @transform_1, window_bounds = array<i64: 50, 32>}, {pipeline_mode = #tpu.pipeline_mode<synchronous>, transform_indices = @transform_2, window_bounds = array<i64: 16, 32>}, {pipeline_mode = #tpu.pipeline_mode<synchronous>, transform_indices = @transform_3, window_bounds = array<i64: 16, 16>}, {pipeline_mode = #tpu.pipeline_mode<synchronous>, transform_indices = @transform_4, window_bounds = array<i64: 2, 16>}, {pipeline_mode = #tpu.pipeline_mode<synchronous>, transform_indices = @transform_5, window_bounds = array<i64: 2, 32, 96>}, {pipeline_mode = #tpu.pipeline_mode<synchronous>, transform_indices = @transform_6, window_bounds = array<i64: 2, 1, 96>}, {pipeline_mode = #tpu.pipeline_mode<synchronous>, transform_indices = @transform_7, window_bounds = array<i64: 2, 32, 32>}, {pipeline_mode = #tpu.pipeline_mode<synchronous>, transform_indices = @transform_8, window_bounds = array<i64: 2, 1, 32>}, {pipeline_mode = #tpu.pipeline_mode<synchronous>, transform_indices = @transform_9, window_bounds = array<i64: 2, 1, 32>}, {pipeline_mode = #tpu.pipeline_mode<synchronous>, transform_indices = @transform_10, window_bounds = array<i64: 2, 1, 32>}, {pipeline_mode = #tpu.pipeline_mode<synchronous>, transform_indices = @transform_11, window_bounds = array<i64: 2, 32, 2048>}, {pipeline_mode = #tpu.pipeline_mode<synchronous>, transform_indices = @transform_12, window_bounds = array<i64: 2, 1, 2048>}, {pipeline_mode = #tpu.pipeline_mode<synchronous>, transform_indices = @transform_13, window_bounds = array<i64: 2, 2048, 32>}, {pipeline_mode = #tpu.pipeline_mode<synchronous>, transform_indices = @transform_14, window_bounds = array<i64: 2, 1, 32>}, {pipeline_mode = #tpu.pipeline_mode<synchronous>, transform_indices = @transform_15, window_bounds = array<i64: 2, 1, 32>}, {pipeline_mode = #tpu.pipeline_mode<synchronous>, transform_indices = @transform_16, window_bounds = array<i64: 2, 1, 32>}, {pipeline_mode = #tpu.pipeline_mode<synchronous>, transform_indices = @transform_17, window_bounds = array<i64: 1, 32>}, {pipeline_mode = #tpu.pipeline_mode<synchronous>, transform_indices = @transform_18, window_bounds = array<i64: 1, 32>}, {pipeline_mode = #tpu.pipeline_mode<synchronous>, transform_indices = @transform_19, window_bounds = array<i64: 32, 1>}, {pipeline_mode = #tpu.pipeline_mode<synchronous>, transform_indices = @transform_20, window_bounds = array<i64: 1, 1>}, {pipeline_mode = #tpu.pipeline_mode<synchronous>, transform_indices = @transform_21, window_bounds = array<i64: 2, 1>}]} {
    %c0 = arith.constant 0 : index
    %c0_0 = arith.constant 0 : index
    %0 = vector.load %arg1[%c0, %c0_0] : memref<16x3xi32, #tpu.memory_space<vmem>>, vector<16x3xi32>
    %c0_1 = arith.constant 0 : index
    %c0_2 = arith.constant 0 : index
    %1 = vector.load %arg2[%c0_1, %c0_2] : memref<50x32xf32, #tpu.memory_space<vmem>>, vector<50x32xf32>
    %2 = tpu.iota {dimensions = array<i32: 1>} : vector<16x50xi32>
    %cst = arith.constant 0.000000e+00 : f32
    %3 = vector.broadcast %cst : f32 to vector<16x50xf32>
    %4 = vector.extract_strided_slice %0 {offsets = [0, 0], sizes = [16, 1], strides = [1, 1]} : vector<16x3xi32> to vector<16x1xi32>
    %5 = vector.broadcast %4 : vector<16x1xi32> to vector<16x50xi32>
    %6 = arith.cmpi eq, %2, %5 : vector<16x50xi32>
    %7 = arith.extui %6 : vector<16x50xi1> to vector<16x50xi32>
    %8 = arith.sitofp %7 : vector<16x50xi32> to vector<16x50xf32>
    %9 = arith.addf %3, %8 : vector<16x50xf32>
    %10 = vector.extract_strided_slice %0 {offsets = [0, 1], sizes = [16, 1], strides = [1, 1]} : vector<16x3xi32> to vector<16x1xi32>
    %11 = vector.broadcast %10 : vector<16x1xi32> to vector<16x50xi32>
    %12 = arith.cmpi eq, %2, %11 : vector<16x50xi32>
    %13 = arith.extui %12 : vector<16x50xi1> to vector<16x50xi32>
    %14 = arith.sitofp %13 : vector<16x50xi32> to vector<16x50xf32>
    %15 = arith.addf %9, %14 : vector<16x50xf32>
    %16 = vector.extract_strided_slice %0 {offsets = [0, 2], sizes = [16, 1], strides = [1, 1]} : vector<16x3xi32> to vector<16x1xi32>
    %17 = vector.broadcast %16 : vector<16x1xi32> to vector<16x50xi32>
    %18 = arith.cmpi eq, %2, %17 : vector<16x50xi32>
    %19 = arith.extui %18 : vector<16x50xi1> to vector<16x50xi32>
    %20 = arith.sitofp %19 : vector<16x50xi32> to vector<16x50xf32>
    %21 = arith.addf %15, %20 : vector<16x50xf32>
    %cst_3 = arith.constant 0.333333343 : f32
    %22 = vector.broadcast %cst_3 : f32 to vector<16x50xf32>
    %23 = arith.mulf %21, %22 : vector<16x50xf32>
    %cst_4 = arith.constant dense<0.000000e+00> : vector<16x32xf32>
    %24 = tpu.matmul %23, %1, %cst_4 {dimension_numbers = #tpu.dot_dimension_numbers<[1], [0], [0], [1], [0, 0, 1, 1], [], []>} : vector<16x50xf32>, vector<50x32xf32>, vector<16x32xf32> -> vector<16x32xf32>
    %c0_5 = arith.constant 0 : index
    %c0_6 = arith.constant 0 : index
    %25 = vector.load %arg3[%c0_5, %c0_6] : memref<16x32xf32, #tpu.memory_space<vmem>>, vector<16x32xf32>
    %26 = arith.addf %24, %25 : vector<16x32xf32>
    %c0_7 = arith.constant 0 : index
    %c0_8 = arith.constant 0 : index
    %27 = vector.load %arg4[%c0_7, %c0_8] : memref<16x16xf32, #tpu.memory_space<vmem>>, vector<16x16xf32>
    %c0_9 = arith.constant 0 : index
    %c0_10 = arith.constant 0 : index
    %c0_11 = arith.constant 0 : index
    %28 = vector.load %arg8[%c0_9, %c0_10, %c0_11] : memref<2x32x32xbf16, #tpu.memory_space<vmem>>, vector<1x32x32xbf16>
    %29 = vector.shape_cast %28 : vector<1x32x32xbf16> to vector<32x32xbf16>
    %30 = arith.truncf %26 : vector<16x32xf32> to vector<16x32xbf16>
    %c0_12 = arith.constant 0 : index
    %c0_13 = arith.constant 0 : index
    %c0_14 = arith.constant 0 : index
    %31 = vector.load %arg6[%c0_12, %c0_13, %c0_14] : memref<2x32x96xbf16, #tpu.memory_space<vmem>>, vector<1x32x96xbf16>
    %32 = vector.shape_cast %31 : vector<1x32x96xbf16> to vector<32x96xbf16>
    %cst_15 = arith.constant dense<0.000000e+00> : vector<16x96xf32>
    %33 = tpu.matmul %30, %32, %cst_15 {dimension_numbers = #tpu.dot_dimension_numbers<[1], [0], [0], [1], [0, 0, 1, 1], [], []>} : vector<16x32xbf16>, vector<32x96xbf16>, vector<16x96xf32> -> vector<16x96xf32>
    %c0_16 = arith.constant 0 : index
    %c0_17 = arith.constant 0 : index
    %c0_18 = arith.constant 0 : index
    %34 = vector.load %arg7[%c0_16, %c0_17, %c0_18] : memref<2x1x96xf32, #tpu.memory_space<vmem>>, vector<1x1x96xf32>
    %35 = vector.shape_cast %34 : vector<1x1x96xf32> to vector<1x96xf32>
    %36 = vector.broadcast %35 : vector<1x96xf32> to vector<16x96xf32>
    %37 = arith.addf %33, %36 : vector<16x96xf32>
    %cst_19 = arith.constant 0.000000e+00 : f32
    %38 = vector.broadcast %cst_19 : f32 to vector<16x32xf32>
    %39 = vector.extract_strided_slice %37 {offsets = [0, 0], sizes = [16, 8], strides = [1, 1]} : vector<16x96xf32> to vector<16x8xf32>
    %40 = vector.extract_strided_slice %37 {offsets = [0, 32], sizes = [16, 8], strides = [1, 1]} : vector<16x96xf32> to vector<16x8xf32>
    %41 = vector.extract_strided_slice %37 {offsets = [0, 64], sizes = [16, 8], strides = [1, 1]} : vector<16x96xf32> to vector<16x8xf32>
    %cst_20 = arith.constant dense<0.000000e+00> : vector<16x16xf32>
    %42 = tpu.matmul %39, %40, %cst_20 {dimension_numbers = #tpu.dot_dimension_numbers<[1], [1], [0], [0], [0, 0, 1, 0], [], []>} : vector<16x8xf32>, vector<16x8xf32>, vector<16x16xf32> -> vector<16x16xf32>
    %cst_21 = arith.constant 0.353553385 : f32
    %43 = vector.broadcast %cst_21 : f32 to vector<16x16xf32>
    %44 = arith.mulf %42, %43 : vector<16x16xf32>
    %45 = arith.addf %44, %27 : vector<16x16xf32>
    %cst_22 = arith.constant dense<0xFF800000> : vector<16xf32>
    %46 = vector.multi_reduction <maximumf>, %45, %cst_22 [1] : vector<16x16xf32> to vector<16xf32>
    %47 = vector.shape_cast %46 : vector<16xf32> to vector<16x1xf32>
    %48 = vector.broadcast %47 : vector<16x1xf32> to vector<16x16xf32>
    %49 = arith.subf %45, %48 : vector<16x16xf32>
    %50 = math.exp %49 : vector<16x16xf32>
    %cst_23 = arith.constant dense<0.000000e+00> : vector<16xf32>
    %51 = vector.multi_reduction <add>, %50, %cst_23 [1] : vector<16x16xf32> to vector<16xf32>
    %52 = vector.shape_cast %51 : vector<16xf32> to vector<16x1xf32>
    %53 = tpu.reciprocal %52 {approx = true} : vector<16x1xf32> -> vector<16x1xf32>
    %54 = vector.broadcast %53 : vector<16x1xf32> to vector<16x16xf32>
    %55 = arith.mulf %50, %54 : vector<16x16xf32>
    %cst_24 = arith.constant dense<0.000000e+00> : vector<16x8xf32>
    %56 = tpu.matmul %55, %41, %cst_24 {dimension_numbers = #tpu.dot_dimension_numbers<[1], [0], [0], [1], [0, 0, 1, 1], [], []>} : vector<16x16xf32>, vector<16x8xf32>, vector<16x8xf32> -> vector<16x8xf32>
    %57 = arith.truncf %56 : vector<16x8xf32> to vector<16x8xbf16>
    %58 = vector.extract_strided_slice %29 {offsets = [0, 0], sizes = [8, 32], strides = [1, 1]} : vector<32x32xbf16> to vector<8x32xbf16>
    %cst_25 = arith.constant dense<0.000000e+00> : vector<16x32xf32>
    %59 = tpu.matmul %57, %58, %cst_25 {dimension_numbers = #tpu.dot_dimension_numbers<[1], [0], [0], [1], [0, 0, 1, 1], [], []>} : vector<16x8xbf16>, vector<8x32xbf16>, vector<16x32xf32> -> vector<16x32xf32>
    %60 = arith.addf %38, %59 : vector<16x32xf32>
    %61 = vector.extract_strided_slice %37 {offsets = [0, 8], sizes = [16, 8], strides = [1, 1]} : vector<16x96xf32> to vector<16x8xf32>
    %62 = vector.extract_strided_slice %37 {offsets = [0, 40], sizes = [16, 8], strides = [1, 1]} : vector<16x96xf32> to vector<16x8xf32>
    %63 = vector.extract_strided_slice %37 {offsets = [0, 72], sizes = [16, 8], strides = [1, 1]} : vector<16x96xf32> to vector<16x8xf32>
    %cst_26 = arith.constant dense<0.000000e+00> : vector<16x16xf32>
    %64 = tpu.matmul %61, %62, %cst_26 {dimension_numbers = #tpu.dot_dimension_numbers<[1], [1], [0], [0], [0, 0, 1, 0], [], []>} : vector<16x8xf32>, vector<16x8xf32>, vector<16x16xf32> -> vector<16x16xf32>
    %cst_27 = arith.constant 0.353553385 : f32
    %65 = vector.broadcast %cst_27 : f32 to vector<16x16xf32>
    %66 = arith.mulf %64, %65 : vector<16x16xf32>
    %67 = arith.addf %66, %27 : vector<16x16xf32>
    %cst_28 = arith.constant dense<0xFF800000> : vector<16xf32>
    %68 = vector.multi_reduction <maximumf>, %67, %cst_28 [1] : vector<16x16xf32> to vector<16xf32>
    %69 = vector.shape_cast %68 : vector<16xf32> to vector<16x1xf32>
    %70 = vector.broadcast %69 : vector<16x1xf32> to vector<16x16xf32>
    %71 = arith.subf %67, %70 : vector<16x16xf32>
    %72 = math.exp %71 : vector<16x16xf32>
    %cst_29 = arith.constant dense<0.000000e+00> : vector<16xf32>
    %73 = vector.multi_reduction <add>, %72, %cst_29 [1] : vector<16x16xf32> to vector<16xf32>
    %74 = vector.shape_cast %73 : vector<16xf32> to vector<16x1xf32>
    %75 = tpu.reciprocal %74 {approx = true} : vector<16x1xf32> -> vector<16x1xf32>
    %76 = vector.broadcast %75 : vector<16x1xf32> to vector<16x16xf32>
    %77 = arith.mulf %72, %76 : vector<16x16xf32>
    %cst_30 = arith.constant dense<0.000000e+00> : vector<16x8xf32>
    %78 = tpu.matmul %77, %63, %cst_30 {dimension_numbers = #tpu.dot_dimension_numbers<[1], [0], [0], [1], [0, 0, 1, 1], [], []>} : vector<16x16xf32>, vector<16x8xf32>, vector<16x8xf32> -> vector<16x8xf32>
    %79 = arith.truncf %78 : vector<16x8xf32> to vector<16x8xbf16>
    %80 = vector.extract_strided_slice %29 {offsets = [8, 0], sizes = [8, 32], strides = [1, 1]} : vector<32x32xbf16> to vector<8x32xbf16>
    %cst_31 = arith.constant dense<0.000000e+00> : vector<16x32xf32>
    %81 = tpu.matmul %79, %80, %cst_31 {dimension_numbers = #tpu.dot_dimension_numbers<[1], [0], [0], [1], [0, 0, 1, 1], [], []>} : vector<16x8xbf16>, vector<8x32xbf16>, vector<16x32xf32> -> vector<16x32xf32>
    %82 = arith.addf %60, %81 : vector<16x32xf32>
    %83 = vector.extract_strided_slice %37 {offsets = [0, 16], sizes = [16, 8], strides = [1, 1]} : vector<16x96xf32> to vector<16x8xf32>
    %84 = vector.extract_strided_slice %37 {offsets = [0, 48], sizes = [16, 8], strides = [1, 1]} : vector<16x96xf32> to vector<16x8xf32>
    %85 = vector.extract_strided_slice %37 {offsets = [0, 80], sizes = [16, 8], strides = [1, 1]} : vector<16x96xf32> to vector<16x8xf32>
    %cst_32 = arith.constant dense<0.000000e+00> : vector<16x16xf32>
    %86 = tpu.matmul %83, %84, %cst_32 {dimension_numbers = #tpu.dot_dimension_numbers<[1], [1], [0], [0], [0, 0, 1, 0], [], []>} : vector<16x8xf32>, vector<16x8xf32>, vector<16x16xf32> -> vector<16x16xf32>
    %cst_33 = arith.constant 0.353553385 : f32
    %87 = vector.broadcast %cst_33 : f32 to vector<16x16xf32>
    %88 = arith.mulf %86, %87 : vector<16x16xf32>
    %89 = arith.addf %88, %27 : vector<16x16xf32>
    %cst_34 = arith.constant dense<0xFF800000> : vector<16xf32>
    %90 = vector.multi_reduction <maximumf>, %89, %cst_34 [1] : vector<16x16xf32> to vector<16xf32>
    %91 = vector.shape_cast %90 : vector<16xf32> to vector<16x1xf32>
    %92 = vector.broadcast %91 : vector<16x1xf32> to vector<16x16xf32>
    %93 = arith.subf %89, %92 : vector<16x16xf32>
    %94 = math.exp %93 : vector<16x16xf32>
    %cst_35 = arith.constant dense<0.000000e+00> : vector<16xf32>
    %95 = vector.multi_reduction <add>, %94, %cst_35 [1] : vector<16x16xf32> to vector<16xf32>
    %96 = vector.shape_cast %95 : vector<16xf32> to vector<16x1xf32>
    %97 = tpu.reciprocal %96 {approx = true} : vector<16x1xf32> -> vector<16x1xf32>
    %98 = vector.broadcast %97 : vector<16x1xf32> to vector<16x16xf32>
    %99 = arith.mulf %94, %98 : vector<16x16xf32>
    %cst_36 = arith.constant dense<0.000000e+00> : vector<16x8xf32>
    %100 = tpu.matmul %99, %85, %cst_36 {dimension_numbers = #tpu.dot_dimension_numbers<[1], [0], [0], [1], [0, 0, 1, 1], [], []>} : vector<16x16xf32>, vector<16x8xf32>, vector<16x8xf32> -> vector<16x8xf32>
    %101 = arith.truncf %100 : vector<16x8xf32> to vector<16x8xbf16>
    %102 = vector.extract_strided_slice %29 {offsets = [16, 0], sizes = [8, 32], strides = [1, 1]} : vector<32x32xbf16> to vector<8x32xbf16>
    %cst_37 = arith.constant dense<0.000000e+00> : vector<16x32xf32>
    %103 = tpu.matmul %101, %102, %cst_37 {dimension_numbers = #tpu.dot_dimension_numbers<[1], [0], [0], [1], [0, 0, 1, 1], [], []>} : vector<16x8xbf16>, vector<8x32xbf16>, vector<16x32xf32> -> vector<16x32xf32>
    %104 = arith.addf %82, %103 : vector<16x32xf32>
    %105 = vector.extract_strided_slice %37 {offsets = [0, 24], sizes = [16, 8], strides = [1, 1]} : vector<16x96xf32> to vector<16x8xf32>
    %106 = vector.extract_strided_slice %37 {offsets = [0, 56], sizes = [16, 8], strides = [1, 1]} : vector<16x96xf32> to vector<16x8xf32>
    %107 = vector.extract_strided_slice %37 {offsets = [0, 88], sizes = [16, 8], strides = [1, 1]} : vector<16x96xf32> to vector<16x8xf32>
    %cst_38 = arith.constant dense<0.000000e+00> : vector<16x16xf32>
    %108 = tpu.matmul %105, %106, %cst_38 {dimension_numbers = #tpu.dot_dimension_numbers<[1], [1], [0], [0], [0, 0, 1, 0], [], []>} : vector<16x8xf32>, vector<16x8xf32>, vector<16x16xf32> -> vector<16x16xf32>
    %cst_39 = arith.constant 0.353553385 : f32
    %109 = vector.broadcast %cst_39 : f32 to vector<16x16xf32>
    %110 = arith.mulf %108, %109 : vector<16x16xf32>
    %111 = arith.addf %110, %27 : vector<16x16xf32>
    %cst_40 = arith.constant dense<0xFF800000> : vector<16xf32>
    %112 = vector.multi_reduction <maximumf>, %111, %cst_40 [1] : vector<16x16xf32> to vector<16xf32>
    %113 = vector.shape_cast %112 : vector<16xf32> to vector<16x1xf32>
    %114 = vector.broadcast %113 : vector<16x1xf32> to vector<16x16xf32>
    %115 = arith.subf %111, %114 : vector<16x16xf32>
    %116 = math.exp %115 : vector<16x16xf32>
    %cst_41 = arith.constant dense<0.000000e+00> : vector<16xf32>
    %117 = vector.multi_reduction <add>, %116, %cst_41 [1] : vector<16x16xf32> to vector<16xf32>
    %118 = vector.shape_cast %117 : vector<16xf32> to vector<16x1xf32>
    %119 = tpu.reciprocal %118 {approx = true} : vector<16x1xf32> -> vector<16x1xf32>
    %120 = vector.broadcast %119 : vector<16x1xf32> to vector<16x16xf32>
    %121 = arith.mulf %116, %120 : vector<16x16xf32>
    %cst_42 = arith.constant dense<0.000000e+00> : vector<16x8xf32>
    %122 = tpu.matmul %121, %107, %cst_42 {dimension_numbers = #tpu.dot_dimension_numbers<[1], [0], [0], [1], [0, 0, 1, 1], [], []>} : vector<16x16xf32>, vector<16x8xf32>, vector<16x8xf32> -> vector<16x8xf32>
    %123 = arith.truncf %122 : vector<16x8xf32> to vector<16x8xbf16>
    %124 = vector.extract_strided_slice %29 {offsets = [24, 0], sizes = [8, 32], strides = [1, 1]} : vector<32x32xbf16> to vector<8x32xbf16>
    %cst_43 = arith.constant dense<0.000000e+00> : vector<16x32xf32>
    %125 = tpu.matmul %123, %124, %cst_43 {dimension_numbers = #tpu.dot_dimension_numbers<[1], [0], [0], [1], [0, 0, 1, 1], [], []>} : vector<16x8xbf16>, vector<8x32xbf16>, vector<16x32xf32> -> vector<16x32xf32>
    %126 = arith.addf %104, %125 : vector<16x32xf32>
    %c0_44 = arith.constant 0 : index
    %c0_45 = arith.constant 0 : index
    %c0_46 = arith.constant 0 : index
    %127 = vector.load %arg9[%c0_44, %c0_45, %c0_46] : memref<2x1x32xf32, #tpu.memory_space<vmem>>, vector<1x1x32xf32>
    %128 = vector.shape_cast %127 : vector<1x1x32xf32> to vector<1x32xf32>
    %129 = vector.broadcast %128 : vector<1x32xf32> to vector<16x32xf32>
    %130 = arith.addf %126, %129 : vector<16x32xf32>
    %131 = arith.addf %26, %130 : vector<16x32xf32>
    %c0_47 = arith.constant 0 : index
    %c0_48 = arith.constant 0 : index
    %c0_49 = arith.constant 0 : index
    %132 = vector.load %arg10[%c0_47, %c0_48, %c0_49] : memref<2x1x32xf32, #tpu.memory_space<vmem>>, vector<1x1x32xf32>
    %133 = vector.shape_cast %132 : vector<1x1x32xf32> to vector<1x32xf32>
    %c0_50 = arith.constant 0 : index
    %c0_51 = arith.constant 0 : index
    %c0_52 = arith.constant 0 : index
    %134 = vector.load %arg11[%c0_50, %c0_51, %c0_52] : memref<2x1x32xf32, #tpu.memory_space<vmem>>, vector<1x1x32xf32>
    %135 = vector.shape_cast %134 : vector<1x1x32xf32> to vector<1x32xf32>
    %cst_53 = arith.constant dense<0.000000e+00> : vector<16xf32>
    %136 = vector.multi_reduction <add>, %131, %cst_53 [1] : vector<16x32xf32> to vector<16xf32>
    %137 = vector.shape_cast %136 : vector<16xf32> to vector<16x1xf32>
    %cst_54 = arith.constant 3.200000e+01 : f32
    %138 = vector.broadcast %cst_54 : f32 to vector<16x1xf32>
    %139 = arith.divf %137, %138 : vector<16x1xf32>
    %140 = vector.broadcast %139 : vector<16x1xf32> to vector<16x32xf32>
    %141 = arith.subf %131, %140 : vector<16x32xf32>
    %142 = arith.mulf %141, %141 : vector<16x32xf32>
    %cst_55 = arith.constant dense<0.000000e+00> : vector<16xf32>
    %143 = vector.multi_reduction <add>, %142, %cst_55 [1] : vector<16x32xf32> to vector<16xf32>
    %144 = vector.shape_cast %143 : vector<16xf32> to vector<16x1xf32>
    %cst_56 = arith.constant 3.200000e+01 : f32
    %145 = vector.broadcast %cst_56 : f32 to vector<16x1xf32>
    %146 = arith.divf %144, %145 : vector<16x1xf32>
    %147 = vector.broadcast %139 : vector<16x1xf32> to vector<16x32xf32>
    %148 = arith.subf %131, %147 : vector<16x32xf32>
    %cst_57 = arith.constant 9.99999974E-6 : f32
    %149 = vector.broadcast %cst_57 : f32 to vector<16x1xf32>
    %150 = arith.addf %146, %149 : vector<16x1xf32>
    %151 = math.rsqrt %150 : vector<16x1xf32>
    %152 = vector.broadcast %151 : vector<16x1xf32> to vector<16x32xf32>
    %153 = arith.mulf %148, %152 : vector<16x32xf32>
    %154 = vector.broadcast %133 : vector<1x32xf32> to vector<16x32xf32>
    %155 = arith.mulf %153, %154 : vector<16x32xf32>
    %156 = vector.broadcast %135 : vector<1x32xf32> to vector<16x32xf32>
    %157 = arith.addf %155, %156 : vector<16x32xf32>
    %158 = arith.truncf %157 : vector<16x32xf32> to vector<16x32xbf16>
    %c0_58 = arith.constant 0 : index
    %c0_59 = arith.constant 0 : index
    %c0_60 = arith.constant 0 : index
    %159 = vector.load %arg12[%c0_58, %c0_59, %c0_60] : memref<2x32x2048xbf16, #tpu.memory_space<vmem>>, vector<1x32x2048xbf16>
    %160 = vector.shape_cast %159 : vector<1x32x2048xbf16> to vector<32x2048xbf16>
    %cst_61 = arith.constant dense<0.000000e+00> : vector<16x2048xf32>
    %161 = tpu.matmul %158, %160, %cst_61 {dimension_numbers = #tpu.dot_dimension_numbers<[1], [0], [0], [1], [0, 0, 1, 1], [], []>} : vector<16x32xbf16>, vector<32x2048xbf16>, vector<16x2048xf32> -> vector<16x2048xf32>
    %c0_62 = arith.constant 0 : index
    %c0_63 = arith.constant 0 : index
    %c0_64 = arith.constant 0 : index
    %162 = vector.load %arg13[%c0_62, %c0_63, %c0_64] : memref<2x1x2048xf32, #tpu.memory_space<vmem>>, vector<1x1x2048xf32>
    %163 = vector.shape_cast %162 : vector<1x1x2048xf32> to vector<1x2048xf32>
    %164 = vector.broadcast %163 : vector<1x2048xf32> to vector<16x2048xf32>
    %165 = arith.addf %161, %164 : vector<16x2048xf32>
    %cst_65 = arith.constant 0.000000e+00 : f32
    %166 = vector.broadcast %cst_65 : f32 to vector<16x2048xf32>
    %167 = arith.maximumf %165, %166 : vector<16x2048xf32>
    %168 = arith.truncf %167 : vector<16x2048xf32> to vector<16x2048xbf16>
    %c0_66 = arith.constant 0 : index
    %c0_67 = arith.constant 0 : index
    %c0_68 = arith.constant 0 : index
    %169 = vector.load %arg14[%c0_66, %c0_67, %c0_68] : memref<2x2048x32xbf16, #tpu.memory_space<vmem>>, vector<1x2048x32xbf16>
    %170 = vector.shape_cast %169 : vector<1x2048x32xbf16> to vector<2048x32xbf16>
    %cst_69 = arith.constant dense<0.000000e+00> : vector<16x32xf32>
    %171 = tpu.matmul %168, %170, %cst_69 {dimension_numbers = #tpu.dot_dimension_numbers<[1], [0], [0], [1], [0, 0, 1, 1], [], []>} : vector<16x2048xbf16>, vector<2048x32xbf16>, vector<16x32xf32> -> vector<16x32xf32>
    %c0_70 = arith.constant 0 : index
    %c0_71 = arith.constant 0 : index
    %c0_72 = arith.constant 0 : index
    %172 = vector.load %arg15[%c0_70, %c0_71, %c0_72] : memref<2x1x32xf32, #tpu.memory_space<vmem>>, vector<1x1x32xf32>
    %173 = vector.shape_cast %172 : vector<1x1x32xf32> to vector<1x32xf32>
    %174 = vector.broadcast %173 : vector<1x32xf32> to vector<16x32xf32>
    %175 = arith.addf %171, %174 : vector<16x32xf32>
    %176 = arith.addf %157, %175 : vector<16x32xf32>
    %c0_73 = arith.constant 0 : index
    %c0_74 = arith.constant 0 : index
    %c0_75 = arith.constant 0 : index
    %177 = vector.load %arg16[%c0_73, %c0_74, %c0_75] : memref<2x1x32xf32, #tpu.memory_space<vmem>>, vector<1x1x32xf32>
    %178 = vector.shape_cast %177 : vector<1x1x32xf32> to vector<1x32xf32>
    %c0_76 = arith.constant 0 : index
    %c0_77 = arith.constant 0 : index
    %c0_78 = arith.constant 0 : index
    %179 = vector.load %arg17[%c0_76, %c0_77, %c0_78] : memref<2x1x32xf32, #tpu.memory_space<vmem>>, vector<1x1x32xf32>
    %180 = vector.shape_cast %179 : vector<1x1x32xf32> to vector<1x32xf32>
    %cst_79 = arith.constant dense<0.000000e+00> : vector<16xf32>
    %181 = vector.multi_reduction <add>, %176, %cst_79 [1] : vector<16x32xf32> to vector<16xf32>
    %182 = vector.shape_cast %181 : vector<16xf32> to vector<16x1xf32>
    %cst_80 = arith.constant 3.200000e+01 : f32
    %183 = vector.broadcast %cst_80 : f32 to vector<16x1xf32>
    %184 = arith.divf %182, %183 : vector<16x1xf32>
    %185 = vector.broadcast %184 : vector<16x1xf32> to vector<16x32xf32>
    %186 = arith.subf %176, %185 : vector<16x32xf32>
    %187 = arith.mulf %186, %186 : vector<16x32xf32>
    %cst_81 = arith.constant dense<0.000000e+00> : vector<16xf32>
    %188 = vector.multi_reduction <add>, %187, %cst_81 [1] : vector<16x32xf32> to vector<16xf32>
    %189 = vector.shape_cast %188 : vector<16xf32> to vector<16x1xf32>
    %cst_82 = arith.constant 3.200000e+01 : f32
    %190 = vector.broadcast %cst_82 : f32 to vector<16x1xf32>
    %191 = arith.divf %189, %190 : vector<16x1xf32>
    %192 = vector.broadcast %184 : vector<16x1xf32> to vector<16x32xf32>
    %193 = arith.subf %176, %192 : vector<16x32xf32>
    %cst_83 = arith.constant 9.99999974E-6 : f32
    %194 = vector.broadcast %cst_83 : f32 to vector<16x1xf32>
    %195 = arith.addf %191, %194 : vector<16x1xf32>
    %196 = math.rsqrt %195 : vector<16x1xf32>
    %197 = vector.broadcast %196 : vector<16x1xf32> to vector<16x32xf32>
    %198 = arith.mulf %193, %197 : vector<16x32xf32>
    %199 = vector.broadcast %178 : vector<1x32xf32> to vector<16x32xf32>
    %200 = arith.mulf %198, %199 : vector<16x32xf32>
    %201 = vector.broadcast %180 : vector<1x32xf32> to vector<16x32xf32>
    %202 = arith.addf %200, %201 : vector<16x32xf32>
    %c1 = arith.constant 1 : index
    %c0_84 = arith.constant 0 : index
    %c0_85 = arith.constant 0 : index
    %203 = vector.load %arg8[%c1, %c0_84, %c0_85] : memref<2x32x32xbf16, #tpu.memory_space<vmem>>, vector<1x32x32xbf16>
    %204 = vector.shape_cast %203 : vector<1x32x32xbf16> to vector<32x32xbf16>
    %205 = arith.truncf %202 : vector<16x32xf32> to vector<16x32xbf16>
    %c1_86 = arith.constant 1 : index
    %c0_87 = arith.constant 0 : index
    %c0_88 = arith.constant 0 : index
    %206 = vector.load %arg6[%c1_86, %c0_87, %c0_88] : memref<2x32x96xbf16, #tpu.memory_space<vmem>>, vector<1x32x96xbf16>
    %207 = vector.shape_cast %206 : vector<1x32x96xbf16> to vector<32x96xbf16>
    %cst_89 = arith.constant dense<0.000000e+00> : vector<16x96xf32>
    %208 = tpu.matmul %205, %207, %cst_89 {dimension_numbers = #tpu.dot_dimension_numbers<[1], [0], [0], [1], [0, 0, 1, 1], [], []>} : vector<16x32xbf16>, vector<32x96xbf16>, vector<16x96xf32> -> vector<16x96xf32>
    %c1_90 = arith.constant 1 : index
    %c0_91 = arith.constant 0 : index
    %c0_92 = arith.constant 0 : index
    %209 = vector.load %arg7[%c1_90, %c0_91, %c0_92] : memref<2x1x96xf32, #tpu.memory_space<vmem>>, vector<1x1x96xf32>
    %210 = vector.shape_cast %209 : vector<1x1x96xf32> to vector<1x96xf32>
    %211 = vector.broadcast %210 : vector<1x96xf32> to vector<16x96xf32>
    %212 = arith.addf %208, %211 : vector<16x96xf32>
    %cst_93 = arith.constant 0.000000e+00 : f32
    %213 = vector.broadcast %cst_93 : f32 to vector<16x32xf32>
    %214 = vector.extract_strided_slice %212 {offsets = [0, 0], sizes = [16, 8], strides = [1, 1]} : vector<16x96xf32> to vector<16x8xf32>
    %215 = vector.extract_strided_slice %212 {offsets = [0, 32], sizes = [16, 8], strides = [1, 1]} : vector<16x96xf32> to vector<16x8xf32>
    %216 = vector.extract_strided_slice %212 {offsets = [0, 64], sizes = [16, 8], strides = [1, 1]} : vector<16x96xf32> to vector<16x8xf32>
    %cst_94 = arith.constant dense<0.000000e+00> : vector<16x16xf32>
    %217 = tpu.matmul %214, %215, %cst_94 {dimension_numbers = #tpu.dot_dimension_numbers<[1], [1], [0], [0], [0, 0, 1, 0], [], []>} : vector<16x8xf32>, vector<16x8xf32>, vector<16x16xf32> -> vector<16x16xf32>
    %cst_95 = arith.constant 0.353553385 : f32
    %218 = vector.broadcast %cst_95 : f32 to vector<16x16xf32>
    %219 = arith.mulf %217, %218 : vector<16x16xf32>
    %220 = arith.addf %219, %27 : vector<16x16xf32>
    %cst_96 = arith.constant dense<0xFF800000> : vector<16xf32>
    %221 = vector.multi_reduction <maximumf>, %220, %cst_96 [1] : vector<16x16xf32> to vector<16xf32>
    %222 = vector.shape_cast %221 : vector<16xf32> to vector<16x1xf32>
    %223 = vector.broadcast %222 : vector<16x1xf32> to vector<16x16xf32>
    %224 = arith.subf %220, %223 : vector<16x16xf32>
    %225 = math.exp %224 : vector<16x16xf32>
    %cst_97 = arith.constant dense<0.000000e+00> : vector<16xf32>
    %226 = vector.multi_reduction <add>, %225, %cst_97 [1] : vector<16x16xf32> to vector<16xf32>
    %227 = vector.shape_cast %226 : vector<16xf32> to vector<16x1xf32>
    %228 = tpu.reciprocal %227 {approx = true} : vector<16x1xf32> -> vector<16x1xf32>
    %229 = vector.broadcast %228 : vector<16x1xf32> to vector<16x16xf32>
    %230 = arith.mulf %225, %229 : vector<16x16xf32>
    %cst_98 = arith.constant dense<0.000000e+00> : vector<16x8xf32>
    %231 = tpu.matmul %230, %216, %cst_98 {dimension_numbers = #tpu.dot_dimension_numbers<[1], [0], [0], [1], [0, 0, 1, 1], [], []>} : vector<16x16xf32>, vector<16x8xf32>, vector<16x8xf32> -> vector<16x8xf32>
    %232 = arith.truncf %231 : vector<16x8xf32> to vector<16x8xbf16>
    %233 = vector.extract_strided_slice %204 {offsets = [0, 0], sizes = [8, 32], strides = [1, 1]} : vector<32x32xbf16> to vector<8x32xbf16>
    %cst_99 = arith.constant dense<0.000000e+00> : vector<16x32xf32>
    %234 = tpu.matmul %232, %233, %cst_99 {dimension_numbers = #tpu.dot_dimension_numbers<[1], [0], [0], [1], [0, 0, 1, 1], [], []>} : vector<16x8xbf16>, vector<8x32xbf16>, vector<16x32xf32> -> vector<16x32xf32>
    %235 = arith.addf %213, %234 : vector<16x32xf32>
    %236 = vector.extract_strided_slice %212 {offsets = [0, 8], sizes = [16, 8], strides = [1, 1]} : vector<16x96xf32> to vector<16x8xf32>
    %237 = vector.extract_strided_slice %212 {offsets = [0, 40], sizes = [16, 8], strides = [1, 1]} : vector<16x96xf32> to vector<16x8xf32>
    %238 = vector.extract_strided_slice %212 {offsets = [0, 72], sizes = [16, 8], strides = [1, 1]} : vector<16x96xf32> to vector<16x8xf32>
    %cst_100 = arith.constant dense<0.000000e+00> : vector<16x16xf32>
    %239 = tpu.matmul %236, %237, %cst_100 {dimension_numbers = #tpu.dot_dimension_numbers<[1], [1], [0], [0], [0, 0, 1, 0], [], []>} : vector<16x8xf32>, vector<16x8xf32>, vector<16x16xf32> -> vector<16x16xf32>
    %cst_101 = arith.constant 0.353553385 : f32
    %240 = vector.broadcast %cst_101 : f32 to vector<16x16xf32>
    %241 = arith.mulf %239, %240 : vector<16x16xf32>
    %242 = arith.addf %241, %27 : vector<16x16xf32>
    %cst_102 = arith.constant dense<0xFF800000> : vector<16xf32>
    %243 = vector.multi_reduction <maximumf>, %242, %cst_102 [1] : vector<16x16xf32> to vector<16xf32>
    %244 = vector.shape_cast %243 : vector<16xf32> to vector<16x1xf32>
    %245 = vector.broadcast %244 : vector<16x1xf32> to vector<16x16xf32>
    %246 = arith.subf %242, %245 : vector<16x16xf32>
    %247 = math.exp %246 : vector<16x16xf32>
    %cst_103 = arith.constant dense<0.000000e+00> : vector<16xf32>
    %248 = vector.multi_reduction <add>, %247, %cst_103 [1] : vector<16x16xf32> to vector<16xf32>
    %249 = vector.shape_cast %248 : vector<16xf32> to vector<16x1xf32>
    %250 = tpu.reciprocal %249 {approx = true} : vector<16x1xf32> -> vector<16x1xf32>
    %251 = vector.broadcast %250 : vector<16x1xf32> to vector<16x16xf32>
    %252 = arith.mulf %247, %251 : vector<16x16xf32>
    %cst_104 = arith.constant dense<0.000000e+00> : vector<16x8xf32>
    %253 = tpu.matmul %252, %238, %cst_104 {dimension_numbers = #tpu.dot_dimension_numbers<[1], [0], [0], [1], [0, 0, 1, 1], [], []>} : vector<16x16xf32>, vector<16x8xf32>, vector<16x8xf32> -> vector<16x8xf32>
    %254 = arith.truncf %253 : vector<16x8xf32> to vector<16x8xbf16>
    %255 = vector.extract_strided_slice %204 {offsets = [8, 0], sizes = [8, 32], strides = [1, 1]} : vector<32x32xbf16> to vector<8x32xbf16>
    %cst_105 = arith.constant dense<0.000000e+00> : vector<16x32xf32>
    %256 = tpu.matmul %254, %255, %cst_105 {dimension_numbers = #tpu.dot_dimension_numbers<[1], [0], [0], [1], [0, 0, 1, 1], [], []>} : vector<16x8xbf16>, vector<8x32xbf16>, vector<16x32xf32> -> vector<16x32xf32>
    %257 = arith.addf %235, %256 : vector<16x32xf32>
    %258 = vector.extract_strided_slice %212 {offsets = [0, 16], sizes = [16, 8], strides = [1, 1]} : vector<16x96xf32> to vector<16x8xf32>
    %259 = vector.extract_strided_slice %212 {offsets = [0, 48], sizes = [16, 8], strides = [1, 1]} : vector<16x96xf32> to vector<16x8xf32>
    %260 = vector.extract_strided_slice %212 {offsets = [0, 80], sizes = [16, 8], strides = [1, 1]} : vector<16x96xf32> to vector<16x8xf32>
    %cst_106 = arith.constant dense<0.000000e+00> : vector<16x16xf32>
    %261 = tpu.matmul %258, %259, %cst_106 {dimension_numbers = #tpu.dot_dimension_numbers<[1], [1], [0], [0], [0, 0, 1, 0], [], []>} : vector<16x8xf32>, vector<16x8xf32>, vector<16x16xf32> -> vector<16x16xf32>
    %cst_107 = arith.constant 0.353553385 : f32
    %262 = vector.broadcast %cst_107 : f32 to vector<16x16xf32>
    %263 = arith.mulf %261, %262 : vector<16x16xf32>
    %264 = arith.addf %263, %27 : vector<16x16xf32>
    %cst_108 = arith.constant dense<0xFF800000> : vector<16xf32>
    %265 = vector.multi_reduction <maximumf>, %264, %cst_108 [1] : vector<16x16xf32> to vector<16xf32>
    %266 = vector.shape_cast %265 : vector<16xf32> to vector<16x1xf32>
    %267 = vector.broadcast %266 : vector<16x1xf32> to vector<16x16xf32>
    %268 = arith.subf %264, %267 : vector<16x16xf32>
    %269 = math.exp %268 : vector<16x16xf32>
    %cst_109 = arith.constant dense<0.000000e+00> : vector<16xf32>
    %270 = vector.multi_reduction <add>, %269, %cst_109 [1] : vector<16x16xf32> to vector<16xf32>
    %271 = vector.shape_cast %270 : vector<16xf32> to vector<16x1xf32>
    %272 = tpu.reciprocal %271 {approx = true} : vector<16x1xf32> -> vector<16x1xf32>
    %273 = vector.broadcast %272 : vector<16x1xf32> to vector<16x16xf32>
    %274 = arith.mulf %269, %273 : vector<16x16xf32>
    %cst_110 = arith.constant dense<0.000000e+00> : vector<16x8xf32>
    %275 = tpu.matmul %274, %260, %cst_110 {dimension_numbers = #tpu.dot_dimension_numbers<[1], [0], [0], [1], [0, 0, 1, 1], [], []>} : vector<16x16xf32>, vector<16x8xf32>, vector<16x8xf32> -> vector<16x8xf32>
    %276 = arith.truncf %275 : vector<16x8xf32> to vector<16x8xbf16>
    %277 = vector.extract_strided_slice %204 {offsets = [16, 0], sizes = [8, 32], strides = [1, 1]} : vector<32x32xbf16> to vector<8x32xbf16>
    %cst_111 = arith.constant dense<0.000000e+00> : vector<16x32xf32>
    %278 = tpu.matmul %276, %277, %cst_111 {dimension_numbers = #tpu.dot_dimension_numbers<[1], [0], [0], [1], [0, 0, 1, 1], [], []>} : vector<16x8xbf16>, vector<8x32xbf16>, vector<16x32xf32> -> vector<16x32xf32>
    %279 = arith.addf %257, %278 : vector<16x32xf32>
    %280 = vector.extract_strided_slice %212 {offsets = [0, 24], sizes = [16, 8], strides = [1, 1]} : vector<16x96xf32> to vector<16x8xf32>
    %281 = vector.extract_strided_slice %212 {offsets = [0, 56], sizes = [16, 8], strides = [1, 1]} : vector<16x96xf32> to vector<16x8xf32>
    %282 = vector.extract_strided_slice %212 {offsets = [0, 88], sizes = [16, 8], strides = [1, 1]} : vector<16x96xf32> to vector<16x8xf32>
    %cst_112 = arith.constant dense<0.000000e+00> : vector<16x16xf32>
    %283 = tpu.matmul %280, %281, %cst_112 {dimension_numbers = #tpu.dot_dimension_numbers<[1], [1], [0], [0], [0, 0, 1, 0], [], []>} : vector<16x8xf32>, vector<16x8xf32>, vector<16x16xf32> -> vector<16x16xf32>
    %cst_113 = arith.constant 0.353553385 : f32
    %284 = vector.broadcast %cst_113 : f32 to vector<16x16xf32>
    %285 = arith.mulf %283, %284 : vector<16x16xf32>
    %286 = arith.addf %285, %27 : vector<16x16xf32>
    %cst_114 = arith.constant dense<0xFF800000> : vector<16xf32>
    %287 = vector.multi_reduction <maximumf>, %286, %cst_114 [1] : vector<16x16xf32> to vector<16xf32>
    %288 = vector.shape_cast %287 : vector<16xf32> to vector<16x1xf32>
    %289 = vector.broadcast %288 : vector<16x1xf32> to vector<16x16xf32>
    %290 = arith.subf %286, %289 : vector<16x16xf32>
    %291 = math.exp %290 : vector<16x16xf32>
    %cst_115 = arith.constant dense<0.000000e+00> : vector<16xf32>
    %292 = vector.multi_reduction <add>, %291, %cst_115 [1] : vector<16x16xf32> to vector<16xf32>
    %293 = vector.shape_cast %292 : vector<16xf32> to vector<16x1xf32>
    %294 = tpu.reciprocal %293 {approx = true} : vector<16x1xf32> -> vector<16x1xf32>
    %295 = vector.broadcast %294 : vector<16x1xf32> to vector<16x16xf32>
    %296 = arith.mulf %291, %295 : vector<16x16xf32>
    %cst_116 = arith.constant dense<0.000000e+00> : vector<16x8xf32>
    %297 = tpu.matmul %296, %282, %cst_116 {dimension_numbers = #tpu.dot_dimension_numbers<[1], [0], [0], [1], [0, 0, 1, 1], [], []>} : vector<16x16xf32>, vector<16x8xf32>, vector<16x8xf32> -> vector<16x8xf32>
    %298 = arith.truncf %297 : vector<16x8xf32> to vector<16x8xbf16>
    %299 = vector.extract_strided_slice %204 {offsets = [24, 0], sizes = [8, 32], strides = [1, 1]} : vector<32x32xbf16> to vector<8x32xbf16>
    %cst_117 = arith.constant dense<0.000000e+00> : vector<16x32xf32>
    %300 = tpu.matmul %298, %299, %cst_117 {dimension_numbers = #tpu.dot_dimension_numbers<[1], [0], [0], [1], [0, 0, 1, 1], [], []>} : vector<16x8xbf16>, vector<8x32xbf16>, vector<16x32xf32> -> vector<16x32xf32>
    %301 = arith.addf %279, %300 : vector<16x32xf32>
    %c1_118 = arith.constant 1 : index
    %c0_119 = arith.constant 0 : index
    %c0_120 = arith.constant 0 : index
    %302 = vector.load %arg9[%c1_118, %c0_119, %c0_120] : memref<2x1x32xf32, #tpu.memory_space<vmem>>, vector<1x1x32xf32>
    %303 = vector.shape_cast %302 : vector<1x1x32xf32> to vector<1x32xf32>
    %304 = vector.broadcast %303 : vector<1x32xf32> to vector<16x32xf32>
    %305 = arith.addf %301, %304 : vector<16x32xf32>
    %306 = arith.addf %202, %305 : vector<16x32xf32>
    %c1_121 = arith.constant 1 : index
    %c0_122 = arith.constant 0 : index
    %c0_123 = arith.constant 0 : index
    %307 = vector.load %arg10[%c1_121, %c0_122, %c0_123] : memref<2x1x32xf32, #tpu.memory_space<vmem>>, vector<1x1x32xf32>
    %308 = vector.shape_cast %307 : vector<1x1x32xf32> to vector<1x32xf32>
    %c1_124 = arith.constant 1 : index
    %c0_125 = arith.constant 0 : index
    %c0_126 = arith.constant 0 : index
    %309 = vector.load %arg11[%c1_124, %c0_125, %c0_126] : memref<2x1x32xf32, #tpu.memory_space<vmem>>, vector<1x1x32xf32>
    %310 = vector.shape_cast %309 : vector<1x1x32xf32> to vector<1x32xf32>
    %cst_127 = arith.constant dense<0.000000e+00> : vector<16xf32>
    %311 = vector.multi_reduction <add>, %306, %cst_127 [1] : vector<16x32xf32> to vector<16xf32>
    %312 = vector.shape_cast %311 : vector<16xf32> to vector<16x1xf32>
    %cst_128 = arith.constant 3.200000e+01 : f32
    %313 = vector.broadcast %cst_128 : f32 to vector<16x1xf32>
    %314 = arith.divf %312, %313 : vector<16x1xf32>
    %315 = vector.broadcast %314 : vector<16x1xf32> to vector<16x32xf32>
    %316 = arith.subf %306, %315 : vector<16x32xf32>
    %317 = arith.mulf %316, %316 : vector<16x32xf32>
    %cst_129 = arith.constant dense<0.000000e+00> : vector<16xf32>
    %318 = vector.multi_reduction <add>, %317, %cst_129 [1] : vector<16x32xf32> to vector<16xf32>
    %319 = vector.shape_cast %318 : vector<16xf32> to vector<16x1xf32>
    %cst_130 = arith.constant 3.200000e+01 : f32
    %320 = vector.broadcast %cst_130 : f32 to vector<16x1xf32>
    %321 = arith.divf %319, %320 : vector<16x1xf32>
    %322 = vector.broadcast %314 : vector<16x1xf32> to vector<16x32xf32>
    %323 = arith.subf %306, %322 : vector<16x32xf32>
    %cst_131 = arith.constant 9.99999974E-6 : f32
    %324 = vector.broadcast %cst_131 : f32 to vector<16x1xf32>
    %325 = arith.addf %321, %324 : vector<16x1xf32>
    %326 = math.rsqrt %325 : vector<16x1xf32>
    %327 = vector.broadcast %326 : vector<16x1xf32> to vector<16x32xf32>
    %328 = arith.mulf %323, %327 : vector<16x32xf32>
    %329 = vector.broadcast %308 : vector<1x32xf32> to vector<16x32xf32>
    %330 = arith.mulf %328, %329 : vector<16x32xf32>
    %331 = vector.broadcast %310 : vector<1x32xf32> to vector<16x32xf32>
    %332 = arith.addf %330, %331 : vector<16x32xf32>
    %333 = arith.truncf %332 : vector<16x32xf32> to vector<16x32xbf16>
    %c1_132 = arith.constant 1 : index
    %c0_133 = arith.constant 0 : index
    %c0_134 = arith.constant 0 : index
    %334 = vector.load %arg12[%c1_132, %c0_133, %c0_134] : memref<2x32x2048xbf16, #tpu.memory_space<vmem>>, vector<1x32x2048xbf16>
    %335 = vector.shape_cast %334 : vector<1x32x2048xbf16> to vector<32x2048xbf16>
    %cst_135 = arith.constant dense<0.000000e+00> : vector<16x2048xf32>
    %336 = tpu.matmul %333, %335, %cst_135 {dimension_numbers = #tpu.dot_dimension_numbers<[1], [0], [0], [1], [0, 0, 1, 1], [], []>} : vector<16x32xbf16>, vector<32x2048xbf16>, vector<16x2048xf32> -> vector<16x2048xf32>
    %c1_136 = arith.constant 1 : index
    %c0_137 = arith.constant 0 : index
    %c0_138 = arith.constant 0 : index
    %337 = vector.load %arg13[%c1_136, %c0_137, %c0_138] : memref<2x1x2048xf32, #tpu.memory_space<vmem>>, vector<1x1x2048xf32>
    %338 = vector.shape_cast %337 : vector<1x1x2048xf32> to vector<1x2048xf32>
    %339 = vector.broadcast %338 : vector<1x2048xf32> to vector<16x2048xf32>
    %340 = arith.addf %336, %339 : vector<16x2048xf32>
    %cst_139 = arith.constant 0.000000e+00 : f32
    %341 = vector.broadcast %cst_139 : f32 to vector<16x2048xf32>
    %342 = arith.maximumf %340, %341 : vector<16x2048xf32>
    %343 = arith.truncf %342 : vector<16x2048xf32> to vector<16x2048xbf16>
    %c1_140 = arith.constant 1 : index
    %c0_141 = arith.constant 0 : index
    %c0_142 = arith.constant 0 : index
    %344 = vector.load %arg14[%c1_140, %c0_141, %c0_142] : memref<2x2048x32xbf16, #tpu.memory_space<vmem>>, vector<1x2048x32xbf16>
    %345 = vector.shape_cast %344 : vector<1x2048x32xbf16> to vector<2048x32xbf16>
    %cst_143 = arith.constant dense<0.000000e+00> : vector<16x32xf32>
    %346 = tpu.matmul %343, %345, %cst_143 {dimension_numbers = #tpu.dot_dimension_numbers<[1], [0], [0], [1], [0, 0, 1, 1], [], []>} : vector<16x2048xbf16>, vector<2048x32xbf16>, vector<16x32xf32> -> vector<16x32xf32>
    %c1_144 = arith.constant 1 : index
    %c0_145 = arith.constant 0 : index
    %c0_146 = arith.constant 0 : index
    %347 = vector.load %arg15[%c1_144, %c0_145, %c0_146] : memref<2x1x32xf32, #tpu.memory_space<vmem>>, vector<1x1x32xf32>
    %348 = vector.shape_cast %347 : vector<1x1x32xf32> to vector<1x32xf32>
    %349 = vector.broadcast %348 : vector<1x32xf32> to vector<16x32xf32>
    %350 = arith.addf %346, %349 : vector<16x32xf32>
    %351 = arith.addf %332, %350 : vector<16x32xf32>
    %c1_147 = arith.constant 1 : index
    %c0_148 = arith.constant 0 : index
    %c0_149 = arith.constant 0 : index
    %352 = vector.load %arg16[%c1_147, %c0_148, %c0_149] : memref<2x1x32xf32, #tpu.memory_space<vmem>>, vector<1x1x32xf32>
    %353 = vector.shape_cast %352 : vector<1x1x32xf32> to vector<1x32xf32>
    %c1_150 = arith.constant 1 : index
    %c0_151 = arith.constant 0 : index
    %c0_152 = arith.constant 0 : index
    %354 = vector.load %arg17[%c1_150, %c0_151, %c0_152] : memref<2x1x32xf32, #tpu.memory_space<vmem>>, vector<1x1x32xf32>
    %355 = vector.shape_cast %354 : vector<1x1x32xf32> to vector<1x32xf32>
    %cst_153 = arith.constant dense<0.000000e+00> : vector<16xf32>
    %356 = vector.multi_reduction <add>, %351, %cst_153 [1] : vector<16x32xf32> to vector<16xf32>
    %357 = vector.shape_cast %356 : vector<16xf32> to vector<16x1xf32>
    %cst_154 = arith.constant 3.200000e+01 : f32
    %358 = vector.broadcast %cst_154 : f32 to vector<16x1xf32>
    %359 = arith.divf %357, %358 : vector<16x1xf32>
    %360 = vector.broadcast %359 : vector<16x1xf32> to vector<16x32xf32>
    %361 = arith.subf %351, %360 : vector<16x32xf32>
    %362 = arith.mulf %361, %361 : vector<16x32xf32>
    %cst_155 = arith.constant dense<0.000000e+00> : vector<16xf32>
    %363 = vector.multi_reduction <add>, %362, %cst_155 [1] : vector<16x32xf32> to vector<16xf32>
    %364 = vector.shape_cast %363 : vector<16xf32> to vector<16x1xf32>
    %cst_156 = arith.constant 3.200000e+01 : f32
    %365 = vector.broadcast %cst_156 : f32 to vector<16x1xf32>
    %366 = arith.divf %364, %365 : vector<16x1xf32>
    %367 = vector.broadcast %359 : vector<16x1xf32> to vector<16x32xf32>
    %368 = arith.subf %351, %367 : vector<16x32xf32>
    %cst_157 = arith.constant 9.99999974E-6 : f32
    %369 = vector.broadcast %cst_157 : f32 to vector<16x1xf32>
    %370 = arith.addf %366, %369 : vector<16x1xf32>
    %371 = math.rsqrt %370 : vector<16x1xf32>
    %372 = vector.broadcast %371 : vector<16x1xf32> to vector<16x32xf32>
    %373 = arith.mulf %368, %372 : vector<16x32xf32>
    %374 = vector.broadcast %353 : vector<1x32xf32> to vector<16x32xf32>
    %375 = arith.mulf %373, %374 : vector<16x32xf32>
    %376 = vector.broadcast %355 : vector<1x32xf32> to vector<16x32xf32>
    %377 = arith.addf %375, %376 : vector<16x32xf32>
    %c0_158 = arith.constant 0 : index
    %c0_159 = arith.constant 0 : index
    %378 = vector.load %arg18[%c0_158, %c0_159] : memref<1x32xf32, #tpu.memory_space<vmem>>, vector<1x32xf32>
    %c0_160 = arith.constant 0 : index
    %c0_161 = arith.constant 0 : index
    %379 = vector.load %arg19[%c0_160, %c0_161] : memref<1x32xf32, #tpu.memory_space<vmem>>, vector<1x32xf32>
    %cst_162 = arith.constant dense<0.000000e+00> : vector<16xf32>
    %380 = vector.multi_reduction <add>, %377, %cst_162 [1] : vector<16x32xf32> to vector<16xf32>
    %381 = vector.shape_cast %380 : vector<16xf32> to vector<16x1xf32>
    %cst_163 = arith.constant 3.200000e+01 : f32
    %382 = vector.broadcast %cst_163 : f32 to vector<16x1xf32>
    %383 = arith.divf %381, %382 : vector<16x1xf32>
    %384 = vector.broadcast %383 : vector<16x1xf32> to vector<16x32xf32>
    %385 = arith.subf %377, %384 : vector<16x32xf32>
    %386 = arith.mulf %385, %385 : vector<16x32xf32>
    %cst_164 = arith.constant dense<0.000000e+00> : vector<16xf32>
    %387 = vector.multi_reduction <add>, %386, %cst_164 [1] : vector<16x32xf32> to vector<16xf32>
    %388 = vector.shape_cast %387 : vector<16xf32> to vector<16x1xf32>
    %cst_165 = arith.constant 3.200000e+01 : f32
    %389 = vector.broadcast %cst_165 : f32 to vector<16x1xf32>
    %390 = arith.divf %388, %389 : vector<16x1xf32>
    %391 = vector.broadcast %383 : vector<16x1xf32> to vector<16x32xf32>
    %392 = arith.subf %377, %391 : vector<16x32xf32>
    %cst_166 = arith.constant 9.99999974E-6 : f32
    %393 = vector.broadcast %cst_166 : f32 to vector<16x1xf32>
    %394 = arith.addf %390, %393 : vector<16x1xf32>
    %395 = math.rsqrt %394 : vector<16x1xf32>
    %396 = vector.broadcast %395 : vector<16x1xf32> to vector<16x32xf32>
    %397 = arith.mulf %392, %396 : vector<16x32xf32>
    %398 = vector.broadcast %378 : vector<1x32xf32> to vector<16x32xf32>
    %399 = arith.mulf %397, %398 : vector<16x32xf32>
    %400 = vector.broadcast %379 : vector<1x32xf32> to vector<16x32xf32>
    %401 = arith.addf %399, %400 : vector<16x32xf32>
    %c0_167 = arith.constant 0 : index
    %c0_168 = arith.constant 0 : index
    %402 = vector.load %arg5[%c0_167, %c0_168] : memref<2x16xf32, #tpu.memory_space<vmem>>, vector<2x16xf32>
    %cst_169 = arith.constant dense<0.000000e+00> : vector<2x32xf32>
    %403 = tpu.matmul %402, %401, %cst_169 {dimension_numbers = #tpu.dot_dimension_numbers<[1], [0], [0], [1], [0, 0, 1, 1], [], []>} : vector<2x16xf32>, vector<16x32xf32>, vector<2x32xf32> -> vector<2x32xf32>
    %404 = arith.truncf %403 : vector<2x32xf32> to vector<2x32xbf16>
    %c0_170 = arith.constant 0 : index
    %c0_171 = arith.constant 0 : index
    %405 = vector.load %arg20[%c0_170, %c0_171] : memref<32x1xbf16, #tpu.memory_space<vmem>>, vector<32x1xbf16>
    %cst_172 = arith.constant dense<0.000000e+00> : vector<2x1xf32>
    %406 = tpu.matmul %404, %405, %cst_172 {dimension_numbers = #tpu.dot_dimension_numbers<[1], [0], [0], [1], [0, 0, 1, 1], [], []>} : vector<2x32xbf16>, vector<32x1xbf16>, vector<2x1xf32> -> vector<2x1xf32>
    %c0_173 = arith.constant 0 : index
    %c0_174 = arith.constant 0 : index
    %407 = vector.load %arg21[%c0_173, %c0_174] : memref<1x1xf32, #tpu.memory_space<vmem>>, vector<1x1xf32>
    %408 = vector.broadcast %407 : vector<1x1xf32> to vector<2x1xf32>
    %409 = arith.addf %406, %408 : vector<2x1xf32>
    %c0_175 = arith.constant 0 : index
    %c0_176 = arith.constant 0 : index
    %410 = vector.load %arg22[%c0_175, %c0_176] : memref<2x1xf32, #tpu.memory_space<vmem>>, vector<2x1xf32>
    tpu.vector_store %arg22[%c0_175, %c0_176], %409 {strides = array<i32>} : memref<2x1xf32, #tpu.memory_space<vmem>>, vector<2x1xf32>,
    return
  }
  func.func @transform_0(%arg0: i32) -> (i32, i32) {
    %c0_i32 = arith.constant 0 : i32
    %c0_i32_0 = arith.constant 0 : i32
    %c0_i32_1 = arith.constant 0 : i32
    return %c0_i32, %c0_i32_0 : i32, i32
  }
  func.func @transform_1(%arg0: i32) -> (i32, i32) {
    %c0_i32 = arith.constant 0 : i32
    %c0_i32_0 = arith.constant 0 : i32
    %c0_i32_1 = arith.constant 0 : i32
    return %c0_i32, %c0_i32_0 : i32, i32
  }
  func.func @transform_2(%arg0: i32) -> (i32, i32) {
    %c0_i32 = arith.constant 0 : i32
    %c0_i32_0 = arith.constant 0 : i32
    %c0_i32_1 = arith.constant 0 : i32
    return %c0_i32, %c0_i32_0 : i32, i32
  }
  func.func @transform_3(%arg0: i32) -> (i32, i32) {
    %c0_i32 = arith.constant 0 : i32
    %c0_i32_0 = arith.constant 0 : i32
    %c0_i32_1 = arith.constant 0 : i32
    return %c0_i32, %c0_i32_0 : i32, i32
  }
  func.func @transform_4(%arg0: i32) -> (i32, i32) {
    %c0_i32 = arith.constant 0 : i32
    %c0_i32_0 = arith.constant 0 : i32
    %c0_i32_1 = arith.constant 0 : i32
    return %c0_i32, %c0_i32_0 : i32, i32
  }
  func.func @transform_5(%arg0: i32) -> (i32, i32, i32) {
    %c0_i32 = arith.constant 0 : i32
    %c0_i32_0 = arith.constant 0 : i32
    %c0_i32_1 = arith.constant 0 : i32
    %c0_i32_2 = arith.constant 0 : i32
    return %c0_i32, %c0_i32_0, %c0_i32_1 : i32, i32, i32
  }
  func.func @transform_6(%arg0: i32) -> (i32, i32, i32) {
    %c0_i32 = arith.constant 0 : i32
    %c0_i32_0 = arith.constant 0 : i32
    %c0_i32_1 = arith.constant 0 : i32
    %c0_i32_2 = arith.constant 0 : i32
    return %c0_i32, %c0_i32_0, %c0_i32_1 : i32, i32, i32
  }
  func.func @transform_7(%arg0: i32) -> (i32, i32, i32) {
    %c0_i32 = arith.constant 0 : i32
    %c0_i32_0 = arith.constant 0 : i32
    %c0_i32_1 = arith.constant 0 : i32
    %c0_i32_2 = arith.constant 0 : i32
    return %c0_i32, %c0_i32_0, %c0_i32_1 : i32, i32, i32
  }
  func.func @transform_8(%arg0: i32) -> (i32, i32, i32) {
    %c0_i32 = arith.constant 0 : i32
    %c0_i32_0 = arith.constant 0 : i32
    %c0_i32_1 = arith.constant 0 : i32
    %c0_i32_2 = arith.constant 0 : i32
    return %c0_i32, %c0_i32_0, %c0_i32_1 : i32, i32, i32
  }
  func.func @transform_9(%arg0: i32) -> (i32, i32, i32) {
    %c0_i32 = arith.constant 0 : i32
    %c0_i32_0 = arith.constant 0 : i32
    %c0_i32_1 = arith.constant 0 : i32
    %c0_i32_2 = arith.constant 0 : i32
    return %c0_i32, %c0_i32_0, %c0_i32_1 : i32, i32, i32
  }
  func.func @transform_10(%arg0: i32) -> (i32, i32, i32) {
    %c0_i32 = arith.constant 0 : i32
    %c0_i32_0 = arith.constant 0 : i32
    %c0_i32_1 = arith.constant 0 : i32
    %c0_i32_2 = arith.constant 0 : i32
    return %c0_i32, %c0_i32_0, %c0_i32_1 : i32, i32, i32
  }
  func.func @transform_11(%arg0: i32) -> (i32, i32, i32) {
    %c0_i32 = arith.constant 0 : i32
    %c0_i32_0 = arith.constant 0 : i32
    %c0_i32_1 = arith.constant 0 : i32
    %c0_i32_2 = arith.constant 0 : i32
    return %c0_i32, %c0_i32_0, %c0_i32_1 : i32, i32, i32
  }
  func.func @transform_12(%arg0: i32) -> (i32, i32, i32) {
    %c0_i32 = arith.constant 0 : i32
    %c0_i32_0 = arith.constant 0 : i32
    %c0_i32_1 = arith.constant 0 : i32
    %c0_i32_2 = arith.constant 0 : i32
    return %c0_i32, %c0_i32_0, %c0_i32_1 : i32, i32, i32
  }
  func.func @transform_13(%arg0: i32) -> (i32, i32, i32) {
    %c0_i32 = arith.constant 0 : i32
    %c0_i32_0 = arith.constant 0 : i32
    %c0_i32_1 = arith.constant 0 : i32
    %c0_i32_2 = arith.constant 0 : i32
    return %c0_i32, %c0_i32_0, %c0_i32_1 : i32, i32, i32
  }
  func.func @transform_14(%arg0: i32) -> (i32, i32, i32) {
    %c0_i32 = arith.constant 0 : i32
    %c0_i32_0 = arith.constant 0 : i32
    %c0_i32_1 = arith.constant 0 : i32
    %c0_i32_2 = arith.constant 0 : i32
    return %c0_i32, %c0_i32_0, %c0_i32_1 : i32, i32, i32
  }
  func.func @transform_15(%arg0: i32) -> (i32, i32, i32) {
    %c0_i32 = arith.constant 0 : i32
    %c0_i32_0 = arith.constant 0 : i32
    %c0_i32_1 = arith.constant 0 : i32
    %c0_i32_2 = arith.constant 0 : i32
    return %c0_i32, %c0_i32_0, %c0_i32_1 : i32, i32, i32
  }
  func.func @transform_16(%arg0: i32) -> (i32, i32, i32) {
    %c0_i32 = arith.constant 0 : i32
    %c0_i32_0 = arith.constant 0 : i32
    %c0_i32_1 = arith.constant 0 : i32
    %c0_i32_2 = arith.constant 0 : i32
    return %c0_i32, %c0_i32_0, %c0_i32_1 : i32, i32, i32
  }
  func.func @transform_17(%arg0: i32) -> (i32, i32) {
    %c0_i32 = arith.constant 0 : i32
    %c0_i32_0 = arith.constant 0 : i32
    %c0_i32_1 = arith.constant 0 : i32
    return %c0_i32, %c0_i32_0 : i32, i32
  }
  func.func @transform_18(%arg0: i32) -> (i32, i32) {
    %c0_i32 = arith.constant 0 : i32
    %c0_i32_0 = arith.constant 0 : i32
    %c0_i32_1 = arith.constant 0 : i32
    return %c0_i32, %c0_i32_0 : i32, i32
  }
  func.func @transform_19(%arg0: i32) -> (i32, i32) {
    %c0_i32 = arith.constant 0 : i32
    %c0_i32_0 = arith.constant 0 : i32
    %c0_i32_1 = arith.constant 0 : i32
    return %c0_i32, %c0_i32_0 : i32, i32
  }
  func.func @transform_20(%arg0: i32) -> (i32, i32) {
    %c0_i32 = arith.constant 0 : i32
    %c0_i32_0 = arith.constant 0 : i32
    %c0_i32_1 = arith.constant 0 : i32
    return %c0_i32, %c0_i32_0 : i32, i32
  }
  func.func @transform_21(%arg0: i32) -> (i32, i32) {
    %c0_i32 = arith.constant 0 : i32
    %c0_i32_0 = arith.constant 0 : i32
    %c0_i32_1 = arith.constant 0 : i32
    return %c0_i32, %c0_i32_0 : i32, i32
  }
}

</mosaic_0001>

<bundles_post_ra>
// kernel: transformer_forward.1
= control target key start
LH: loop header
LB: loop body
LE: loop exit
PB: predicated region body
PF: predicated region fallthrough
CT: control target
= control target key end

     0   :  { %v7328_v0 = vmov 0   ;;  %v7329_v1 = vmov 2   ;;  %v7330_v4 = vmov 1   ;;  %vm135_vm0 = vcmask 1041408   ;;  %s9224_s27 = smov 96   ;;  %s9223_s22 = smov 64   ;;  %s9180_s0 = inlined_call_operand.vmem [shape: s32[16,3], index: 0, kind: input, shape index: {}]   ;;  %s9181_s1 = inlined_call_operand.vmem [shape: f32[50,32], index: 1, kind: input, shape index: {}]   ;;  %s9182_s6 = inlined_call_operand.vmem [shape: f32[2,1,96], index: 6, kind: input, shape index: {}]   ;;  %s9183_s5 = inlined_call_operand.vmem [shape: bf16[2,32,96], index: 5, kind: input, shape index: {}]   ;;  %s9184_s2 = inlined_call_operand.vmem [shape: f32[16,32], index: 2, kind: input, shape index: {}]   ;;  %s9185_s3 = inlined_call_operand.vmem [shape: f32[16,16], index: 3, kind: input, shape index: {}]   ;;  %s9186_s7 = inlined_call_operand.vmem [shape: bf16[2,32,32], index: 7, kind: input, shape index: {}]   ;;  %s9187_s8 = inlined_call_operand.vmem [shape: f32[2,1,32], index: 8, kind: input, shape index: {}]   ;;  %s9188_s9 = inlined_call_operand.vmem [shape: f32[2,1,32], index: 9, kind: input, shape index: {}]   ;;  %s9189_s10 = inlined_call_operand.vmem [shape: f32[2,1,32], index: 10, kind: input, shape index: {}]   ;;  %s9190_s11 = inlined_call_operand.vmem [shape: bf16[2,32,2048], index: 11, kind: input, shape index: {}]   ;;  %s9191_s13 = inlined_call_operand.vmem [shape: bf16[2,2048,32], index: 13, kind: input, shape index: {}]   ;;  %s9192_s12 = inlined_call_operand.vmem [shape: f32[2,1,2048], index: 12, kind: input, shape index: {}]   ;;  %s9193_s14 = inlined_call_operand.vmem [shape: f32[2,1,32], index: 14, kind: input, shape index: {}]   ;;  %s9194_s15 = inlined_call_operand.vmem [shape: f32[2,1,32], index: 15, kind: input, shape index: {}]   ;;  %s9195_s16 = inlined_call_operand.vmem [shape: f32[2,1,32], index: 16, kind: input, shape index: {}]   ;;  %s9196_s17 = inlined_call_operand.vmem [shape: f32[1,32], index: 17, kind: input, shape index: {}]   ;;  %s9197_s18 = inlined_call_operand.vmem [shape: f32[1,32], index: 18, kind: input, shape index: {}]   ;;  %s9198_s19 = inlined_call_operand.vmem [shape: bf16[32,1], index: 19, kind: input, shape index: {}]   ;;  %s9199_s4 = inlined_call_operand.vmem [shape: f32[2,16], index: 4, kind: input, shape index: {}]   ;;  %s9200_s20 = inlined_call_operand.<no memory space> [shape: f32[1,1], index: 20, kind: input, shape index: {}]   ;;  %s9201_s21 = inlined_call_operand.vmem [shape: f32[2,1], index: 21, kind: output, shape index: {}]  }
   0x1   :  { %9226 = sst [smem:[#allocation3_spill]] %s9180_s0  ;;  %7176 = vset.pattern.permute.xlu0 %v7328_v0  ;;  %7178 = vset.pattern.permute.xlu1 %v7329_v1  ;;  %v80_v12 = vlaneseq  ;;  %v7331_v19 = vmov 0.0   ;;  %vm128_vm7 = vcmask 408576   ;;  %vm189_vm8 = vcmask 261120   ;;  %s9215_s24 = smov 80  }
   0x2   :  { %9227 = sst [smem:[#allocation4_spill]] %s9181_s1  ;;  %7180 = vset.pattern.permute.xlu2 %v7330_v4  ;;  %vm213_vm9 = vcmask 64512   ;;  %vm249_vm10 = vcmask 130048   ;;  %s9211_s1 = smov 112   ;;  %vm412_vm11 = vcmask 1043456  }
   0x3   :  { %9228 = sst [smem:[#allocation5_spill]] %s9182_s6  ;;  %v81_v16 = vand.u32 127, %v80_v12  ;;  %s9217_s6 = smov 72  }
   0x4   :  { %9229 = sst [smem:[#allocation6_spill]] %s9183_s5  ;;  %s9213_s25 = smov 104  }
   0x5   :  { %9230 = sst [smem:[#allocation7_spill]] %s9184_s2  ;;  %s9210_s2 = smov 56  }
   0x6   :  { %9231 = sst [smem:[#allocation8_spill]] %s9185_s3  ;;  %s9221_s3 = smov 88  }
   0x7   :  { %s9232_s26 = sld [smem:[#allocation3_spill]]  ;;  %s9208_s30 = smov 40  }
   0x8   :  { %s9233_s0 = sld [smem:[#allocation4_spill]]  ;;  %s9209_s5 = smov 48  }
   0x9   :  { %s9235_s23 = sld [smem:[#allocation7_spill]] }
   0xa   :  { %s9237_s29 = sld [smem:[#allocation8_spill]] }
   0xd   :  { %v71_v2 = vld [vmem:[%s9232_s26] sm:$0xff]  ;;  %v72_v3 = vld [vmem:[%s9232_s26 + $0x8] sm:$0xff]  ;;  %s9236_s26 = sld [smem:[#allocation5_spill]] }
   0xe   :  { %83 = vperm.xlu0 %7176, %v71_v2   ;;  %111 = vperm.xlu1 %7178, %v71_v2   ;;  %v79_v5 = vld [vmem:[%s9233_s0 + $0x30] sm:$0x3]  ;;  %v78_v6 = vld [vmem:[%s9233_s0 + $0x28] sm:$0xff]  ;;  %v77_v7 = vld [vmem:[%s9233_s0 + $0x20] sm:$0xff] }
   0xf   :  { %100 = vperm.xlu2 %7180, %v72_v3   ;;  %5128 = vmatpush.msk.msra.mxu0 %vm135_vm0, %v79_v5  ;;  %v76_v8 = vld [vmem:[%s9233_s0 + $0x18] sm:$0xff]  ;;  %v75_v9 = vld [vmem:[%s9233_s0 + $0x10] sm:$0xff]  ;;  %v74_v10 = vld [vmem:[%s9233_s0 + $0x8] sm:$0xff] }
  0x10   :  { %v73_v11 = vld [vmem:[%s9233_s0] sm:$0xff]  ;;  %s9234_s0 = sld [smem:[#allocation6_spill]]  ;;  %v127_v37 = vld [vmem:[%s9235_s23 + $0x8] sm:$0xff] }
  0x11   :  { %149 = vmatpush.msra.mxu0 %v78_v6  ;;  %v126_v36 = vld [vmem:[%s9235_s23] sm:$0xff]  ;;  %v7527_v55 = vld [vmem:[%s9237_s29 + $0x8] sm:$0xff]  ;;  %s9219_s23 = smov 120  }
  0x12   :  { %v7520_v50 = vld [vmem:[%s9237_s29] sm:$0xff] }
  0x13   :  { %150 = vmatpush.msra.mxu0 %v77_v7  ;;  %v7223_v42 = vld [vmem:[%s9236_s26] ss:$0 sm:$0xff] }
  0x15   :  { %151 = vmatpush.msra.mxu0 %v76_v8 }
  0x16   :  { %7177 = vset.pattern.permute.xlu0 %v7330_v4  ;;  %7179 = vset.pattern.permute.xlu1 %v7328_v0  ;;  %v6833_v33 = vld [vmem:[%s9234_s0 + $0x8] sm:$0xff]  ;;  %v6832_v34 = vld [vmem:[%s9234_s0] sm:$0xff] }
  0x17   :  { %97 = vperm.xlu0 %7177, %v71_v2   ;;  %86 = vperm.xlu1 %7179, %v72_v3  }
  0x18   :  { %7181 = vset.pattern.permute.xlu2 %v7329_v1  ;;  %152 = vmatpush.msra.mxu0 %v75_v9 }
  0x19   :  { %114 = vperm.xlu2 %7181, %v72_v3   ;;  %199 = vmatpush.bf16.msra.mxu1 %v6833_v33 }
  0x1a   :  { %153 = vmatpush.msra.mxu0 %v74_v10  ;;  %v164_v10 = vld [vmem:[%s9186_s7] sm:$0xf] }
  0x1c   :  { %154 = vmatpush.msra.mxu0 %v73_v11  ;;  %v434_v11 = vsel %vm412_vm11, %v164_v10, 0 }
  0x1d   :  { %200 = vmatpush.bf16.msra.mxu1 %v6832_v34 }
  0x1f   :  { %7222 = vset.pattern.permute.xlu0 %v7329_v1 }
  0x69   :  { %v101_v15 = vpop.permute.xlu2 %100 }
  0x6a   :  { %vm103_vm3 = vcmp.eq.s32.totalorder %v81_v16, %v101_v15 }
  0x6b   :  { %v5125_v25 = vsel %vm103_vm3, 1.0, %v7331_v19 }
  0x73   :  { %v115_v22 = vpop.permute.xlu2 %114 }
  0x74   :  { %vm117_vm6 = vcmp.eq.s32.totalorder %v81_v16, %v115_v22 }
  0x75   :  { %v5127_v30 = vsel %vm117_vm6, 1.0, %v7331_v19 }
  0x80   :  { %v84_v13 = vpop.permute.xlu0 %83  ;;  %v112_v14 = vpop.permute.xlu1 %111 }
  0x81   :  { %vm88_vm1 = vcmp.eq.s32.totalorder %v81_v16, %v84_v13  ;;  %vm116_vm2 = vcmp.eq.s32.totalorder %v81_v16, %v112_v14 }
  0x82   :  { %v5122_v20 = vsel %vm88_vm1, 1.0, %v7331_v19  ;;  %v5126_v24 = vsel %vm116_vm2, 1.0, %v7331_v19 }
  0x89   :  { %v98_v17 = vpop.permute.xlu0 %97  ;;  %v87_v18 = vpop.permute.xlu1 %86 }
  0x8a   :  { %vm102_vm4 = vcmp.eq.s32.totalorder %v81_v16, %v98_v17  ;;  %vm89_vm5 = vcmp.eq.s32.totalorder %v81_v16, %v87_v18 }
  0x8b   :  { %v5124_v21 = vsel %vm102_vm4, 1.0, %v7331_v19  ;;  %v5123_v26 = vsel %vm89_vm5, 1.0, %v7331_v19 }
  0x8c   :  { %v108_v23 = vadd.f32 %v5124_v21, %v5122_v20  ;;  %v109_v28 = vadd.f32 %v5125_v25, %v5123_v26 }
  0x8e   :  { %v122_v27 = vadd.f32 %v5126_v24, %v108_v23  ;;  %v123_v31 = vadd.f32 %v5127_v30, %v109_v28 }
  0x90   :  { %v124_v29 = vmul.f32 0.33333334, %v122_v27  ;;  %v125_v32 = vmul.f32 0.33333334, %v123_v31 }
  0x92   :  { %5129 = vmatmul.msk.f32.vlgmr.msra.gmra.mxu0 %vm128_vm7, %v124_v29 }
  0x9a   :  { %5130 = vmatmul.msk.f32.gmra.mxu0 %vm128_vm7, %v125_v32 }
 0x10f   :  { %v156_v35 = vpop.f32.mrf.mxu0 }
 0x110   :  { %v7493_v39 = vadd.f32 %v156_v35, %v126_v36 }
 0x117   :  { %v159_v38 = vpop.f32.mrf.mxu0 }
 0x118   :  { %v7495_v40 = vadd.f32 %v159_v38, %v127_v37 }
 0x11a   :  { %v168_v41 = vpack.c.bf16 %v7495_v40, %v7493_v39 }
 0x11c   :  { %5139 = vmatmul.msk.bf16.vlgmr.msra.gmra.mxu1 %vm189_vm8, %v168_v41 }
 0x199   :  { %v202_v43 = vpop.f32.mrf.mxu1 }
 0x19a   :  { %v7503_v44 = vadd.f32 %v7223_v42, %v202_v43 }
 0x19c   :  { %209 = vrot.lane.b32.xlu2 %v7503_v44, %s9224_s27 }
 0x1a1   :  { %v204_v45 = vpop.f32.mrf.mxu1 }
 0x1a2   :  { %v7507_v46 = vadd.f32 %v7223_v42, %v204_v45 }
 0x1a4   :  { %211 = vrot.lane.b32.xlu1 %v7507_v46, %s9224_s27  ;;  %v7535_v59 = vpack.i.bf16 %v7503_v44, %v7507_v46  ;;  %s9244_s27 = smov 104  }
 0x1f6   :  { %v210_v48 = vpop.permute.xlu2 %209 }
 0x216   :  { %v212_v47 = vpop.permute.xlu1 %211 }
 0x217   :  { %5140 = vmatpush.xpose.msk.msra.mxu2 %vm213_vm9, %v212_v47 }
 0x21b   :  { %5141 = vmatpush.xpose.msk.msra.mxu2 %vm213_vm9, %v210_v48 }
 0x21e   :  { %5142 = vmatmul.msk.f32.vlgmr.msra.gmra.mxu2 %vm213_vm9, %v7503_v44 }
 0x226   :  { %5143 = vmatmul.msk.f32.gmra.mxu2 %vm213_vm9, %v7507_v46 }
 0x2a1   :  { %v239_v49 = vpop.f32.mrf.mxu2 }
 0x2a2   :  { %v245_v51 = vmul.f32 0.35355338, %v239_v49 }
 0x2a4   :  { %v247_v52 = vadd.f32 %v245_v51, %v7520_v50 }
 0x2a6   :  { %v250_v53 = vsel %vm249_vm10, %v247_v52, -inf }
 0x2a7   :  { %251 = vmax.xlane.f32.xlu1 %v250_v53 }
 0x2a9   :  { %v242_v54 = vpop.f32.mrf.mxu2 }
 0x2aa   :  { %v246_v56 = vmul.f32 0.35355338, %v242_v54 }
 0x2ac   :  { %v248_v57 = vadd.f32 %v246_v56, %v7527_v55 }
 0x2ae   :  { %v253_v58 = vsel %vm249_vm10, %v248_v57, -inf }
 0x2af   :  { %254 = vmax.xlane.f32.xlu0 %v253_v58 }
 0x2c0   :  { %314 = vrot.lane.b32.xlu1 %v7507_v46, %s9221_s3 }
 0x2c3   :  { %7183 = vrot.lane.b32.xlu0 %v7535_v59, %s9223_s22  ;;  %s9240_s22 = smov 88  }
 0x2c8   :  { %310 = vrot.lane.b32.xlu1 %v7507_v46, %s9219_s23 }
 0x2cb   :  { %308 = vrot.lane.b32.xlu0 %v7503_v44, %s9219_s23  ;;  %s9241_s23 = smov 120  }
 0x2d0   :  { %450 = vrot.lane.b32.xlu1 %v7503_v44, %s9211_s1 }
 0x2d3   :  { %456 = vrot.lane.b32.xlu0 %v7507_v46, %s9215_s24 }
 0x2d8   :  { %452 = vrot.lane.b32.xlu1 %v7507_v46, %s9211_s1  ;;  %s9246_s1 = smov 56  }
 0x2db   :  { %579 = vrot.lane.b32.xlu0 %v7507_v46, %s9217_s6 }
 0x2e3   :  { %573 = vrot.lane.b32.xlu0 %v7503_v44, %s9213_s25 }
 0x31a   :  { %v252_v60 = vpop.xlane.xlu1 %251 }
 0x31b   :  { %v256_v63 = vsub.f32 %v247_v52, %v252_v60 }
 0x31d   :  { %v258_v1 = vmul.f32 1.442695, %v256_v63 }
 0x322   :  { %v255_v61 = vpop.xlane.xlu0 %254 }
 0x323   :  { %v257_v62 = vsub.f32 %v248_v57, %v255_v61 }
 0x325   :  { %v260_v0 = vmul.f32 1.442695, %v257_v62 }
 0x327   :  { %7240 = vpow2.f32 %v260_v0 }
 0x328   :  { %7242 = vpow2.f32 %v258_v1 }
 0x32d   :  { %v7241_v2 = vpop.eup %7240 }
 0x32e   :  { %v265_v3 = vsel %vm249_vm10, %v7241_v2, 0.0  ;;  %v7243_v4 = vpop.eup %7242 }
 0x32f   :  { %266 = vadd.xlane.f32.xlu2 %v265_v3  ;;  %v262_v6 = vsel %vm249_vm10, %v7243_v4, 0.0 }
 0x332   :  { %v315_v9 = vpop.permute.xlu1 %314 }
 0x335   :  { %v7184_v5 = vpop.permute.xlu0 %7183 }
 0x336   :  { %v7185_v7 = vunpack.i.l.bf16 %v7184_v5  ;;  %v7186_v8 = vunpack.i.h.bf16 %v7184_v5 }
 0x337   :  { %263 = vadd.xlane.f32.xlu2 %v262_v6 }
 0x338   :  { %298 = vmatpush.msrb.mxu0 %v7185_v7  ;;  %7158 = vmatpush.msra.mxu3 %v7185_v7 }
 0x33a   :  { %299 = vmatpush.msrb.mxu0 %v7186_v8  ;;  %7159 = vmatpush.msra.mxu3 %v7186_v8  ;;  %v311_v22 = vpop.permute.xlu1 %310 }
 0x33c   :  { %5146 = vmatpush.xpose.msk.msrb.mxu3 %vm213_vm9, %v315_v9  ;;  %443 = vmatpush.bf16.msra.mxu0 %v434_v11 }
 0x33d   :  { %v309_v12 = vpop.permute.xlu0 %308 }
 0x342   :  { %v451_v25 = vpop.permute.xlu1 %450 }
 0x345   :  { %v457_v15 = vpop.permute.xlu0 %456 }
 0x34a   :  { %v453_v26 = vpop.permute.xlu1 %452 }
 0x34d   :  { %v580_v21 = vpop.permute.xlu0 %579 }
 0x34f   :  { %312 = vrot.lane.b32.xlu2 %v7503_v44, %s9221_s3  ;;  %s9239_s3 = smov 64  }
 0x355   :  { %v574_v36 = vpop.permute.xlu0 %573 }
 0x357   :  { %454 = vrot.lane.b32.xlu2 %v7503_v44, %s9215_s24  ;;  %s9242_s24 = smov 72  }
 0x35f   :  { %577 = vrot.lane.b32.xlu2 %v7503_v44, %s9217_s6 }
 0x367   :  { %575 = vrot.lane.b32.xlu2 %v7507_v46, %s9213_s25  ;;  %s9238_s25 = smov 96  }
 0x3a2   :  { %v267_v13 = vpop.xlane.xlu2 %266 }
 0x3a3   :  { %7244 = vrcp.f32 %v267_v13 }
 0x3a9   :  { %v7245_v14 = vpop.eup %7244 }
 0x3aa   :  { %v264_v16 = vpop.xlane.xlu2 %263  ;;  %v271_v17 = vmul.f32 %v7245_v14, %v7241_v2 }
 0x3ab   :  { %7246 = vrcp.f32 %v264_v16 }
 0x3ac   :  { %5145 = vmatmul.msk.f32.vlgmr.msra.gmra.mxu3 %vm249_vm10, %v271_v17 }
 0x3b1   :  { %v7247_v18 = vpop.eup %7246 }
 0x3b2   :  { %v313_v19 = vpop.permute.xlu2 %312  ;;  %v270_v20 = vmul.f32 %v7247_v18, %v7243_v4 }
 0x3b3   :  { %5147 = vmatpush.xpose.msk.msrb.mxu3 %vm213_vm9, %v313_v19 }
 0x3b4   :  { %5144 = vmatmul.msk.f32.vlgmr.msrb.gmra.mxu0 %vm249_vm10, %v270_v20 }
 0x3b5   :  { %5161 = vmatpush.xpose.msk.msrb.mxu0 %vm213_vm9, %v580_v21 }
 0x3b6   :  { %5148 = vmatmul.msk.f32.vlgmr.msrb.gmra.mxu3 %vm213_vm9, %v309_v12 }
 0x3b7   :  { %5154 = vmatpush.xpose.msk.msra.mxu3 %vm213_vm9, %v457_v15 }
 0x3ba   :  { %v455_v23 = vpop.permute.xlu2 %454 }
 0x3bb   :  { %5155 = vmatpush.xpose.msk.msra.mxu3 %vm213_vm9, %v455_v23 }
 0x3be   :  { %5149 = vmatmul.msk.f32.gmra.mxu3 %vm213_vm9, %v311_v22 }
 0x3c2   :  { %v578_v24 = vpop.permute.xlu2 %577 }
 0x3c3   :  { %5162 = vmatpush.xpose.msk.msrb.mxu0 %vm213_vm9, %v578_v24 }
 0x3c6   :  { %5156 = vmatmul.msk.f32.vlgmr.msra.gmra.mxu3 %vm213_vm9, %v451_v25 }
 0x3ca   :  { %v576_v43 = vpop.permute.xlu2 %575 }
 0x3ce   :  { %5157 = vmatmul.msk.f32.gmra.mxu3 %vm213_vm9, %v453_v26 }
 0x42f   :  { %v304_v27 = vpop.f32.mrf.mxu3 }
 0x431   :  { %v301_v28 = vpop.f32.mrf.mxu0 }
 0x432   :  { %v307_v29 = vpack.c.bf16 %v304_v27, %v301_v28 }
 0x434   :  { %5153 = vmatmul.msk.bf16.vlgmr.msra.gmra.mxu0 %vm213_vm9, %v307_v29 }
 0x439   :  { %v341_v30 = vpop.f32.mrf.mxu3 }
 0x43a   :  { %v347_v31 = vmul.f32 0.35355338, %v341_v30 }
 0x43c   :  { %v349_v32 = vadd.f32 %v347_v31, %v7520_v50 }
 0x43e   :  { %v351_v33 = vsel %vm249_vm10, %v349_v32, -inf }
 0x43f   :  { %352 = vmax.xlane.f32.xlu1 %v351_v33 }
 0x441   :  { %v344_v34 = vpop.f32.mrf.mxu3 }
 0x442   :  { %v348_v35 = vmul.f32 0.35355338, %v344_v34 }
 0x444   :  { %5163 = vmatmul.msk.f32.vlgmr.msrb.gmra.mxu0 %vm213_vm9, %v574_v36  ;;  %v350_v37 = vadd.f32 %v348_v35, %v7527_v55 }
 0x446   :  { %v354_v38 = vsel %vm249_vm10, %v350_v37, -inf }
 0x447   :  { %355 = vmax.xlane.f32.xlu0 %v354_v38 }
 0x449   :  { %v483_v41 = vpop.f32.mrf.mxu3 }
 0x44a   :  { %v489_v42 = vmul.f32 0.35355338, %v483_v41 }
 0x44c   :  { %5164 = vmatmul.msk.f32.gmra.mxu0 %vm213_vm9, %v576_v43  ;;  %v491_v44 = vadd.f32 %v489_v42, %v7520_v50 }
 0x44e   :  { %v493_v45 = vsel %vm249_vm10, %v491_v44, -inf }
 0x44f   :  { %494 = vmax.xlane.f32.xlu2 %v493_v45 }
 0x451   :  { %v486_v46 = vpop.f32.mrf.mxu3 }
 0x452   :  { %v490_v47 = vmul.f32 0.35355338, %v486_v46 }
 0x454   :  { %v492_v48 = vadd.f32 %v490_v47, %v7527_v55 }
 0x456   :  { %v496_v49 = vsel %vm249_vm10, %v492_v48, -inf }
 0x457   :  { %497 = vmax.xlane.f32.xlu0 %v496_v49  ;;  %v165_v49 = vld [vmem:[%s9186_s7 + $0x4] sm:$0xf] }
 0x46b   :  { %7188 = vrot.lane.b32.xlu0 %v7535_v59, %s9210_s2 }
 0x473   :  { %7198 = vrot.lane.b32.xlu0 %v7535_v59, %s9208_s30 }
 0x4b1   :  { %v7594_v51 = vpop.f32.mrf.mxu0 }
 0x4b2   :  { %v353_v53 = vpop.xlane.xlu1 %352 }
 0x4b3   :  { %v357_v54 = vsub.f32 %v349_v32, %v353_v53  ;;  %v414_v53 = vsel %vm412_vm11, %v165_v49, 0 }
 0x4b4   :  { %423 = vmatpush.bf16.msrb.mxu2 %v414_v53 }
 0x4b5   :  { %v359_v56 = vmul.f32 1.442695, %v357_v54 }
 0x4b7   :  { %7248 = vpow2.f32 %v359_v56 }
 0x4b9   :  { %v7596_v52 = vpop.f32.mrf.mxu0 }
 0x4ba   :  { %v356_v57 = vpop.xlane.xlu0 %355 }
 0x4bb   :  { %v358_v62 = vsub.f32 %v350_v37, %v356_v57 }
 0x4bd   :  { %v361_v2 = vmul.f32 1.442695, %v358_v62  ;;  %v7249_v7 = vpop.eup %7248 }
 0x4be   :  { %v363_v10 = vsel %vm249_vm10, %v7249_v7, 0.0 }
 0x4bf   :  { %7250 = vpow2.f32 %v361_v2 }
 0x4c1   :  { %v606_v58 = vpop.f32.mrf.mxu0 }
 0x4c2   :  { %v612_v60 = vmul.f32 0.35355338, %v606_v58  ;;  %v495_v61 = vpop.xlane.xlu2 %494 }
 0x4c3   :  { %v499_v0 = vsub.f32 %v491_v44, %v495_v61 }
 0x4c4   :  { %v614_v63 = vadd.f32 %v612_v60, %v7520_v50 }
 0x4c5   :  { %v501_v3 = vmul.f32 1.442695, %v499_v0  ;;  %v7251_v12 = vpop.eup %7250 }
 0x4c6   :  { %v616_v1 = vsel %vm249_vm10, %v614_v63, -inf  ;;  %v366_v15 = vsel %vm249_vm10, %v7251_v12, 0.0 }
 0x4c7   :  { %617 = vmax.xlane.f32.xlu1 %v616_v1  ;;  %7252 = vpow2.f32 %v501_v3 }
 0x4c9   :  { %v609_v4 = vpop.f32.mrf.mxu0 }
 0x4ca   :  { %v613_v5 = vmul.f32 0.35355338, %v609_v4  ;;  %v498_v6 = vpop.xlane.xlu0 %497 }
 0x4cb   :  { %v500_v9 = vsub.f32 %v492_v48, %v498_v6  ;;  %v167_v6 = vld [vmem:[%s9186_s7 + $0xc] sm:$0xf] }
 0x4cc   :  { %v615_v8 = vadd.f32 %v613_v5, %v7527_v55 }
 0x4cd   :  { %v503_v11 = vmul.f32 1.442695, %v500_v9  ;;  %v7253_v13 = vpop.eup %7252 }
 0x4ce   :  { %v619_v50 = vsel %vm249_vm10, %v615_v8, -inf  ;;  %v505_v14 = vsel %vm249_vm10, %v7253_v13, 0.0 }
 0x4cf   :  { %364 = vadd.xlane.f32.xlu1 %v363_v10  ;;  %620 = vmax.xlane.f32.xlu2 %v619_v50  ;;  %7254 = vpow2.f32 %v503_v11 }
 0x4d5   :  { %v7255_v16 = vpop.eup %7254 }
 0x4d6   :  { %v508_v17 = vsel %vm249_vm10, %v7255_v16, 0.0 }
 0x4d7   :  { %506 = vadd.xlane.f32.xlu1 %v505_v14  ;;  %367 = vadd.xlane.f32.xlu2 %v366_v15  ;;  %v7224_v15 = vld [vmem:[%s9187_s8] ss:$0 sm:$0xff] }
 0x4dd   :  { %v7189_v55 = vpop.permute.xlu0 %7188 }
 0x4de   :  { %v7190_v18 = vunpack.i.l.bf16 %v7189_v55  ;;  %v7191_v19 = vunpack.i.h.bf16 %v7189_v55 }
 0x4df   :  { %509 = vadd.xlane.f32.xlu2 %v508_v17 }
 0x4e0   :  { %399 = vmatpush.msrb.mxu1 %v7190_v18 }
 0x4e2   :  { %400 = vmatpush.msrb.mxu1 %v7191_v19 }
 0x4e5   :  { %v7199_v20 = vpop.permute.xlu0 %7198 }
 0x4e6   :  { %v7200_v21 = vunpack.i.l.bf16 %v7199_v20  ;;  %v7201_v22 = vunpack.i.h.bf16 %v7199_v20 }
 0x4e8   :  { %664 = vmatpush.msrb.mxu3 %v7200_v21 }
 0x4ea   :  { %665 = vmatpush.msrb.mxu3 %v7201_v22 }
 0x4f0   :  { %7193 = vrot.lane.b32.xlu1 %v7535_v59, %s9209_s5 }
 0x53a   :  { %v618_v23 = vpop.xlane.xlu1 %617 }
 0x53b   :  { %v622_v24 = vsub.f32 %v614_v63, %v618_v23  ;;  %v166_v63 = vld [vmem:[%s9186_s7 + $0x8] sm:$0xf] }
 0x53c   :  { %v555_v0 = vsel %vm412_vm11, %v166_v63, 0  ;;  %v6834_v63 = vld [vmem:[%s9190_s11 + $0x4] sm:$0xf] }
 0x53d   :  { %v624_v25 = vmul.f32 1.442695, %v622_v24  ;;  %564 = vmatpush.bf16.msra.mxu2 %v555_v0 }
 0x53f   :  { %7256 = vpow2.f32 %v624_v25 }
 0x542   :  { %v365_v26 = vpop.xlane.xlu1 %364  ;;  %v621_v27 = vpop.xlane.xlu2 %620 }
 0x543   :  { %7258 = vrcp.f32 %v365_v26  ;;  %v623_v28 = vsub.f32 %v615_v8, %v621_v27  ;;  %v7343_v27 = vmov 32.0  }
 0x545   :  { %v7257_v29 = vpop.eup %7256  ;;  %v626_v30 = vmul.f32 1.442695, %v623_v28 }
 0x546   :  { %v628_v31 = vsel %vm249_vm10, %v7257_v29, 0.0 }
 0x547   :  { %7260 = vpow2.f32 %v626_v30  ;;  %629 = vadd.xlane.f32.xlu2 %v628_v31 }
 0x549   :  { %v7259_v32 = vpop.eup %7258 }
 0x54a   :  { %v368_v33 = vpop.xlane.xlu2 %367  ;;  %v371_v34 = vmul.f32 %v7259_v32, %v7249_v7  ;;  %v507_v38 = vpop.xlane.xlu1 %506  ;;  %v678_v7 = vsel %vm412_vm11, %v167_v6, 0  ;;  %v6835_v6 = vld [vmem:[%s9190_s11 + $0xc] sm:$0xf] }
 0x54b   :  { %7262 = vrcp.f32 %v368_v33 }
 0x54c   :  { %5150 = vmatmul.msk.f32.vlgmr.msrb.gmra.mxu1 %vm249_vm10, %v371_v34  ;;  %7264 = vrcp.f32 %v507_v38 }
 0x54d   :  { %v7261_v59 = vpop.eup %7260 }
 0x54e   :  { %v631_v35 = vsel %vm249_vm10, %v7261_v59, 0.0 }
 0x54f   :  { %632 = vadd.xlane.f32.xlu2 %v631_v35 }
 0x551   :  { %v7263_v36 = vpop.eup %7262 }
 0x552   :  { %v372_v37 = vmul.f32 %v7263_v36, %v7251_v12  ;;  %v510_v41 = vpop.xlane.xlu2 %509  ;;  %v7265_v43 = vpop.eup %7264 }
 0x553   :  { %7266 = vrcp.f32 %v510_v41  ;;  %v513_v46 = vmul.f32 %v7265_v43, %v7253_v13  ;;  %v6858_v43 = vld [vmem:[%s9190_s11 + $0xbc] sm:$0xf0] }
 0x554   :  { %5151 = vmatmul.msk.f32.gmra.mxu1 %vm249_vm10, %v372_v37 }
 0x559   :  { %v7267_v47 = vpop.eup %7266 }
 0x55a   :  { %v514_v48 = vmul.f32 %v7267_v47, %v7255_v16  ;;  %v5242_v47 = vld [vmem:[%s9190_s11 + $0x88] sm:$0xf] }
 0x562   :  { %v7194_v42 = vpop.permute.xlu1 %7193 }
 0x563   :  { %v7195_v44 = vunpack.i.l.bf16 %v7194_v42  ;;  %v7196_v45 = vunpack.i.h.bf16 %v7194_v42  ;;  %v5234_v42 = vld [vmem:[%s9190_s11 + $0x80] sm:$0xf] }
 0x565   :  { %541 = vmatpush.msra.mxu1 %v7195_v44  ;;  %v6850_v44 = vld [vmem:[%s9190_s11 + $0x84] sm:$0xf] }
 0x567   :  { %542 = vmatpush.msra.mxu1 %v7196_v45  ;;  %v5235_v45 = vor.u32 %v6858_v43, %v5234_v42 }
 0x568   :  { %5158 = vmatmul.msk.f32.vlgmr.msra.gmra.mxu1 %vm249_vm10, %v513_v46  ;;  %v5236_v46 = vld [vmem:[%s9190_s11 + $0xc0] sm:$0xf0] }
 0x569   :  { %687 = vmatpush.bf16.msrb.mxu1 %v678_v7  ;;  %v5239_v53 = vor.u32 %v6850_v44, %v5236_v46  ;;  %v5180_v7 = vld [vmem:[%s9190_s11 + $0x48] sm:$0xf0] }
 0x56b   :  { %1019 = vmatpush.bf16.msra.mxu0 %v5239_v53 }
 0x570   :  { %5159 = vmatmul.msk.f32.gmra.mxu1 %vm249_vm10, %v514_v48  ;;  %v6859_v48 = vld [vmem:[%s9190_s11 + $0xc4] sm:$0xf0] }
 0x5ba   :  { %v630_v54 = vpop.xlane.xlu2 %629 }
 0x5bb   :  { %7268 = vrcp.f32 %v630_v54  ;;  %v5243_v54 = vor.u32 %v6859_v48, %v5242_v47  ;;  %v7225_v47 = vld [vmem:[%s9188_s9] ss:$0 sm:$0xff] }
 0x5bd   :  { %1033 = vmatpush.bf16.msra.mxu3 %v5243_v54  ;;  %v7226_v54 = vld [vmem:[%s9189_s10] ss:$0 sm:$0xff] }
 0x5c1   :  { %v7269_v56 = vpop.eup %7268 }
 0x5c2   :  { %v636_v57 = vmul.f32 %v7269_v56, %v7257_v29  ;;  %v633_v58 = vpop.xlane.xlu2 %632  ;;  %v6851_v56 = vld [vmem:[%s9190_s11 + $0x8c] sm:$0xf] }
 0x5c3   :  { %7270 = vrcp.f32 %v633_v58 }
 0x5c4   :  { %5165 = vmatmul.msk.f32.vlgmr.msrb.gmra.mxu3 %vm249_vm10, %v636_v57  ;;  %7272 = vrcp.f32 %v7343_v27  ;;  %v5244_v57 = vld [vmem:[%s9190_s11 + $0xc8] sm:$0xf0] }
 0x5c9   :  { %v7271_v60 = vpop.eup %7270  ;;  %v402_v61 = vpop.f32.mrf.mxu1 }
 0x5ca   :  { %v637_v62 = vmul.f32 %v7271_v60, %v7261_v59  ;;  %v7273_v28 = vpop.eup %7272  ;;  %v5247_v60 = vor.u32 %v6851_v56, %v5244_v57 }
 0x5cb   :  { %v713_v29 = vmul.f32 32.0, %v7273_v28  ;;  %vm717_vm12 = vweird.f32 %v7273_v28 }
 0x5cc   :  { %5166 = vmatmul.msk.f32.gmra.mxu3 %vm249_vm10, %v637_v62  ;;  %v6842_v62 = vld [vmem:[%s9190_s11 + $0x3c] sm:$0xf0]  ;;  %1047 = vmatpush.bf16.msra.mxu1 %v5247_v60 }
 0x5cd   :  { %v714_v30 = vsub.f32 1.0, %v713_v29  ;;  %v5194_v29 = vld [vmem:[%s9190_s11 + $0x18] sm:$0xf]  ;;  %v5266_v60 = vld [vmem:[%s9190_s11 + $0xa0] sm:$0xf] }
 0x5d1   :  { %v405_v1 = vpop.f32.mrf.mxu1 }
 0x5d2   :  { %v408_v2 = vpack.c.bf16 %v405_v1, %v402_v61  ;;  %v5170_v61 = vld [vmem:[%s9190_s11] sm:$0xf] }
 0x5d3   :  { %v5171_v1 = vor.u32 %v6842_v62, %v5170_v61  ;;  %v6854_v61 = vld [vmem:[%s9190_s11 + $0xa4] sm:$0xf] }
 0x5d4   :  { %5152 = vmatmul.msk.bf16.vlgmr.msrb.gmra.mxu2 %vm213_vm9, %v408_v2  ;;  %v5172_v2 = vld [vmem:[%s9190_s11 + $0x40] sm:$0xf0] }
 0x5d5   :  { %1005 = vmatpush.bf16.msrb.mxu2 %v5235_v45  ;;  %v5268_v62 = vld [vmem:[%s9190_s11 + $0xe0] sm:$0xf0] }
 0x5d9   :  { %1006 = vmatpush.bf16.msrb.mxu2 %v5171_v1  ;;  %v6863_v1 = vld [vmem:[%s9190_s11 + $0xe4] sm:$0xf0] }
 0x5e5   :  { %v544_v3 = vpop.f32.mrf.mxu1 }
 0x5ed   :  { %v547_v4 = vpop.f32.mrf.mxu1 }
 0x5ee   :  { %v550_v5 = vpack.c.bf16 %v547_v4, %v544_v3  ;;  %v5178_v3 = vld [vmem:[%s9190_s11 + $0x8] sm:$0xf]  ;;  %v5175_v4 = vor.u32 %v6834_v63, %v5172_v2  ;;  %v6855_v2 = vld [vmem:[%s9190_s11 + $0xac] sm:$0xf] }
 0x5f0   :  { %5160 = vmatmul.msk.bf16.vlgmr.msra.gmra.mxu2 %vm213_vm9, %v550_v5  ;;  %v6843_v5 = vld [vmem:[%s9190_s11 + $0x44] sm:$0xf0]  ;;  %1020 = vmatpush.bf16.msra.mxu0 %v5175_v4 }
 0x647   :  { %v667_v8 = vpop.f32.mrf.mxu3 }
 0x64f   :  { %v670_v9 = vpop.f32.mrf.mxu3 }
 0x650   :  { %v673_v10 = vpack.c.bf16 %v670_v9, %v667_v8  ;;  %v5179_v8 = vor.u32 %v6843_v5, %v5178_v3  ;;  %v5183_v9 = vor.u32 %v6835_v6, %v5180_v7  ;;  %v5276_v3 = vld [vmem:[%s9190_s11 + $0xe8] sm:$0xf0]  ;;  %v5271_v6 = vor.u32 %v6854_v61, %v5268_v62  ;;  %v5202_v7 = vld [vmem:[%s9190_s11 + $0x20] sm:$0xf] }
 0x651   :  { %v6870_v61 = vld [vmem:[%s9191_s13 + $0x20] sm:$0xff] }
 0x652   :  { %5167 = vmatmul.msk.bf16.vlgmr.msrb.gmra.mxu1 %vm213_vm9, %v673_v10  ;;  %1034 = vmatpush.bf16.msra.mxu3 %v5179_v8  ;;  %v6846_v8 = vld [vmem:[%s9190_s11 + $0x5c] sm:$0xf0] }
 0x653   :  { %1048 = vmatpush.bf16.msra.mxu1 %v5183_v9  ;;  %v6886_v62 = vld [vmem:[%s9191_s13 + $0xa0] sm:$0xff] }
 0x657   :  { %v425_v50 = vpop.f32.mrf.mxu2 }
 0x658   :  { %v446_v13 = vadd.f32 %v7594_v51, %v425_v50  ;;  %v5250_v50 = vld [vmem:[%s9190_s11 + $0x90] sm:$0xf] }
 0x65f   :  { %v427_v11 = vpop.f32.mrf.mxu2 }
 0x660   :  { %v448_v19 = vadd.f32 %v7596_v52, %v427_v11  ;;  %v715_v52 = vmul.f32 %v7273_v28, %v714_v30  ;;  %v6860_v11 = vld [vmem:[%s9190_s11 + $0xcc] sm:$0xf0]  ;;  %v6845_v30 = vld [vmem:[%s9190_s11 + $0x54] sm:$0xf0] }
 0x662   :  { %v716_v31 = vadd.f32 %v7273_v28, %v715_v52 }
 0x673   :  { %v566_v12 = vpop.f32.mrf.mxu2 }
 0x674   :  { %v571_v14 = vadd.f32 %v566_v12, %v446_v13  ;;  %v6852_v12 = vld [vmem:[%s9190_s11 + $0x94] sm:$0xf] }
 0x67b   :  { %v568_v18 = vpop.f32.mrf.mxu2 }
 0x67c   :  { %v572_v21 = vadd.f32 %v568_v18, %v448_v19  ;;  %v6853_v19 = vld [vmem:[%s9190_s11 + $0x9c] sm:$0xf] }
 0x6cf   :  { %v689_v16 = vpop.f32.mrf.mxu1 }
 0x6d0   :  { %v694_v55 = vadd.f32 %v689_v16, %v571_v14  ;;  %v5251_v14 = vor.u32 %v6860_v11, %v5250_v50  ;;  %v5258_v16 = vld [vmem:[%s9190_s11 + $0x98] sm:$0xf]  ;;  %v6838_v50 = vld [vmem:[%s9190_s11 + $0x24] sm:$0xf] }
 0x6d1   :  { %v5204_v11 = vld [vmem:[%s9190_s11 + $0x60] sm:$0xf0] }
 0x6d2   :  { %v700_v17 = vadd.f32 %v7224_v15, %v694_v55  ;;  %v6861_v55 = vld [vmem:[%s9190_s11 + $0xd4] sm:$0xf0]  ;;  %1061 = vmatpush.bf16.msra.mxu2 %v5251_v14  ;;  %v6839_v14 = vld [vmem:[%s9190_s11 + $0x2c] sm:$0xf] }
 0x6d3   :  { %v5259_v18 = vor.u32 %v6861_v55, %v5258_v16  ;;  %v5203_v16 = vor.u32 %v6846_v8, %v5202_v7  ;;  %v5207_v55 = vor.u32 %v6838_v50, %v5204_v11  ;;  %v6868_v7 = vld [vmem:[%s9191_s13 + $0x10] sm:$0xff]  ;;  %v6875_v8 = vld [vmem:[%s9191_s13 + $0x48] sm:$0xff]  ;;  %v6874_v11 = vld [vmem:[%s9191_s13 + $0x40] sm:$0xff] }
 0x6d4   :  { %v702_v20 = vadd.f32 %v700_v17, %v7493_v39  ;;  %v7640_v39 = vsel %vm717_vm12, %v7273_v28, %v716_v31  ;;  %v5188_v28 = vld [vmem:[%s9190_s11 + $0x50] sm:$0xf0]  ;;  %v5195_v31 = vor.u32 %v6845_v30, %v5194_v29  ;;  %v6848_v29 = vld [vmem:[%s9190_s11 + $0x6c] sm:$0xf0]  ;;  %v6883_v50 = vld [vmem:[%s9191_s13 + $0x88] sm:$0xff] }
 0x6d5   :  { %1089 = vmatpush.bf16.msrb.mxu3 %v5259_v18 }
 0x6d6   :  { %v706_v22 = vsel %vm189_vm8, %v702_v20, 0.0 }
 0x6d7   :  { %707 = vadd.xlane.f32.xlu0 %v706_v22  ;;  %v691_v23 = vpop.f32.mrf.mxu1 }
 0x6d8   :  { %v695_v24 = vadd.f32 %v691_v23, %v572_v21  ;;  %v5186_v21 = vld [vmem:[%s9190_s11 + $0x10] sm:$0xf] }
 0x6d9   :  { %1090 = vmatpush.bf16.msrb.mxu3 %v5195_v31  ;;  %v6840_v31 = vld [vmem:[%s9190_s11 + $0x34] sm:$0xf] }
 0x6da   :  { %v701_v51 = vadd.f32 %v7224_v15, %v695_v24  ;;  %v5252_v15 = vld [vmem:[%s9190_s11 + $0xd0] sm:$0xf0] }
 0x6db   :  { %v5255_v17 = vor.u32 %v6852_v12, %v5252_v15  ;;  %v5210_v12 = vld [vmem:[%s9190_s11 + $0x28] sm:$0xf]  ;;  %v5212_v15 = vld [vmem:[%s9190_s11 + $0x68] sm:$0xf0] }
 0x6dc   :  { %v703_v25 = vadd.f32 %v701_v51, %v7495_v40  ;;  %v6844_v51 = vld [vmem:[%s9190_s11 + $0x4c] sm:$0xf0]  ;;  %v5215_v18 = vor.u32 %v6839_v14, %v5212_v15  ;;  %v6929_v14 = vld [vmem:[%s9191_s13 + $0x1f8] sm:$0xff]  ;;  %v6866_v15 = vld [vmem:[%s9191_s13] sm:$0xff] }
 0x6dd   :  { %1075 = vmatpush.bf16.msrb.mxu0 %v5255_v17  ;;  %v5187_v27 = vor.u32 %v6844_v51, %v5186_v21  ;;  %v6856_v21 = vld [vmem:[%s9190_s11 + $0xb4] sm:$0xf]  ;;  %v6857_v51 = vld [vmem:[%s9190_s11 + $0xbc] sm:$0xf] }
 0x6de   :  { %v709_v26 = vsel %vm189_vm8, %v703_v25, 0.0 }
 0x6df   :  { %710 = vadd.xlane.f32.xlu2 %v709_v26  ;;  %1062 = vmatpush.bf16.msra.mxu2 %v5187_v27 }
 0x74a   :  { %v708_v32 = vpop.xlane.xlu0 %707 }
 0x74b   :  { %v719_v33 = vmul.f32 %v7640_v39, %v708_v32  ;;  %v6837_v32 = vld [vmem:[%s9190_s11 + $0x1c] sm:$0xf] }
 0x74d   :  { %v7643_v34 = vsub.f32 %v702_v20, %v719_v33  ;;  %v5260_v20 = vld [vmem:[%s9190_s11 + $0xd8] sm:$0xf0] }
 0x74e   :  { %v5263_v24 = vor.u32 %v6853_v19, %v5260_v20  ;;  %v5196_v33 = vld [vmem:[%s9190_s11 + $0x58] sm:$0xf0]  ;;  %v5282_v19 = vld [vmem:[%s9190_s11 + $0xb0] sm:$0xf] }
 0x74f   :  { %v723_v40 = vmul.f32 %v7643_v34, %v7643_v34  ;;  %v6864_v20 = vld [vmem:[%s9190_s11 + $0xec] sm:$0xf0] }
 0x750   :  { %1103 = vmatpush.bf16.msrb.mxu1 %v5263_v24  ;;  %v6865_v24 = vld [vmem:[%s9190_s11 + $0xf4] sm:$0xf0] }
 0x751   :  { %v725_v59 = vsel %vm189_vm8, %v723_v40, 0.0 }
 0x752   :  { %726 = vadd.xlane.f32.xlu1 %v725_v59  ;;  %v711_v35 = vpop.xlane.xlu2 %710  ;;  %v5199_v59 = vor.u32 %v6837_v32, %v5196_v33  ;;  %v5220_v32 = vld [vmem:[%s9190_s11 + $0x70] sm:$0xf0]  ;;  %v5226_v33 = vld [vmem:[%s9190_s11 + $0x38] sm:$0xf] }
 0x753   :  { %v720_v36 = vmul.f32 %v7640_v39, %v711_v35 }
 0x754   :  { %1104 = vmatpush.bf16.msrb.mxu1 %v5199_v59  ;;  %v6841_v59 = vld [vmem:[%s9190_s11 + $0x3c] sm:$0xf] }
 0x755   :  { %v7649_v37 = vsub.f32 %v703_v25, %v720_v36  ;;  %v6836_v25 = vld [vmem:[%s9190_s11 + $0x14] sm:$0xf] }
 0x756   :  { %v5191_v52 = vor.u32 %v6836_v25, %v5188_v28  ;;  %v5292_v25 = vld [vmem:[%s9190_s11 + $0xf8] sm:$0xf0]  ;;  %v5218_v28 = vld [vmem:[%s9190_s11 + $0x30] sm:$0xf] }
 0x757   :  { %v724_v38 = vmul.f32 %v7649_v37, %v7649_v37 }
 0x758   :  { %1076 = vmatpush.bf16.msrb.mxu0 %v5191_v52  ;;  %v5295_v52 = vor.u32 %v6857_v51, %v5292_v25  ;;  %v6926_v51 = vld [vmem:[%s9191_s13 + $0x1e0] sm:$0xff]  ;;  %v6903_v25 = vld [vmem:[%s9191_s13 + $0x128] sm:$0xff] }
 0x759   :  { %v728_v41 = vsel %vm189_vm8, %v724_v38, 0.0 }
 0x75a   :  { %729 = vadd.xlane.f32.xlu2 %v728_v41 }
 0x7c5   :  { %v727_v49 = vpop.xlane.xlu1 %726 }
 0x7c6   :  { %v731_v58 = vmul.f32 %v727_v49, %v7640_v39 }
 0x7c8   :  { %v7688_v0 = vadd.f32 1e-05, %v731_v58 }
 0x7ca   :  { %7274 = vrsqrt.f32 %v7688_v0  ;;  %vm741_vm14 = vweird.f32 %v7688_v0 }
 0x7cd   :  { %v730_v10 = vpop.xlane.xlu2 %729 }
 0x7ce   :  { %v732_v13 = vmul.f32 %v730_v10, %v7640_v39  ;;  %v5279_v10 = vor.u32 %v6855_v2, %v5276_v3  ;;  %v6869_v2 = vld [vmem:[%s9191_s13 + $0x18] sm:$0xff] }
 0x7cf   :  { %v6885_v3 = vld [vmem:[%s9191_s13 + $0x98] sm:$0xff] }
 0x7d0   :  { %v7275_v22 = vpop.eup %7274  ;;  %v734_v23 = vadd.f32 1e-05, %v732_v13  ;;  %v6847_v13 = vld [vmem:[%s9190_s11 + $0x64] sm:$0xf0] }
 0x7d1   :  { %v736_v26 = vmul.f32 %v7275_v22, %v7688_v0  ;;  %vm742_vm13 = vweird.f32 %v7275_v22  ;;  %v5211_v17 = vor.u32 %v6847_v13, %v5210_v12  ;;  %v6890_v12 = vld [vmem:[%s9191_s13 + $0xc0] sm:$0xff]  ;;  %v6913_v13 = vld [vmem:[%s9191_s13 + $0x178] sm:$0xff] }
 0x7d2   :  { %7276 = vrsqrt.f32 %v734_v23  ;;  %vm743_vm15 = vmor %vm741_vm14, %vm742_vm13  ;;  %vm751_vm1 = vweird.f32 %v734_v23 }
 0x7d3   :  { %v737_v40 = vmul.f32 %v7275_v22, %v736_v26  ;;  %v5283_v26 = vor.u32 %v6864_v20, %v5282_v19  ;;  %v6928_v19 = vld [vmem:[%s9191_s13 + $0x1f0] sm:$0xff] }
 0x7d4   :  { %v6904_v20 = vld [vmem:[%s9191_s13 + $0x130] sm:$0xff] }
 0x7d5   :  { %v738_v35 = vmul.f32 0.5, %v737_v40  ;;  %v6849_v40 = vld [vmem:[%s9190_s11 + $0x74] sm:$0xf0] }
 0x7d7   :  { %v739_v36 = vsub.f32 1.5, %v738_v35  ;;  %v5228_v35 = vld [vmem:[%s9190_s11 + $0x78] sm:$0xf0] }
 0x7d8   :  { %v7277_v38 = vpop.eup %7276 }
 0x7d9   :  { %v740_v41 = vmul.f32 %v7275_v22, %v739_v36  ;;  %v746_v42 = vmul.f32 %v7277_v38, %v734_v23  ;;  %vm752_vm0 = vweird.f32 %v7277_v38  ;;  %v5290_v23 = vld [vmem:[%s9190_s11 + $0xb8] sm:$0xf]  ;;  %v5219_v36 = vor.u32 %v6848_v29, %v5218_v28  ;;  %v6902_v29 = vld [vmem:[%s9191_s13 + $0x120] sm:$0xff] }
 0x7da   :  { %vm753_vm2 = vmor %vm751_vm1, %vm752_vm0  ;;  %v5291_v30 = vor.u32 %v6865_v24, %v5290_v23  ;;  %v6927_v23 = vld [vmem:[%s9191_s13 + $0x1e8] sm:$0xff]  ;;  %v6910_v24 = vld [vmem:[%s9191_s13 + $0x160] sm:$0xff] }
 0x7db   :  { %v747_v43 = vmul.f32 %v7277_v38, %v746_v42  ;;  %v744_v44 = vsel %vm743_vm15, %v7275_v22, %v740_v41  ;;  %v5284_v22 = vld [vmem:[%s9190_s11 + $0xf0] sm:$0xf0]  ;;  %v5227_v41 = vor.u32 %v6849_v40, %v5226_v33  ;;  %v5231_v42 = vor.u32 %v6841_v59, %v5228_v35  ;;  %v6925_v28 = vld [vmem:[%s9191_s13 + $0x1d8] sm:$0xff]  ;;  %v6907_v40 = vld [vmem:[%s9191_s13 + $0x148] sm:$0xff] }
 0x7dc   :  { %v755_v48 = vmul.f32 %v744_v44, %v7643_v34  ;;  %v6862_v34 = vld [vmem:[%s9190_s11 + $0xdc] sm:$0xf0]  ;;  %v5287_v27 = vor.u32 %v6856_v21, %v5284_v22  ;;  %v6897_v44 = vld [vmem:[%s9191_s13 + $0xf8] sm:$0xff]  ;;  %v6920_v21 = vld [vmem:[%s9191_s13 + $0x1b0] sm:$0xff] }
 0x7dd   :  { %v748_v45 = vmul.f32 0.5, %v747_v43  ;;  %v5267_v5 = vor.u32 %v6862_v34, %v5266_v60  ;;  %v6881_v43 = vld [vmem:[%s9191_s13 + $0x78] sm:$0xff]  ;;  %v6878_v60 = vld [vmem:[%s9191_s13 + $0x60] sm:$0xff]  ;;  %v6911_v22 = vld [vmem:[%s9191_s13 + $0x168] sm:$0xff] }
 0x7de   :  { %v760_v56 = vmul.f32 %v7225_v47, %v755_v48  ;;  %v6896_v48 = vld [vmem:[%s9191_s13 + $0xf0] sm:$0xff]  ;;  %v6894_v34 = vld [vmem:[%s9191_s13 + $0xe0] sm:$0xff]  ;;  %v6917_v33 = vld [vmem:[%s9191_s13 + $0x198] sm:$0xff] }
 0x7df   :  { %v749_v46 = vsub.f32 1.5, %v748_v45  ;;  %v6873_v45 = vld [vmem:[%s9191_s13 + $0x38] sm:$0xff]  ;;  %v6923_v59 = vld [vmem:[%s9191_s13 + $0x1c8] sm:$0xff]  ;;  %v6900_v35 = vld [vmem:[%s9191_s13 + $0x110] sm:$0xff] }
 0x7e0   :  { %v7780_v63 = vadd.f32 %v7226_v54, %v760_v56  ;;  %v6895_v56 = vld [vmem:[%s9191_s13 + $0xe8] sm:$0xff] }
 0x7e1   :  { %v750_v49 = vmul.f32 %v7277_v38, %v749_v46  ;;  %v6889_v46 = vld [vmem:[%s9191_s13 + $0xb8] sm:$0xff] }
 0x7e3   :  { %v754_v53 = vsel %vm753_vm2, %v7277_v38, %v750_v49  ;;  %v5223_v38 = vor.u32 %v6840_v31, %v5220_v32  ;;  %v6872_v49 = vld [vmem:[%s9191_s13 + $0x30] sm:$0xff]  ;;  %v6901_v32 = vld [vmem:[%s9191_s13 + $0x118] sm:$0xff] }
 0x7e4   :  { %v756_v57 = vmul.f32 %v754_v53, %v7649_v37  ;;  %v5274_v37 = vld [vmem:[%s9190_s11 + $0xa8] sm:$0xf]  ;;  %v6888_v53 = vld [vmem:[%s9191_s13 + $0xb0] sm:$0xff] }
 0x7e5   :  { %v5275_v9 = vor.u32 %v6863_v1, %v5274_v37  ;;  %v6877_v37 = vld [vmem:[%s9191_s13 + $0x58] sm:$0xff]  ;;  %v6924_v31 = vld [vmem:[%s9191_s13 + $0x1d0] sm:$0xff] }
 0x7e6   :  { %v761_v58 = vmul.f32 %v7225_v47, %v756_v57  ;;  %v6880_v47 = vld [vmem:[%s9191_s13 + $0x70] sm:$0xff]  ;;  %v6871_v57 = vld [vmem:[%s9191_s13 + $0x28] sm:$0xff]  ;;  %v6893_v1 = vld [vmem:[%s9191_s13 + $0xd8] sm:$0xff] }
 0x7e8   :  { %v7782_v0 = vadd.f32 %v7226_v54, %v761_v58  ;;  %v6879_v54 = vld [vmem:[%s9191_s13 + $0x68] sm:$0xff] }
 0x7e9   :  { %v6887_v58 = vld [vmem:[%s9191_s13 + $0xa8] sm:$0xff] }
 0x7ea   :  { %v7795_v4 = vpack.c.bf16 %v7782_v0, %v7780_v63 }
 0x7ec   :  { %5296 = vmatmul.msk.bf16.vlgmr.msrb.gmra.mxu2 %vm189_vm8, %v7795_v4  ;;  %5297 = vmatmul.msk.bf16.vlgmr.msra.gmra.mxu0 %vm189_vm8, %v7795_v4 }
 0x7ed   :  { %5298 = vmatmul.msk.bf16.vlgmr.msra.gmra.mxu3 %vm189_vm8, %v7795_v4  ;;  %5299 = vmatmul.msk.bf16.vlgmr.msra.gmra.mxu1 %vm189_vm8, %v7795_v4 }
 0x7ee   :  { %1117 = vmatpush.bf16.msrb.mxu2 %v5267_v5  ;;  %1131 = vmatpush.bf16.msra.mxu0 %v5271_v6  ;;  %v6876_v5 = vld [vmem:[%s9191_s13 + $0x50] sm:$0xff] }
 0x7ef   :  { %1145 = vmatpush.bf16.msra.mxu3 %v5275_v9  ;;  %1159 = vmatpush.bf16.msra.mxu1 %v5279_v10  ;;  %v6892_v6 = vld [vmem:[%s9191_s13 + $0xd0] sm:$0xff]  ;;  %v6891_v9 = vld [vmem:[%s9191_s13 + $0xc8] sm:$0xff] }
 0x7f0   :  { %v6867_v10 = vld [vmem:[%s9191_s13 + $0x8] sm:$0xff] }
 0x7f2   :  { %1118 = vmatpush.bf16.msrb.mxu2 %v5203_v16  ;;  %1132 = vmatpush.bf16.msra.mxu0 %v5207_v55  ;;  %v6882_v16 = vld [vmem:[%s9191_s13 + $0x80] sm:$0xff]  ;;  %v6905_v55 = vld [vmem:[%s9191_s13 + $0x138] sm:$0xff] }
 0x7f3   :  { %1146 = vmatpush.bf16.msra.mxu3 %v5211_v17  ;;  %1160 = vmatpush.bf16.msra.mxu1 %v5215_v18  ;;  %v6921_v17 = vld [vmem:[%s9191_s13 + $0x1b8] sm:$0xff]  ;;  %v6912_v18 = vld [vmem:[%s9191_s13 + $0x170] sm:$0xff] }
 0x7fc   :  { %5300 = vmatmul.msk.bf16.vlgmr.msra.gmra.mxu2 %vm189_vm8, %v7795_v4  ;;  %5301 = vmatmul.msk.bf16.vlgmr.msrb.gmra.mxu0 %vm189_vm8, %v7795_v4 }
 0x7fd   :  { %5302 = vmatmul.msk.bf16.vlgmr.msrb.gmra.mxu3 %vm189_vm8, %v7795_v4  ;;  %5303 = vmatmul.msk.bf16.vlgmr.msrb.gmra.mxu1 %vm189_vm8, %v7795_v4 }
 0x7fe   :  { %1173 = vmatpush.bf16.msra.mxu2 %v5283_v26  ;;  %1187 = vmatpush.bf16.msrb.mxu0 %v5287_v27  ;;  %v6919_v26 = vld [vmem:[%s9191_s13 + $0x1a8] sm:$0xff]  ;;  %v6909_v27 = vld [vmem:[%s9191_s13 + $0x158] sm:$0xff] }
 0x7ff   :  { %1201 = vmatpush.bf16.msrb.mxu3 %v5291_v30  ;;  %1215 = vmatpush.bf16.msrb.mxu1 %v5295_v52  ;;  %v6918_v30 = vld [vmem:[%s9191_s13 + $0x1a0] sm:$0xff]  ;;  %v6908_v52 = vld [vmem:[%s9191_s13 + $0x150] sm:$0xff] }
 0x802   :  { %1174 = vmatpush.bf16.msra.mxu2 %v5219_v36  ;;  %1188 = vmatpush.bf16.msrb.mxu0 %v5223_v38  ;;  %v6916_v36 = vld [vmem:[%s9191_s13 + $0x190] sm:$0xff]  ;;  %v6906_v38 = vld [vmem:[%s9191_s13 + $0x140] sm:$0xff] }
 0x803   :  { %1202 = vmatpush.bf16.msrb.mxu3 %v5227_v41  ;;  %1216 = vmatpush.bf16.msrb.mxu1 %v5231_v42  ;;  %v6922_v41 = vld [vmem:[%s9191_s13 + $0x1c0] sm:$0xff]  ;;  %v6899_v42 = vld [vmem:[%s9191_s13 + $0x108] sm:$0xff] }
 0x80c   :  { %5304 = vmatmul.msk.bf16.vlgmr.msrb.gmra.mxu2 %vm189_vm8, %v7795_v4  ;;  %5305 = vmatmul.msk.bf16.vlgmr.msra.gmra.mxu0 %vm189_vm8, %v7795_v4 }
 0x80d   :  { %5306 = vmatmul.msk.bf16.vlgmr.msra.gmra.mxu3 %vm189_vm8, %v7795_v4  ;;  %5307 = vmatmul.msk.bf16.vlgmr.msra.gmra.mxu1 %vm189_vm8, %v7795_v4 }
 0x80e   :  { %2313 = vmatpush.bf16.msra.mxu0 %v6881_v43  ;;  %2341 = vmatpush.bf16.msra.mxu1 %v6897_v44  ;;  %v6915_v43 = vld [vmem:[%s9191_s13 + $0x188] sm:$0xff]  ;;  %v6898_v44 = vld [vmem:[%s9191_s13 + $0x100] sm:$0xff] }
 0x80f   :  { %2299 = vmatpush.bf16.msrb.mxu2 %v6873_v45  ;;  %2327 = vmatpush.bf16.msra.mxu3 %v6889_v46  ;;  %v6914_v45 = vld [vmem:[%s9191_s13 + $0x180] sm:$0xff] }
 0x810   :  { %v8096_v46 = vld [vmem:[%s9192_s12] sm:$0xff] }
 0x812   :  { %2314 = vmatpush.bf16.msra.mxu0 %v6880_v47  ;;  %2342 = vmatpush.bf16.msra.mxu1 %v6896_v48 }
 0x813   :  { %2300 = vmatpush.bf16.msrb.mxu2 %v6872_v49  ;;  %2328 = vmatpush.bf16.msra.mxu3 %v6888_v53  ;;  %v805_v49 = vperm.slane %v8096_v46, 1  ;;  %v807_v53 = vperm.slane %v8096_v46, 3 }
 0x816   :  { %2315 = vmatpush.bf16.msra.mxu0 %v6879_v54  ;;  %2343 = vmatpush.bf16.msra.mxu1 %v6895_v56 }
 0x817   :  { %2301 = vmatpush.bf16.msrb.mxu2 %v6871_v57  ;;  %2329 = vmatpush.bf16.msra.mxu3 %v6887_v58 }
 0x81a   :  { %2316 = vmatpush.bf16.msra.mxu0 %v6878_v60  ;;  %2344 = vmatpush.bf16.msra.mxu1 %v6894_v34  ;;  %v804_v34 = vperm.slane %v8096_v46, 0 }
 0x81b   :  { %2302 = vmatpush.bf16.msrb.mxu2 %v6870_v61  ;;  %2330 = vmatpush.bf16.msra.mxu3 %v6886_v62 }
 0x81c   :  { %5308 = vmatmul.msk.bf16.vlgmr.msra.gmra.mxu2 %vm189_vm8, %v7795_v4  ;;  %5309 = vmatmul.msk.bf16.vlgmr.msrb.gmra.mxu0 %vm189_vm8, %v7795_v4 }
 0x81d   :  { %5310 = vmatmul.msk.bf16.vlgmr.msrb.gmra.mxu3 %vm189_vm8, %v7795_v4  ;;  %5311 = vmatmul.msk.bf16.vlgmr.msrb.gmra.mxu1 %vm189_vm8, %v7795_v4  ;;  %v6884_v4 = vld [vmem:[%s9191_s13 + $0x90] sm:$0xff] }
 0x81e   :  { %2317 = vmatpush.bf16.msra.mxu0 %v6877_v37  ;;  %2345 = vmatpush.bf16.msra.mxu1 %v6893_v1  ;;  %v806_v37 = vperm.slane %v8096_v46, 2 }
 0x81f   :  { %2303 = vmatpush.bf16.msrb.mxu2 %v6869_v2  ;;  %2331 = vmatpush.bf16.msra.mxu3 %v6885_v3 }
 0x822   :  { %2318 = vmatpush.bf16.msra.mxu0 %v6876_v5  ;;  %2346 = vmatpush.bf16.msra.mxu1 %v6892_v6 }
 0x823   :  { %2304 = vmatpush.bf16.msrb.mxu2 %v6868_v7  ;;  %2332 = vmatpush.bf16.msra.mxu3 %v6884_v4  ;;  %v6945_v7 = vld [vmem:[%s9191_s13 + $0x278] sm:$0xff] }
 0x826   :  { %2319 = vmatpush.bf16.msra.mxu0 %v6875_v8  ;;  %2347 = vmatpush.bf16.msra.mxu1 %v6891_v9  ;;  %v6961_v9 = vld [vmem:[%s9191_s13 + $0x2f8] sm:$0xff] }
 0x827   :  { %2305 = vmatpush.bf16.msrb.mxu2 %v6867_v10  ;;  %2333 = vmatpush.bf16.msra.mxu3 %v6883_v50 }
 0x82a   :  { %2320 = vmatpush.bf16.msra.mxu0 %v6874_v11  ;;  %2348 = vmatpush.bf16.msra.mxu1 %v6890_v12 }
 0x82b   :  { %2306 = vmatpush.bf16.msrb.mxu2 %v6866_v15  ;;  %2334 = vmatpush.bf16.msra.mxu3 %v6882_v16  ;;  %v6944_v16 = vld [vmem:[%s9191_s13 + $0x270] sm:$0xff] }
 0x82e   :  { %2369 = vmatpush.bf16.msrb.mxu0 %v6913_v13  ;;  %2397 = vmatpush.bf16.msrb.mxu1 %v6929_v14 }
 0x82f   :  { %2355 = vmatpush.bf16.msra.mxu2 %v6905_v55  ;;  %2383 = vmatpush.bf16.msrb.mxu3 %v6921_v17 }
 0x832   :  { %2370 = vmatpush.bf16.msrb.mxu0 %v6912_v18  ;;  %2398 = vmatpush.bf16.msrb.mxu1 %v6928_v19  ;;  %v6960_v19 = vld [vmem:[%s9191_s13 + $0x2f0] sm:$0xff] }
 0x833   :  { %2356 = vmatpush.bf16.msra.mxu2 %v6904_v20  ;;  %2384 = vmatpush.bf16.msrb.mxu3 %v6920_v21 }
 0x836   :  { %2371 = vmatpush.bf16.msrb.mxu0 %v6911_v22  ;;  %2399 = vmatpush.bf16.msrb.mxu1 %v6927_v23  ;;  %v6937_v22 = vld [vmem:[%s9191_s13 + $0x238] sm:$0xff] }
 0x837   :  { %2357 = vmatpush.bf16.msra.mxu2 %v6903_v25  ;;  %2385 = vmatpush.bf16.msrb.mxu3 %v6919_v26  ;;  %v811_v26 = vperm.slane %v8096_v46, 7 }
 0x83a   :  { %2372 = vmatpush.bf16.msrb.mxu0 %v6910_v24  ;;  %2400 = vmatpush.bf16.msrb.mxu1 %v6926_v51  ;;  %v809_v24 = vperm.slane %v8096_v46, 5  ;;  %v6953_v51 = vld [vmem:[%s9191_s13 + $0x2b8] sm:$0xff] }
 0x83b   :  { %2358 = vmatpush.bf16.msra.mxu2 %v6902_v29  ;;  %2386 = vmatpush.bf16.msrb.mxu3 %v6918_v30  ;;  %v6936_v30 = vld [vmem:[%s9191_s13 + $0x230] sm:$0xff] }
 0x83e   :  { %2373 = vmatpush.bf16.msrb.mxu0 %v6909_v27  ;;  %2401 = vmatpush.bf16.msrb.mxu1 %v6925_v28  ;;  %v6943_v27 = vld [vmem:[%s9191_s13 + $0x268] sm:$0xff] }
 0x83f   :  { %2359 = vmatpush.bf16.msra.mxu2 %v6901_v32  ;;  %2387 = vmatpush.bf16.msrb.mxu3 %v6917_v33  ;;  %v6959_v28 = vld [vmem:[%s9191_s13 + $0x2e8] sm:$0xff]  ;;  %v6952_v32 = vld [vmem:[%s9191_s13 + $0x2b0] sm:$0xff] }
 0x842   :  { %2374 = vmatpush.bf16.msrb.mxu0 %v6908_v52  ;;  %2402 = vmatpush.bf16.msrb.mxu1 %v6924_v31 }
 0x843   :  { %2360 = vmatpush.bf16.msra.mxu2 %v6900_v35  ;;  %2388 = vmatpush.bf16.msrb.mxu3 %v6916_v36  ;;  %v808_v35 = vperm.slane %v8096_v46, 4 }
 0x846   :  { %2375 = vmatpush.bf16.msrb.mxu0 %v6907_v40  ;;  %2403 = vmatpush.bf16.msrb.mxu1 %v6923_v59  ;;  %v6942_v59 = vld [vmem:[%s9191_s13 + $0x260] sm:$0xff] }
 0x847   :  { %2361 = vmatpush.bf16.msra.mxu2 %v6899_v42  ;;  %2389 = vmatpush.bf16.msrb.mxu3 %v6915_v43  ;;  %v810_v42 = vperm.slane %v8096_v46, 6  ;;  %v6941_v46 = vld [vmem:[%s9191_s13 + $0x258] sm:$0xff] }
 0x84a   :  { %2376 = vmatpush.bf16.msrb.mxu0 %v6906_v38  ;;  %2404 = vmatpush.bf16.msrb.mxu1 %v6922_v41  ;;  %v6958_v41 = vld [vmem:[%s9191_s13 + $0x2e0] sm:$0xff] }
 0x84b   :  { %2362 = vmatpush.bf16.msra.mxu2 %v6898_v44  ;;  %2390 = vmatpush.bf16.msrb.mxu3 %v6914_v45  ;;  %v6935_v44 = vld [vmem:[%s9191_s13 + $0x228] sm:$0xff] }
 0x869   :  { %v1022_v47 = vpop.f32.mrf.mxu0 }
 0x86a   :  { %v1050_v48 = vpop.f32.mrf.mxu1  ;;  %v1023_v56 = vadd.f32 %v1022_v47, %v805_v49 }
 0x86b   :  { %v1051_v58 = vadd.f32 %v1050_v48, %v807_v53  ;;  %v6951_v48 = vld [vmem:[%s9191_s13 + $0x2a8] sm:$0xff] }
 0x86c   :  { %v1224_v2 = vmax.f32 %v1023_v56, 0.0 }
 0x86d   :  { %v1226_v5 = vmax.f32 %v1051_v58, 0.0 }
 0x86f   :  { %v1008_v54 = vpop.f32.mrf.mxu2 }
 0x870   :  { %v1036_v57 = vpop.f32.mrf.mxu3  ;;  %v1009_v4 = vadd.f32 %v1008_v54, %v804_v34 }
 0x871   :  { %v1024_v60 = vpop.f32.mrf.mxu0  ;;  %v1037_v10 = vadd.f32 %v1036_v57, %v806_v37  ;;  %v6957_v57 = vld [vmem:[%s9191_s13 + $0x2d8] sm:$0xff] }
 0x872   :  { %v1025_v61 = vadd.f32 %v1024_v60, %v805_v49  ;;  %v1052_v62 = vpop.f32.mrf.mxu1  ;;  %v1223_v55 = vmax.f32 %v1009_v4, 0.0 }
 0x873   :  { %v1053_v1 = vadd.f32 %v1052_v62, %v807_v53  ;;  %v1225_v20 = vmax.f32 %v1037_v10, 0.0 }
 0x874   :  { %v1240_v3 = vmax.f32 %v1025_v61, 0.0  ;;  %v6934_v61 = vld [vmem:[%s9191_s13 + $0x220] sm:$0xff] }
 0x875   :  { %v1242_v6 = vmax.f32 %v1053_v1, 0.0  ;;  %v6950_v1 = vld [vmem:[%s9191_s13 + $0x2a0] sm:$0xff] }
 0x876   :  { %v1256_v8 = vpack.c.bf16 %v1240_v3, %v1224_v2  ;;  %v8163_v3 = vld [vmem:[%s9192_s12 + $0x8] sm:$0xff] }
 0x877   :  { %v1258_v50 = vpack.c.bf16 %v1242_v6, %v1226_v5  ;;  %v1010_v11 = vpop.f32.mrf.mxu2  ;;  %v6940_v6 = vld [vmem:[%s9191_s13 + $0x250] sm:$0xff] }
 0x878   :  { %v1011_v12 = vadd.f32 %v1010_v11, %v804_v34  ;;  %v1038_v13 = vpop.f32.mrf.mxu3  ;;  %2321 = vmatmul.bf16.vlgmr.msra.gmra.mxu0 %v1256_v8  ;;  %v6933_v11 = vld [vmem:[%s9191_s13 + $0x218] sm:$0xff] }
 0x879   :  { %v1039_v14 = vadd.f32 %v1038_v13, %v806_v37  ;;  %2349 = vmatmul.bf16.vlgmr.msra.gmra.mxu1 %v1258_v50  ;;  %2425 = vmatpush.bf16.msra.mxu0 %v6945_v7  ;;  %v1078_v15 = vpop.f32.mrf.mxu0  ;;  %v813_v13 = vperm.slane %v8163_v3, 1 }
 0x87a   :  { %v1239_v17 = vmax.f32 %v1011_v12, 0.0  ;;  %2453 = vmatpush.bf16.msra.mxu1 %v6961_v9  ;;  %v1106_v18 = vpop.f32.mrf.mxu1  ;;  %v1079_v52 = vadd.f32 %v1078_v15, %v809_v24  ;;  %v6956_v9 = vld [vmem:[%s9191_s13 + $0x2d0] sm:$0xff] }
 0x87b   :  { %v1241_v21 = vmax.f32 %v1039_v14, 0.0  ;;  %v1107_v33 = vadd.f32 %v1106_v18, %v811_v26  ;;  %v6949_v14 = vld [vmem:[%s9191_s13 + $0x298] sm:$0xff] }
 0x87c   :  { %v1255_v23 = vpack.c.bf16 %v1239_v17, %v1223_v55  ;;  %v1228_v45 = vmax.f32 %v1079_v52, 0.0  ;;  %v6939_v55 = vld [vmem:[%s9191_s13 + $0x248] sm:$0xff] }
 0x87d   :  { %v1257_v25 = vpack.c.bf16 %v1241_v21, %v1225_v20  ;;  %2426 = vmatpush.bf16.msra.mxu0 %v6944_v16  ;;  %v1230_v49 = vmax.f32 %v1107_v33, 0.0  ;;  %v815_v16 = vperm.slane %v8163_v3, 3  ;;  %v6955_v17 = vld [vmem:[%s9191_s13 + $0x2c8] sm:$0xff] }
 0x87e   :  { %2454 = vmatpush.bf16.msra.mxu1 %v6960_v19  ;;  %2307 = vmatmul.bf16.vlgmr.msrb.gmra.mxu2 %v1255_v23  ;;  %v6932_v19 = vld [vmem:[%s9191_s13 + $0x210] sm:$0xff] }
 0x87f   :  { %2335 = vmatmul.bf16.vlgmr.msra.gmra.mxu3 %v1257_v25  ;;  %2411 = vmatpush.bf16.msrb.mxu2 %v6937_v22  ;;  %v1064_v29 = vpop.f32.mrf.mxu2  ;;  %v6948_v22 = vld [vmem:[%s9191_s13 + $0x290] sm:$0xff]  ;;  %v812_v25 = vperm.slane %v8163_v3, 0 }
 0x880   :  { %2439 = vmatpush.bf16.msra.mxu3 %v6953_v51  ;;  %v1092_v31 = vpop.f32.mrf.mxu3  ;;  %v1065_v54 = vadd.f32 %v1064_v29, %v808_v35  ;;  %v6938_v51 = vld [vmem:[%s9191_s13 + $0x240] sm:$0xff]  ;;  %v6977_v29 = vld [vmem:[%s9191_s13 + $0x378] sm:$0xff] }
 0x881   :  { %2427 = vmatpush.bf16.msra.mxu0 %v6943_v27  ;;  %v1080_v40 = vpop.f32.mrf.mxu0  ;;  %v1093_v58 = vadd.f32 %v1092_v31, %v810_v42  ;;  %v6993_v31 = vld [vmem:[%s9191_s13 + $0x3f8] sm:$0xff] }
 0x882   :  { %2455 = vmatpush.bf16.msra.mxu1 %v6959_v28  ;;  %v1081_v36 = vadd.f32 %v1080_v40, %v809_v24  ;;  %v1108_v38 = vpop.f32.mrf.mxu1  ;;  %v1227_v7 = vmax.f32 %v1065_v54, 0.0  ;;  %v6954_v28 = vld [vmem:[%s9191_s13 + $0x2c0] sm:$0xff]  ;;  %v6969_v54 = vld [vmem:[%s9191_s13 + $0x338] sm:$0xff] }
 0x883   :  { %v1109_v43 = vadd.f32 %v1108_v38, %v811_v26  ;;  %2412 = vmatpush.bf16.msrb.mxu2 %v6936_v30  ;;  %v1229_v10 = vmax.f32 %v1093_v58, 0.0  ;;  %v814_v30 = vperm.slane %v8163_v3, 2 }
 0x884   :  { %v1244_v47 = vmax.f32 %v1081_v36, 0.0  ;;  %2440 = vmatpush.bf16.msra.mxu3 %v6952_v32  ;;  %v6931_v32 = vld [vmem:[%s9191_s13 + $0x208] sm:$0xff] }
 0x885   :  { %v1246_v53 = vmax.f32 %v1109_v43, 0.0  ;;  %2428 = vmatpush.bf16.msra.mxu0 %v6942_v59  ;;  %v6947_v59 = vld [vmem:[%s9191_s13 + $0x288] sm:$0xff] }
 0x886   :  { %v1260_v56 = vpack.c.bf16 %v1244_v47, %v1228_v45  ;;  %2456 = vmatpush.bf16.msra.mxu1 %v6958_v41  ;;  %v6992_v47 = vld [vmem:[%s9191_s13 + $0x3f0] sm:$0xff] }
 0x887   :  { %v1262_v60 = vpack.c.bf16 %v1246_v53, %v1230_v49  ;;  %2413 = vmatpush.bf16.msrb.mxu2 %v6935_v44  ;;  %v1066_v34 = vpop.f32.mrf.mxu2 }
 0x888   :  { %2441 = vmatpush.bf16.msra.mxu3 %v6951_v48  ;;  %v1067_v62 = vadd.f32 %v1066_v34, %v808_v35  ;;  %v1094_v37 = vpop.f32.mrf.mxu3  ;;  %2377 = vmatmul.bf16.vlgmr.msrb.gmra.mxu0 %v1260_v56  ;;  %v6930_v48 = vld [vmem:[%s9191_s13 + $0x200] sm:$0xff]  ;;  %v6975_v34 = vld [vmem:[%s9191_s13 + $0x368] sm:$0xff] }
 0x889   :  { %v1095_v2 = vadd.f32 %v1094_v37, %v810_v42  ;;  %2405 = vmatmul.bf16.vlgmr.msrb.gmra.mxu1 %v1262_v60  ;;  %2429 = vmatpush.bf16.msra.mxu0 %v6941_v46  ;;  %v1134_v5 = vpop.f32.mrf.mxu0  ;;  %v6976_v42 = vld [vmem:[%s9191_s13 + $0x370] sm:$0xff]  ;;  %v6946_v46 = vld [vmem:[%s9191_s13 + $0x280] sm:$0xff]  ;;  %v6991_v37 = vld [vmem:[%s9191_s13 + $0x3e8] sm:$0xff] }
 0x88a   :  { %v1243_v4 = vmax.f32 %v1067_v62, 0.0  ;;  %2457 = vmatpush.bf16.msra.mxu1 %v6957_v57  ;;  %v1162_v8 = vpop.f32.mrf.mxu1  ;;  %v1135_v20 = vadd.f32 %v1134_v5, %v813_v13  ;;  %v6985_v57 = vld [vmem:[%s9191_s13 + $0x3b8] sm:$0xff] }
 0x88b   :  { %v1245_v50 = vmax.f32 %v1095_v2, 0.0  ;;  %2414 = vmatpush.bf16.msrb.mxu2 %v6934_v61  ;;  %v1163_v23 = vadd.f32 %v1162_v8, %v815_v16  ;;  %v6968_v2 = vld [vmem:[%s9191_s13 + $0x330] sm:$0xff] }
 0x88c   :  { %v1259_v12 = vpack.c.bf16 %v1243_v4, %v1227_v7  ;;  %2442 = vmatpush.bf16.msra.mxu3 %v6950_v1  ;;  %v1232_v33 = vmax.f32 %v1135_v20, 0.0  ;;  %v6974_v4 = vld [vmem:[%s9191_s13 + $0x360] sm:$0xff]  ;;  %v817_v20 = vperm.slane %v8163_v3, 5 }
 0x88d   :  { %v1261_v15 = vpack.c.bf16 %v1245_v50, %v1229_v10  ;;  %2430 = vmatpush.bf16.msra.mxu0 %v6940_v6  ;;  %v1234_v35 = vmax.f32 %v1163_v23, 0.0  ;;  %v6984_v6 = vld [vmem:[%s9191_s13 + $0x3b0] sm:$0xff]  ;;  %v6967_v10 = vld [vmem:[%s9191_s13 + $0x328] sm:$0xff]  ;;  %v819_v23 = vperm.slane %v8163_v3, 7 }
 0x88e   :  { %2458 = vmatpush.bf16.msra.mxu1 %v6956_v9  ;;  %2363 = vmatmul.bf16.vlgmr.msra.gmra.mxu2 %v1259_v12  ;;  %v6990_v9 = vld [vmem:[%s9191_s13 + $0x3e0] sm:$0xff]  ;;  %v6983_v50 = vld [vmem:[%s9191_s13 + $0x3a8] sm:$0xff]  ;;  %v6989_v12 = vld [vmem:[%s9191_s13 + $0x3d8] sm:$0xff] }
 0x88f   :  { %2391 = vmatmul.bf16.vlgmr.msrb.gmra.mxu3 %v1261_v15  ;;  %2415 = vmatpush.bf16.msrb.mxu2 %v6933_v11  ;;  %v1120_v18 = vpop.f32.mrf.mxu2  ;;  %v6973_v11 = vld [vmem:[%s9191_s13 + $0x358] sm:$0xff] }
 0x890   :  { %2443 = vmatpush.bf16.msra.mxu3 %v6949_v14  ;;  %v1148_v21 = vpop.f32.mrf.mxu3  ;;  %v1121_v38 = vadd.f32 %v1120_v18, %v812_v25  ;;  %v6966_v14 = vld [vmem:[%s9191_s13 + $0x320] sm:$0xff] }
 0x891   :  { %2431 = vmatpush.bf16.msra.mxu0 %v6939_v55  ;;  %v1136_v24 = vpop.f32.mrf.mxu0  ;;  %v1149_v43 = vadd.f32 %v1148_v21, %v814_v30  ;;  %v6972_v55 = vld [vmem:[%s9191_s13 + $0x350] sm:$0xff] }
 0x892   :  { %2459 = vmatpush.bf16.msra.mxu1 %v6955_v17  ;;  %v1137_v26 = vadd.f32 %v1136_v24, %v813_v13  ;;  %v1164_v27 = vpop.f32.mrf.mxu1  ;;  %v1231_v58 = vmax.f32 %v1121_v38, 0.0  ;;  %v6988_v17 = vld [vmem:[%s9191_s13 + $0x3d0] sm:$0xff]  ;;  %v6971_v24 = vld [vmem:[%s9191_s13 + $0x348] sm:$0xff] }
 0x893   :  { %v1165_v52 = vadd.f32 %v1164_v27, %v815_v16  ;;  %2416 = vmatpush.bf16.msrb.mxu2 %v6932_v19  ;;  %v1233_v61 = vmax.f32 %v1149_v43, 0.0  ;;  %v6982_v16 = vld [vmem:[%s9191_s13 + $0x3a0] sm:$0xff]  ;;  %v6965_v19 = vld [vmem:[%s9191_s13 + $0x318] sm:$0xff]  ;;  %v6964_v27 = vld [vmem:[%s9191_s13 + $0x310] sm:$0xff] }
 0x894   :  { %v1248_v40 = vmax.f32 %v1137_v26, 0.0  ;;  %2444 = vmatpush.bf16.msra.mxu3 %v6948_v22  ;;  %v6981_v22 = vld [vmem:[%s9191_s13 + $0x398] sm:$0xff]  ;;  %v6963_v38 = vld [vmem:[%s9191_s13 + $0x308] sm:$0xff] }
 0x895   :  { %v1250_v36 = vmax.f32 %v1165_v52, 0.0  ;;  %2432 = vmatpush.bf16.msra.mxu0 %v6938_v51  ;;  %v6979_v43 = vld [vmem:[%s9191_s13 + $0x388] sm:$0xff] }
 0x896   :  { %v1264_v41 = vpack.c.bf16 %v1248_v40, %v1232_v33  ;;  %2460 = vmatpush.bf16.msra.mxu1 %v6954_v28 }
 0x897   :  { %v1266_v44 = vpack.c.bf16 %v1250_v36, %v1234_v35  ;;  %2417 = vmatpush.bf16.msrb.mxu2 %v6931_v32  ;;  %v1122_v45 = vpop.f32.mrf.mxu2  ;;  %v816_v32 = vperm.slane %v8163_v3, 4  ;;  %v818_v35 = vperm.slane %v8163_v3, 6 }
 0x898   :  { %2445 = vmatpush.bf16.msra.mxu3 %v6947_v59  ;;  %v1123_v49 = vadd.f32 %v1122_v45, %v812_v25  ;;  %v1150_v53 = vpop.f32.mrf.mxu3  ;;  %2433 = vmatmul.bf16.vlgmr.msra.gmra.mxu0 %v1264_v41  ;;  %v6987_v25 = vld [vmem:[%s9191_s13 + $0x3c8] sm:$0xff]  ;;  %v6986_v59 = vld [vmem:[%s9191_s13 + $0x3c0] sm:$0xff] }
 0x899   :  { %2481 = vmatpush.bf16.msrb.mxu0 %v6977_v29  ;;  %v1151_v56 = vadd.f32 %v1150_v53, %v814_v30  ;;  %2461 = vmatmul.bf16.vlgmr.msra.gmra.mxu1 %v1266_v44  ;;  %v1190_v7 = vpop.f32.mrf.mxu0  ;;  %v6980_v29 = vld [vmem:[%s9191_s13 + $0x390] sm:$0xff]  ;;  %v6962_v53 = vld [vmem:[%s9191_s13 + $0x300] sm:$0xff] }
 0x89a   :  { %2509 = vmatpush.bf16.msrb.mxu1 %v6993_v31  ;;  %v1247_v60 = vmax.f32 %v1123_v49, 0.0  ;;  %v1218_v8 = vpop.f32.mrf.mxu1  ;;  %v1191_v28 = vadd.f32 %v1190_v7, %v817_v20  ;;  %v6970_v31 = vld [vmem:[%s9191_s13 + $0x340] sm:$0xff] }
 0x89b   :  { %v1249_v62 = vmax.f32 %v1151_v56, 0.0  ;;  %2418 = vmatpush.bf16.msrb.mxu2 %v6930_v48  ;;  %v1219_v30 = vadd.f32 %v1218_v8, %v819_v23  ;;  %v7227_v7 = vld [vmem:[%s9193_s14] ss:$0 sm:$0xff] }
 0x89c   :  { %v1263_v1 = vpack.c.bf16 %v1247_v60, %v1231_v58  ;;  %2446 = vmatpush.bf16.msra.mxu3 %v6946_v46  ;;  %v1236_v41 = vmax.f32 %v1191_v28, 0.0 }
 0x89d   :  { %2482 = vmatpush.bf16.msrb.mxu0 %v6976_v42  ;;  %v1265_v5 = vpack.c.bf16 %v1249_v62, %v1233_v61  ;;  %v1238_v44 = vmax.f32 %v1219_v30, 0.0 }
 0x89e   :  { %2510 = vmatpush.bf16.msrb.mxu1 %v6992_v47  ;;  %2419 = vmatmul.bf16.vlgmr.msrb.gmra.mxu2 %v1263_v1 }
 0x89f   :  { %2467 = vmatpush.bf16.msra.mxu2 %v6969_v54  ;;  %2447 = vmatmul.bf16.vlgmr.msra.gmra.mxu3 %v1265_v5  ;;  %v1176_v13 = vpop.f32.mrf.mxu2  ;;  %v6978_v54 = vld [vmem:[%s9191_s13 + $0x380] sm:$0xff] }
 0x8a0   :  { %2495 = vmatpush.bf16.msrb.mxu3 %v6985_v57  ;;  %v1204_v15 = vpop.f32.mrf.mxu3  ;;  %v1177_v47 = vadd.f32 %v1176_v13, %v816_v32 }
 0x8a1   :  { %2483 = vmatpush.bf16.msrb.mxu0 %v6975_v34  ;;  %v1192_v18 = vpop.f32.mrf.mxu0  ;;  %v1205_v3 = vadd.f32 %v1204_v15, %v818_v35 }
 0x8a2   :  { %2511 = vmatpush.bf16.msrb.mxu1 %v6991_v37  ;;  %v1220_v21 = vpop.f32.mrf.mxu1  ;;  %v1193_v51 = vadd.f32 %v1192_v18, %v817_v20  ;;  %v1235_v57 = vmax.f32 %v1177_v47, 0.0 }
 0x8a3   :  { %2468 = vmatpush.bf16.msra.mxu2 %v6968_v2  ;;  %v1221_v26 = vadd.f32 %v1220_v21, %v819_v23  ;;  %v1237_v58 = vmax.f32 %v1205_v3, 0.0 }
 0x8a4   :  { %2496 = vmatpush.bf16.msrb.mxu3 %v6984_v6  ;;  %v1252_v33 = vmax.f32 %v1193_v51, 0.0 }
 0x8a5   :  { %2484 = vmatpush.bf16.msrb.mxu0 %v6974_v4  ;;  %v1254_v36 = vmax.f32 %v1221_v26, 0.0 }
 0x8a6   :  { %2512 = vmatpush.bf16.msrb.mxu1 %v6990_v9  ;;  %v1268_v48 = vpack.c.bf16 %v1252_v33, %v1236_v41 }
 0x8a7   :  { %2469 = vmatpush.bf16.msra.mxu2 %v6967_v10  ;;  %v1178_v52 = vpop.f32.mrf.mxu2  ;;  %v1270_v49 = vpack.c.bf16 %v1254_v36, %v1238_v44 }
 0x8a8   :  { %2497 = vmatpush.bf16.msrb.mxu3 %v6983_v50  ;;  %v1206_v40 = vpop.f32.mrf.mxu3  ;;  %v1179_v42 = vadd.f32 %v1178_v52, %v816_v32 }
 0x8a9   :  { %2485 = vmatpush.bf16.msrb.mxu0 %v6973_v11  ;;  %v1207_v45 = vadd.f32 %v1206_v40, %v818_v35 }
 0x8aa   :  { %2513 = vmatpush.bf16.msrb.mxu1 %v6989_v12  ;;  %v1251_v46 = vmax.f32 %v1179_v42, 0.0 }
 0x8ab   :  { %2470 = vmatpush.bf16.msra.mxu2 %v6966_v14  ;;  %v1253_v56 = vmax.f32 %v1207_v45, 0.0 }
 0x8ac   :  { %2498 = vmatpush.bf16.msrb.mxu3 %v6982_v16  ;;  %v1267_v60 = vpack.c.bf16 %v1251_v46, %v1235_v57 }
 0x8ad   :  { %2486 = vmatpush.bf16.msrb.mxu0 %v6972_v55  ;;  %v1269_v34 = vpack.c.bf16 %v1253_v56, %v1237_v58 }
 0x8ae   :  { %2514 = vmatpush.bf16.msrb.mxu1 %v6988_v17 }
 0x8af   :  { %2471 = vmatpush.bf16.msra.mxu2 %v6965_v19 }
 0x8b0   :  { %2499 = vmatpush.bf16.msrb.mxu3 %v6981_v22 }
 0x8b1   :  { %2487 = vmatpush.bf16.msrb.mxu0 %v6971_v24 }
 0x8b2   :  { %2515 = vmatpush.bf16.msrb.mxu1 %v6987_v25 }
 0x8b3   :  { %2472 = vmatpush.bf16.msra.mxu2 %v6964_v27 }
 0x8b4   :  { %2500 = vmatpush.bf16.msrb.mxu3 %v6980_v29 }
 0x8b5   :  { %2488 = vmatpush.bf16.msrb.mxu0 %v6970_v31 }
 0x8b6   :  { %2516 = vmatpush.bf16.msrb.mxu1 %v6986_v59 }
 0x8b7   :  { %2473 = vmatpush.bf16.msra.mxu2 %v6963_v38 }
 0x8b8   :  { %2501 = vmatpush.bf16.msrb.mxu3 %v6979_v43  ;;  %2489 = vmatmul.bf16.vlgmr.msrb.gmra.mxu0 %v1268_v48 }
 0x8b9   :  { %2517 = vmatmul.bf16.vlgmr.msrb.gmra.mxu1 %v1270_v49 }
 0x8bb   :  { %2474 = vmatpush.bf16.msra.mxu2 %v6962_v53 }
 0x8bc   :  { %2502 = vmatpush.bf16.msrb.mxu3 %v6978_v54 }
 0x8be   :  { %2475 = vmatmul.bf16.vlgmr.msra.gmra.mxu2 %v1267_v60 }
 0x8bf   :  { %2503 = vmatmul.bf16.vlgmr.msrb.gmra.mxu3 %v1269_v34 }
 0x8f5   :  { %v2322_v61 = vpop.f32.mrf.mxu0 }
 0x8f6   :  { %v2350_v1 = vpop.f32.mrf.mxu1 }
 0x8fd   :  { %v2324_v2 = vpop.f32.mrf.mxu0 }
 0x8fe   :  { %v2352_v4 = vpop.f32.mrf.mxu1 }
 0x901   :  { %v2308_v62 = vpop.f32.mrf.mxu2 }
 0x902   :  { %v2336_v37 = vpop.f32.mrf.mxu3  ;;  %v2309_v8 = vadd.f32 %v7227_v7, %v2308_v62 }
 0x904   :  { %v2323_v50 = vadd.f32 %v2322_v61, %v2309_v8 }
 0x905   :  { %v2378_v9 = vpop.f32.mrf.mxu0 }
 0x906   :  { %v2406_v12 = vpop.f32.mrf.mxu1  ;;  %v2337_v13 = vadd.f32 %v2336_v37, %v2323_v50 }
 0x908   :  { %v2351_v16 = vadd.f32 %v2350_v1, %v2337_v13 }
 0x909   :  { %v2310_v5 = vpop.f32.mrf.mxu2 }
 0x90a   :  { %v2338_v6 = vpop.f32.mrf.mxu3  ;;  %v2311_v14 = vadd.f32 %v7227_v7, %v2310_v5 }
 0x90c   :  { %v2325_v15 = vadd.f32 %v2324_v2, %v2311_v14 }
 0x90d   :  { %v2380_v55 = vpop.f32.mrf.mxu0 }
 0x90e   :  { %v2339_v20 = vadd.f32 %v2338_v6, %v2325_v15  ;;  %v2408_v21 = vpop.f32.mrf.mxu1 }
 0x910   :  { %v2353_v23 = vadd.f32 %v2352_v4, %v2339_v20 }
 0x911   :  { %v2364_v10 = vpop.f32.mrf.mxu2 }
 0x912   :  { %v2392_v11 = vpop.f32.mrf.mxu3  ;;  %v2365_v18 = vadd.f32 %v2364_v10, %v2351_v16 }
 0x914   :  { %v2379_v22 = vadd.f32 %v2378_v9, %v2365_v18 }
 0x915   :  { %v2434_v25 = vpop.f32.mrf.mxu0 }
 0x916   :  { %v2393_v24 = vadd.f32 %v2392_v11, %v2379_v22  ;;  %v2462_v30 = vpop.f32.mrf.mxu1 }
 0x918   :  { %v2407_v29 = vadd.f32 %v2406_v12, %v2393_v24 }
 0x919   :  { %v2366_v17 = vpop.f32.mrf.mxu2 }
 0x91a   :  { %v2394_v19 = vpop.f32.mrf.mxu3  ;;  %v2367_v51 = vadd.f32 %v2366_v17, %v2353_v23  ;;  %v6994_v17 = vld [vmem:[%s9234_s0 + $0x10] sm:$0xff] }
 0x91c   :  { %v2381_v28 = vadd.f32 %v2380_v55, %v2367_v51 }
 0x91d   :  { %v2436_v33 = vpop.f32.mrf.mxu0 }
 0x91e   :  { %v2395_v31 = vadd.f32 %v2394_v19, %v2381_v28  ;;  %v2464_v41 = vpop.f32.mrf.mxu1 }
 0x920   :  { %v2409_v59 = vadd.f32 %v2408_v21, %v2395_v31  ;;  %v7228_v31 = vld [vmem:[%s9194_s15] ss:$0 sm:$0xff] }
 0x921   :  { %v2420_v26 = vpop.f32.mrf.mxu2 }
 0x922   :  { %v2448_v27 = vpop.f32.mrf.mxu3  ;;  %v2421_v52 = vadd.f32 %v2420_v26, %v2407_v29 }
 0x924   :  { %v2435_v32 = vadd.f32 %v2434_v25, %v2421_v52 }
 0x926   :  { %v2449_v36 = vadd.f32 %v2448_v27, %v2435_v32 }
 0x928   :  { %v2463_v43 = vadd.f32 %v2462_v30, %v2449_v36 }
 0x929   :  { %v2422_v40 = vpop.f32.mrf.mxu2 }
 0x92a   :  { %v2450_v35 = vpop.f32.mrf.mxu3  ;;  %v2423_v38 = vadd.f32 %v2422_v40, %v2409_v59  ;;  %v7229_v59 = vld [vmem:[%s9195_s16] ss:$0 sm:$0xff] }
 0x92c   :  { %v2437_v42 = vadd.f32 %v2436_v33, %v2423_v38 }
 0x92e   :  { %v2451_v3 = vadd.f32 %v2450_v35, %v2437_v42 }
 0x930   :  { %v2465_v56 = vadd.f32 %v2464_v41, %v2451_v3 }
 0x935   :  { %v2490_v44 = vpop.f32.mrf.mxu0 }
 0x936   :  { %v2518_v53 = vpop.f32.mrf.mxu1 }
 0x93d   :  { %v2492_v34 = vpop.f32.mrf.mxu0 }
 0x93e   :  { %v2520_v2 = vpop.f32.mrf.mxu1 }
 0x941   :  { %v2476_v45 = vpop.f32.mrf.mxu2 }
 0x942   :  { %v2477_v47 = vadd.f32 %v2476_v45, %v2463_v43  ;;  %v2504_v48 = vpop.f32.mrf.mxu3 }
 0x944   :  { %v2491_v49 = vadd.f32 %v2490_v44, %v2477_v47  ;;  %v7230_v44 = vld [vmem:[%s9236_s26 + $0x1] ss:$0 sm:$0xff]  ;;  %s9243_s26 = smov 80  }
 0x946   :  { %v2505_v46 = vadd.f32 %v2504_v48, %v2491_v49 }
 0x948   :  { %v2519_v54 = vadd.f32 %v2518_v53, %v2505_v46 }
 0x949   :  { %v2478_v57 = vpop.f32.mrf.mxu2 }
 0x94a   :  { %v2479_v58 = vadd.f32 %v2478_v57, %v2465_v56  ;;  %v2523_v60 = vadd.f32 %v2519_v54, %v7780_v63  ;;  %v2506_v37 = vpop.f32.mrf.mxu3 }
 0x94c   :  { %v2493_v61 = vadd.f32 %v2492_v34, %v2479_v58  ;;  %v2527_v62 = vsel %vm189_vm8, %v2523_v60, 0.0  ;;  %v8365_v34 = vld [vmem:[%s9237_s29] sm:$0xff] }
 0x94d   :  { %2528 = vadd.xlane.f32.xlu2 %v2527_v62 }
 0x94e   :  { %v2507_v1 = vadd.f32 %v2506_v37, %v2493_v61 }
 0x950   :  { %v2521_v5 = vadd.f32 %v2520_v2, %v2507_v1  ;;  %v8372_v2 = vld [vmem:[%s9237_s29 + $0x8] sm:$0xff]  ;;  %s9245_s29 = smov 112  }
 0x952   :  { %v2524_v6 = vadd.f32 %v2521_v5, %v7782_v0  ;;  %v6995_v0 = vld [vmem:[%s9234_s0 + $0x18] sm:$0xff] }
 0x953   :  { %2618 = vmatpush.bf16.msrb.mxu2 %v6995_v0 }
 0x954   :  { %v2530_v7 = vsel %vm189_vm8, %v2524_v6, 0.0 }
 0x955   :  { %2531 = vadd.xlane.f32.xlu2 %v2530_v7 }
 0x957   :  { %2619 = vmatpush.bf16.msrb.mxu2 %v6994_v17 }
 0x9c0   :  { %v2529_v4 = vpop.xlane.xlu2 %2528 }
 0x9c1   :  { %v2533_v8 = vmul.f32 %v2529_v4, %v7640_v39 }
 0x9c3   :  { %v2535_v9 = vsub.f32 %v2523_v60, %v2533_v8 }
 0x9c5   :  { %v2537_v10 = vmul.f32 %v2535_v9, %v2535_v9 }
 0x9c7   :  { %v2539_v63 = vsel %vm189_vm8, %v2537_v10, 0.0 }
 0x9c8   :  { %2540 = vadd.xlane.f32.xlu2 %v2539_v63  ;;  %v2532_v50 = vpop.xlane.xlu2 %2531 }
 0x9c9   :  { %v2534_v11 = vmul.f32 %v2532_v50, %v7640_v39 }
 0x9cb   :  { %v2536_v12 = vsub.f32 %v2524_v6, %v2534_v11 }
 0x9cd   :  { %v2538_v13 = vmul.f32 %v2536_v12, %v2536_v12 }
 0x9cf   :  { %v2542_v14 = vsel %vm189_vm8, %v2538_v13, 0.0 }
 0x9d0   :  { %2543 = vadd.xlane.f32.xlu0 %v2542_v14  ;;  %v5824_v14 = vld [vmem:[%s9186_s7 + $0x10] sm:$0xf] }
 0x9d1   :  { %v2850_v0 = vsel %vm412_vm11, %v5824_v14, 0 }
 0xa3b   :  { %v2541_v15 = vpop.xlane.xlu2 %2540 }
 0xa3c   :  { %v2545_v16 = vmul.f32 %v2541_v15, %v7640_v39 }
 0xa3e   :  { %v2547_v55 = vadd.f32 1e-05, %v2545_v16 }
 0xa40   :  { %7278 = vrsqrt.f32 %v2547_v55  ;;  %vm2555_vm4 = vweird.f32 %v2547_v55 }
 0xa43   :  { %v2544_v18 = vpop.xlane.xlu0 %2543 }
 0xa44   :  { %v2546_v19 = vmul.f32 %v2544_v18, %v7640_v39 }
 0xa46   :  { %v7279_v20 = vpop.eup %7278  ;;  %v2548_v21 = vadd.f32 1e-05, %v2546_v19 }
 0xa47   :  { %v2550_v22 = vmul.f32 %v7279_v20, %v2547_v55  ;;  %vm2556_vm3 = vweird.f32 %v7279_v20 }
 0xa48   :  { %7280 = vrsqrt.f32 %v2548_v21  ;;  %vm2557_vm5 = vmor %vm2555_vm4, %vm2556_vm3  ;;  %vm2565_vm7 = vweird.f32 %v2548_v21 }
 0xa49   :  { %v2551_v23 = vmul.f32 %v7279_v20, %v2550_v22 }
 0xa4b   :  { %v2552_v24 = vmul.f32 0.5, %v2551_v23 }
 0xa4d   :  { %v2553_v51 = vsub.f32 1.5, %v2552_v24 }
 0xa4e   :  { %v7281_v25 = vpop.eup %7280 }
 0xa4f   :  { %v2554_v26 = vmul.f32 %v7279_v20, %v2553_v51  ;;  %v2560_v27 = vmul.f32 %v7281_v25, %v2548_v21  ;;  %vm2566_vm6 = vweird.f32 %v7281_v25 }
 0xa50   :  { %vm2567_vm12 = vmor %vm2565_vm7, %vm2566_vm6 }
 0xa51   :  { %v2561_v28 = vmul.f32 %v7281_v25, %v2560_v27  ;;  %v2558_v29 = vsel %vm2557_vm5, %v7279_v20, %v2554_v26 }
 0xa52   :  { %v2569_v32 = vmul.f32 %v2558_v29, %v2535_v9 }
 0xa53   :  { %v2562_v30 = vmul.f32 0.5, %v2561_v28 }
 0xa54   :  { %v2574_v35 = vmul.f32 %v7228_v31, %v2569_v32 }
 0xa55   :  { %v2563_v52 = vsub.f32 1.5, %v2562_v30 }
 0xa56   :  { %v8336_v41 = vadd.f32 %v7229_v59, %v2574_v35 }
 0xa57   :  { %v2564_v33 = vmul.f32 %v7281_v25, %v2563_v52 }
 0xa59   :  { %v2568_v40 = vsel %vm2567_vm12, %v7281_v25, %v2564_v33 }
 0xa5a   :  { %v2570_v36 = vmul.f32 %v2568_v40, %v2536_v12 }
 0xa5c   :  { %v2575_v38 = vmul.f32 %v7228_v31, %v2570_v36 }
 0xa5e   :  { %v8338_v42 = vadd.f32 %v7229_v59, %v2575_v38 }
 0xa60   :  { %v2586_v43 = vpack.c.bf16 %v8338_v42, %v8336_v41 }
 0xa62   :  { %5841 = vmatmul.msk.bf16.vlgmr.msrb.gmra.mxu2 %vm189_vm8, %v2586_v43 }
 0xae5   :  { %v2621_v45 = vpop.f32.mrf.mxu2 }
 0xae6   :  { %v2622_v47 = vadd.f32 %v7230_v44, %v2621_v45 }
 0xae8   :  { %2628 = vrot.lane.b32.xlu0 %v2622_v47, %s9238_s25 }
 0xaed   :  { %v2623_v48 = vpop.f32.mrf.mxu2 }
 0xaee   :  { %v2624_v3 = vadd.f32 %v7230_v44, %v2623_v48 }
 0xaf0   :  { %2630 = vrot.lane.b32.xlu2 %v2624_v3, %s9238_s25  ;;  %v8348_v49 = vpack.i.bf16 %v2622_v47, %v2624_v3  ;;  %s9247_s25 = smov 48  }
 0xaf2   :  { %7203 = vrot.lane.b32.xlu0 %v8348_v49, %s9239_s3  ;;  %s9248_s3 = smov 40  }
 0xafa   :  { %2729 = vrot.lane.b32.xlu0 %v2622_v47, %s9240_s22 }
 0xb02   :  { %2725 = vrot.lane.b32.xlu0 %v2622_v47, %s9241_s23 }
 0xb0a   :  { %2995 = vrot.lane.b32.xlu0 %v2624_v3, %s9242_s24 }
 0xb12   :  { %2872 = vrot.lane.b32.xlu0 %v2624_v3, %s9243_s26 }
 0xb1a   :  { %2989 = vrot.lane.b32.xlu0 %v2622_v47, %s9244_s27 }
 0xb22   :  { %2991 = vrot.lane.b32.xlu0 %v2624_v3, %s9244_s27 }
 0xb4a   :  { %v2631_v53 = vpop.permute.xlu2 %2630 }
 0xb4b   :  { %5842 = vmatpush.xpose.msk.msra.mxu0 %vm213_vm9, %v2631_v53 }
 0xb5a   :  { %v2629_v46 = vpop.permute.xlu0 %2628 }
 0xb5b   :  { %5843 = vmatpush.xpose.msk.msra.mxu0 %vm213_vm9, %v2629_v46 }
 0xb5e   :  { %5844 = vmatmul.msk.f32.vlgmr.msra.gmra.mxu0 %vm213_vm9, %v2622_v47 }
 0xb64   :  { %v7204_v54 = vpop.permute.xlu0 %7203 }
 0xb65   :  { %v7205_v56 = vunpack.i.l.bf16 %v7204_v54  ;;  %v7206_v57 = vunpack.i.h.bf16 %v7204_v54 }
 0xb66   :  { %5845 = vmatmul.msk.f32.gmra.mxu0 %vm213_vm9, %v2624_v3 }
 0xb67   :  { %2715 = vmatpush.msra.mxu3 %v7205_v56 }
 0xb69   :  { %2716 = vmatpush.msra.mxu3 %v7206_v57 }
 0xb6b   :  { %2859 = vmatpush.bf16.msrb.mxu3 %v2850_v0 }
 0xb6c   :  { %v2730_v15 = vpop.permute.xlu0 %2729 }
 0xb74   :  { %v2726_v16 = vpop.permute.xlu0 %2725 }
 0xb7c   :  { %v2996_v20 = vpop.permute.xlu0 %2995 }
 0xb84   :  { %v2873_v24 = vpop.permute.xlu0 %2872 }
 0xb8c   :  { %v2990_v59 = vpop.permute.xlu0 %2989 }
 0xb94   :  { %v2992_v45 = vpop.permute.xlu0 %2991 }
 0xbdb   :  { %v2657_v58 = vpop.f32.mrf.mxu0 }
 0xbdc   :  { %v2663_v60 = vmul.f32 0.35355338, %v2657_v58 }
 0xbde   :  { %v2665_v61 = vadd.f32 %v8365_v34, %v2663_v60 }
 0xbe0   :  { %v2667_v62 = vsel %vm249_vm10, %v2665_v61, -inf }
 0xbe1   :  { %2668 = vmax.xlane.f32.xlu1 %v2667_v62 }
 0xbe3   :  { %v2660_v37 = vpop.f32.mrf.mxu0 }
 0xbe4   :  { %v2664_v1 = vmul.f32 0.35355338, %v2660_v37 }
 0xbe6   :  { %v2666_v5 = vadd.f32 %v8372_v2, %v2664_v1 }
 0xbe8   :  { %v2670_v6 = vsel %vm249_vm10, %v2666_v5, -inf }
 0xbe9   :  { %2671 = vmax.xlane.f32.xlu1 %v2670_v6 }
 0xc54   :  { %v2669_v7 = vpop.xlane.xlu1 %2668 }
 0xc55   :  { %v2673_v4 = vsub.f32 %v2665_v61, %v2669_v7 }
 0xc57   :  { %v2675_v8 = vmul.f32 1.442695, %v2673_v4 }
 0xc59   :  { %7282 = vpow2.f32 %v2675_v8 }
 0xc5c   :  { %v2672_v9 = vpop.xlane.xlu1 %2671 }
 0xc5d   :  { %v2674_v10 = vsub.f32 %v2666_v5, %v2672_v9 }
 0xc5f   :  { %v7283_v63 = vpop.eup %7282  ;;  %v2677_v50 = vmul.f32 1.442695, %v2674_v10 }
 0xc60   :  { %v2679_v11 = vsel %vm249_vm10, %v7283_v63, 0.0 }
 0xc61   :  { %7284 = vpow2.f32 %v2677_v50  ;;  %2680 = vadd.xlane.f32.xlu1 %v2679_v11 }
 0xc67   :  { %v7285_v12 = vpop.eup %7284 }
 0xc68   :  { %v2682_v13 = vsel %vm249_vm10, %v7285_v12, 0.0 }
 0xc69   :  { %2683 = vadd.xlane.f32.xlu2 %v2682_v13 }
 0xc7a   :  { %2731 = vrot.lane.b32.xlu1 %v2624_v3, %s9240_s22 }
 0xc81   :  { %2870 = vrot.lane.b32.xlu2 %v2622_v47, %s9243_s26 }
 0xc82   :  { %2727 = vrot.lane.b32.xlu1 %v2624_v3, %s9241_s23 }
 0xc8a   :  { %2993 = vrot.lane.b32.xlu1 %v2622_v47, %s9242_s24 }
 0xc92   :  { %2866 = vrot.lane.b32.xlu1 %v2622_v47, %s9245_s29 }
 0xc9a   :  { %2868 = vrot.lane.b32.xlu1 %v2624_v3, %s9245_s29 }
 0xcd4   :  { %v2681_v55 = vpop.xlane.xlu1 %2680 }
 0xcd5   :  { %7286 = vrcp.f32 %v2681_v55 }
 0xcdb   :  { %v7287_v17 = vpop.eup %7286 }
 0xcdc   :  { %v2687_v18 = vmul.f32 %v7287_v17, %v7283_v63  ;;  %v2684_v19 = vpop.xlane.xlu2 %2683 }
 0xcdd   :  { %7288 = vrcp.f32 %v2684_v19 }
 0xcde   :  { %5846 = vmatmul.msk.f32.vlgmr.msra.gmra.mxu3 %vm249_vm10, %v2687_v18 }
 0xcdf   :  { %5863 = vmatpush.xpose.msk.msra.mxu3 %vm213_vm9, %v2996_v20 }
 0xce3   :  { %v7289_v21 = vpop.eup %7288 }
 0xce4   :  { %v2688_v22 = vmul.f32 %v7289_v21, %v7285_v12  ;;  %v2871_v25 = vpop.permute.xlu2 %2870 }
 0xce6   :  { %5847 = vmatmul.msk.f32.gmra.mxu3 %vm249_vm10, %v2688_v22 }
 0xcec   :  { %v2732_v23 = vpop.permute.xlu1 %2731 }
 0xced   :  { %5848 = vmatpush.xpose.msk.msra.mxu1 %vm213_vm9, %v2732_v23 }
 0xcf1   :  { %5849 = vmatpush.xpose.msk.msra.mxu1 %vm213_vm9, %v2730_v15 }
 0xcf4   :  { %v2728_v51 = vpop.permute.xlu1 %2727  ;;  %5850 = vmatmul.msk.f32.vlgmr.msra.gmra.mxu1 %vm213_vm9, %v2726_v16 }
 0xcf5   :  { %5856 = vmatpush.xpose.msk.msrb.mxu1 %vm213_vm9, %v2873_v24 }
 0xcf9   :  { %5857 = vmatpush.xpose.msk.msrb.mxu1 %vm213_vm9, %v2871_v25 }
 0xcfc   :  { %v2994_v26 = vpop.permute.xlu1 %2993  ;;  %5851 = vmatmul.msk.f32.gmra.mxu1 %vm213_vm9, %v2728_v51 }
 0xcfd   :  { %5864 = vmatpush.xpose.msk.msra.mxu3 %vm213_vm9, %v2994_v26 }
 0xd04   :  { %v2867_v27 = vpop.permute.xlu1 %2866 }
 0xd05   :  { %5858 = vmatmul.msk.f32.vlgmr.msrb.gmra.mxu1 %vm213_vm9, %v2867_v27 }
 0xd0c   :  { %v2869_v28 = vpop.permute.xlu1 %2868 }
 0xd0d   :  { %5859 = vmatmul.msk.f32.gmra.mxu1 %vm213_vm9, %v2869_v28 }
 0xd61   :  { %v2718_v29 = vpop.f32.mrf.mxu3 }
 0xd69   :  { %v2721_v30 = vpop.f32.mrf.mxu3 }
 0xd6a   :  { %v2724_v52 = vpack.c.bf16 %v2721_v30, %v2718_v29 }
 0xd6c   :  { %5855 = vmatmul.msk.bf16.vlgmr.msrb.gmra.mxu3 %vm213_vm9, %v2724_v52 }
 0xd71   :  { %v2758_v31 = vpop.f32.mrf.mxu1 }
 0xd72   :  { %v2764_v32 = vmul.f32 0.35355338, %v2758_v31 }
 0xd74   :  { %v2766_v33 = vadd.f32 %v8365_v34, %v2764_v32 }
 0xd76   :  { %v2768_v40 = vsel %vm249_vm10, %v2766_v33, -inf }
 0xd77   :  { %2769 = vmax.xlane.f32.xlu0 %v2768_v40 }
 0xd79   :  { %v2761_v35 = vpop.f32.mrf.mxu1 }
 0xd7a   :  { %v2765_v36 = vmul.f32 0.35355338, %v2761_v35 }
 0xd7c   :  { %5865 = vmatmul.msk.f32.vlgmr.msra.gmra.mxu3 %vm213_vm9, %v2990_v59  ;;  %v2767_v38 = vadd.f32 %v8372_v2, %v2765_v36 }
 0xd7e   :  { %v2771_v43 = vsel %vm249_vm10, %v2767_v38, -inf }
 0xd7f   :  { %2772 = vmax.xlane.f32.xlu1 %v2771_v43 }
 0xd82   :  { %v2899_v44 = vpop.f32.mrf.mxu1 }
 0xd83   :  { %v2905_v47 = vmul.f32 0.35355338, %v2899_v44 }
 0xd84   :  { %5866 = vmatmul.msk.f32.gmra.mxu3 %vm213_vm9, %v2992_v45 }
 0xd85   :  { %v2907_v48 = vadd.f32 %v8365_v34, %v2905_v47 }
 0xd87   :  { %v2909_v3 = vsel %vm249_vm10, %v2907_v48, -inf }
 0xd88   :  { %2910 = vmax.xlane.f32.xlu2 %v2909_v3 }
 0xd8a   :  { %v2902_v53 = vpop.f32.mrf.mxu1 }
 0xd8b   :  { %v2906_v46 = vmul.f32 0.35355338, %v2902_v53 }
 0xd8d   :  { %v2908_v54 = vadd.f32 %v8372_v2, %v2906_v46 }
 0xd8f   :  { %v2912_v56 = vsel %vm249_vm10, %v2908_v54, -inf }
 0xd90   :  { %2913 = vmax.xlane.f32.xlu1 %v2912_v56 }
 0xda9   :  { %7208 = vrot.lane.b32.xlu1 %v8348_v49, %s9246_s1 }
 0xdea   :  { %v2770_v57 = vpop.xlane.xlu0 %2769 }
 0xdeb   :  { %v2774_v58 = vsub.f32 %v2766_v33, %v2770_v57  ;;  %v5826_v57 = vld [vmem:[%s9186_s7 + $0x18] sm:$0xf] }
 0xded   :  { %v2776_v60 = vmul.f32 1.442695, %v2774_v58 }
 0xdef   :  { %7290 = vpow2.f32 %v2776_v60  ;;  %v8413_v61 = vpop.f32.mrf.mxu3  ;;  %v2971_v60 = vsel %vm412_vm11, %v5826_v57, 0 }
 0xdf2   :  { %v2773_v62 = vpop.xlane.xlu1 %2772 }
 0xdf3   :  { %v2775_v37 = vsub.f32 %v2767_v38, %v2773_v62 }
 0xdf5   :  { %v7291_v1 = vpop.eup %7290  ;;  %v2778_v5 = vmul.f32 1.442695, %v2775_v37 }
 0xdf6   :  { %v2780_v6 = vsel %vm249_vm10, %v7291_v1, 0.0 }
 0xdf7   :  { %7292 = vpow2.f32 %v2778_v5  ;;  %2781 = vadd.xlane.f32.xlu2 %v2780_v6  ;;  %v8416_v7 = vpop.f32.mrf.mxu3 }
 0xdfb   :  { %v2911_v4 = vpop.xlane.xlu2 %2910 }
 0xdfc   :  { %v2915_v8 = vsub.f32 %v2907_v48, %v2911_v4 }
 0xdfd   :  { %v7293_v9 = vpop.eup %7292 }
 0xdfe   :  { %v2917_v10 = vmul.f32 1.442695, %v2915_v8  ;;  %v2783_v63 = vsel %vm249_vm10, %v7293_v9, 0.0 }
 0xdff   :  { %2784 = vadd.xlane.f32.xlu0 %v2783_v63  ;;  %v3022_v50 = vpop.f32.mrf.mxu3 }
 0xe00   :  { %7294 = vpow2.f32 %v2917_v10  ;;  %v3028_v11 = vmul.f32 0.35355338, %v3022_v50 }
 0xe02   :  { %v3030_v12 = vadd.f32 %v8365_v34, %v3028_v11 }
 0xe03   :  { %v2914_v13 = vpop.xlane.xlu1 %2913 }
 0xe04   :  { %v2916_v14 = vsub.f32 %v2908_v54, %v2914_v13  ;;  %v3032_v15 = vsel %vm249_vm10, %v3030_v12, -inf  ;;  %v5825_v54 = vld [vmem:[%s9186_s7 + $0x14] sm:$0xf]  ;;  %v5827_v13 = vld [vmem:[%s9186_s7 + $0x1c] sm:$0xf] }
 0xe05   :  { %v2830_v56 = vsel %vm412_vm11, %v5825_v54, 0  ;;  %v7013_v54 = vld [vmem:[%s9190_s11 + $0x18c] sm:$0xf] }
 0xe06   :  { %v7295_v0 = vpop.eup %7294  ;;  %v2919_v18 = vmul.f32 1.442695, %v2916_v14  ;;  %2839 = vmatpush.bf16.msrb.mxu0 %v2830_v56  ;;  %v3094_v14 = vsel %vm412_vm11, %v5827_v13, 0  ;;  %v5983_v56 = vld [vmem:[%s9190_s11 + $0x1c8] sm:$0xf0] }
 0xe07   :  { %3033 = vmax.xlane.f32.xlu0 %v3032_v15  ;;  %v3025_v16 = vpop.f32.mrf.mxu3  ;;  %v2921_v55 = vsel %vm249_vm10, %v7295_v0, 0.0  ;;  %v7022_v13 = vld [vmem:[%s9190_s11 + $0x1cc] sm:$0xf0] }
 0xe08   :  { %v3029_v17 = vmul.f32 0.35355338, %v3025_v16  ;;  %2922 = vadd.xlane.f32.xlu2 %v2921_v55  ;;  %7296 = vpow2.f32 %v2919_v18 }
 0xe0a   :  { %v3031_v19 = vadd.f32 %v8372_v2, %v3029_v17  ;;  %2980 = vmatpush.bf16.msra.mxu0 %v2971_v60  ;;  %v5909_v60 = vld [vmem:[%s9190_s11 + $0x100] sm:$0xf] }
 0xe0c   :  { %v3035_v20 = vsel %vm249_vm10, %v3031_v19, -inf }
 0xe0e   :  { %v7297_v21 = vpop.eup %7296 }
 0xe0f   :  { %3036 = vmax.xlane.f32.xlu0 %v3035_v20  ;;  %v2924_v34 = vsel %vm249_vm10, %v7297_v21, 0.0 }
 0xe17   :  { %2925 = vadd.xlane.f32.xlu0 %v2924_v34 }
 0xe1b   :  { %v7209_v22 = vpop.permute.xlu1 %7208 }
 0xe1c   :  { %v7210_v23 = vunpack.i.l.bf16 %v7209_v22  ;;  %v7211_v24 = vunpack.i.h.bf16 %v7209_v22 }
 0xe1e   :  { %2816 = vmatpush.msra.mxu2 %v7210_v23 }
 0xe20   :  { %2817 = vmatpush.msra.mxu2 %v7211_v24  ;;  %7213 = vrot.lane.b32.xlu2 %v8348_v49, %s9247_s25 }
 0xe6a   :  { %v2782_v51 = vpop.xlane.xlu2 %2781 }
 0xe6b   :  { %7298 = vrcp.f32 %v2782_v51 }
 0xe71   :  { %v7299_v25 = vpop.eup %7298 }
 0xe72   :  { %v2788_v2 = vmul.f32 %v7299_v25, %v7291_v1  ;;  %v2785_v26 = vpop.xlane.xlu0 %2784 }
 0xe73   :  { %7300 = vrcp.f32 %v2785_v26 }
 0xe74   :  { %5852 = vmatmul.msk.f32.vlgmr.msra.gmra.mxu2 %vm249_vm10, %v2788_v2 }
 0xe79   :  { %v7301_v27 = vpop.eup %7300 }
 0xe7a   :  { %v3034_v28 = vpop.xlane.xlu0 %3033  ;;  %v2789_v29 = vmul.f32 %v7301_v27, %v7293_v9 }
 0xe7b   :  { %v3038_v30 = vsub.f32 %v3030_v12, %v3034_v28  ;;  %v2923_v52 = vpop.xlane.xlu2 %2922 }
 0xe7c   :  { %5853 = vmatmul.msk.f32.gmra.mxu2 %vm249_vm10, %v2789_v29  ;;  %7302 = vrcp.f32 %v2923_v52 }
 0xe7d   :  { %v3040_v31 = vmul.f32 1.442695, %v3038_v30 }
 0xe7f   :  { %7304 = vpow2.f32 %v3040_v31 }
 0xe82   :  { %v3037_v32 = vpop.xlane.xlu0 %3036  ;;  %v7303_v59 = vpop.eup %7302 }
 0xe83   :  { %v3039_v33 = vsub.f32 %v3031_v19, %v3037_v32  ;;  %v7214_v40 = vpop.permute.xlu2 %7213  ;;  %v2929_v45 = vmul.f32 %v7303_v59, %v7295_v0 }
 0xe84   :  { %v7215_v35 = vunpack.i.l.bf16 %v7214_v40  ;;  %v7216_v43 = vunpack.i.h.bf16 %v7214_v40 }
 0xe85   :  { %v7305_v36 = vpop.eup %7304  ;;  %v3042_v38 = vmul.f32 1.442695, %v3039_v33 }
 0xe86   :  { %2957 = vmatpush.msrb.mxu2 %v7215_v35  ;;  %v3044_v44 = vsel %vm249_vm10, %v7305_v36, 0.0 }
 0xe87   :  { %7306 = vpow2.f32 %v3042_v38  ;;  %3045 = vadd.xlane.f32.xlu0 %v3044_v44  ;;  %v7020_v38 = vld [vmem:[%s9190_s11 + $0x1bc] sm:$0xf0] }
 0xe88   :  { %2958 = vmatpush.msrb.mxu2 %v7216_v43  ;;  %v7012_v43 = vld [vmem:[%s9190_s11 + $0x184] sm:$0xf] }
 0xe89   :  { %5860 = vmatmul.msk.f32.vlgmr.msrb.gmra.mxu2 %vm249_vm10, %v2929_v45  ;;  %v5975_v45 = vld [vmem:[%s9190_s11 + $0x1c0] sm:$0xf0] }
 0xe8a   :  { %v2926_v47 = vpop.xlane.xlu0 %2925  ;;  %3103 = vmatpush.bf16.msra.mxu2 %v3094_v14  ;;  %v7014_v14 = vld [vmem:[%s9190_s11 + $0x194] sm:$0xf] }
 0xe8b   :  { %7308 = vrcp.f32 %v2926_v47  ;;  %v5981_v47 = vld [vmem:[%s9190_s11 + $0x188] sm:$0xf] }
 0xe8d   :  { %v7307_v48 = vpop.eup %7306 }
 0xe8e   :  { %v3047_v3 = vsel %vm249_vm10, %v7307_v48, 0.0 }
 0xe8f   :  { %3048 = vadd.xlane.f32.xlu1 %v3047_v3 }
 0xe91   :  { %v7309_v53 = vpop.eup %7308 }
 0xe92   :  { %v2930_v46 = vmul.f32 %v7309_v53, %v7297_v21  ;;  %v7231_v21 = vld [vmem:[%s9187_s8 + $0x1] ss:$0 sm:$0xff]  ;;  %v5978_v53 = vor.u32 %v7012_v43, %v5975_v45 }
 0xe94   :  { %5861 = vmatmul.msk.f32.gmra.mxu2 %vm249_vm10, %v2930_v46  ;;  %3433 = vmatpush.bf16.msrb.mxu3 %v5978_v53 }
 0xe9b   :  { %7218 = vrot.lane.b32.xlu0 %v8348_v49, %s9248_s3 }
 0xef7   :  { %v2819_v58 = vpop.f32.mrf.mxu2 }
 0xefa   :  { %v3046_v49 = vpop.xlane.xlu0 %3045 }
 0xefb   :  { %7310 = vrcp.f32 %v3046_v49 }
 0xeff   :  { %v2822_v62 = vpop.f32.mrf.mxu2 }
 0xf00   :  { %v2825_v37 = vpack.c.bf16 %v2822_v62, %v2819_v58  ;;  %v5986_v58 = vor.u32 %v7013_v54, %v5983_v56  ;;  %v7004_v62 = vld [vmem:[%s9190_s11 + $0x13c] sm:$0xf0] }
 0xf01   :  { %v7311_v6 = vpop.eup %7310 }
 0xf02   :  { %5854 = vmatmul.msk.bf16.vlgmr.msrb.gmra.mxu0 %vm213_vm9, %v2825_v37  ;;  %v3049_v1 = vpop.xlane.xlu1 %3048  ;;  %v3052_v10 = vmul.f32 %v7311_v6, %v7305_v36  ;;  %v5973_v36 = vld [vmem:[%s9190_s11 + $0x180] sm:$0xf]  ;;  %v6996_v37 = vld [vmem:[%s9190_s11 + $0x104] sm:$0xf]  ;;  %3461 = vmatpush.bf16.msrb.mxu2 %v5986_v58  ;;  %v5917_v6 = vld [vmem:[%s9190_s11 + $0x108] sm:$0xf] }
 0xf03   :  { %7312 = vrcp.f32 %v3049_v1  ;;  %v5974_v44 = vor.u32 %v7020_v38, %v5973_v36  ;;  %v5910_v1 = vor.u32 %v7004_v62, %v5909_v60  ;;  %v6005_v58 = vld [vmem:[%s9190_s11 + $0x1a0] sm:$0xf]  ;;  %v7016_v60 = vld [vmem:[%s9190_s11 + $0x1a4] sm:$0xf] }
 0xf04   :  { %v6007_v62 = vld [vmem:[%s9190_s11 + $0x1e0] sm:$0xf0] }
 0xf05   :  { %3419 = vmatpush.bf16.msrb.mxu0 %v5974_v44 }
 0xf09   :  { %v7313_v63 = vpop.eup %7312  ;;  %3420 = vmatpush.bf16.msrb.mxu0 %v5910_v1  ;;  %v7025_v1 = vld [vmem:[%s9190_s11 + $0x1e4] sm:$0xf0] }
 0xf0a   :  { %v3053_v12 = vmul.f32 %v7313_v63, %v7307_v48  ;;  %v7021_v48 = vld [vmem:[%s9190_s11 + $0x1c4] sm:$0xf0] }
 0xf0b   :  { %v5982_v46 = vor.u32 %v7021_v48, %v5981_v47  ;;  %v7232_v47 = vld [vmem:[%s9188_s9 + $0x1] ss:$0 sm:$0xff] }
 0xf0c   :  { %v2960_v8 = vpop.f32.mrf.mxu2 }
 0xf0d   :  { %v7219_v5 = vpop.permute.xlu0 %7218 }
 0xf0e   :  { %v7220_v4 = vunpack.i.l.bf16 %v7219_v5  ;;  %v7221_v9 = vunpack.i.h.bf16 %v7219_v5  ;;  %v5911_v5 = vld [vmem:[%s9190_s11 + $0x140] sm:$0xf0] }
 0xf10   :  { %3080 = vmatpush.msra.mxu1 %v7220_v4  ;;  %v5914_v4 = vor.u32 %v6996_v37, %v5911_v5  ;;  %v7017_v5 = vld [vmem:[%s9190_s11 + $0x1ac] sm:$0xf] }
 0xf12   :  { %3081 = vmatpush.msra.mxu1 %v7221_v9  ;;  %v6997_v9 = vld [vmem:[%s9190_s11 + $0x10c] sm:$0xf]  ;;  %3434 = vmatpush.bf16.msrb.mxu3 %v5914_v4 }
 0xf13   :  { %5867 = vmatmul.msk.f32.vlgmr.msra.gmra.mxu1 %vm249_vm10, %v3052_v10  ;;  %v5919_v10 = vld [vmem:[%s9190_s11 + $0x148] sm:$0xf0] }
 0xf14   :  { %3447 = vmatpush.bf16.msrb.mxu1 %v5982_v46  ;;  %v7233_v46 = vld [vmem:[%s9189_s10 + $0x1] ss:$0 sm:$0xff] }
 0xf17   :  { %v2963_v50 = vpop.f32.mrf.mxu2 }
 0xf18   :  { %v2966_v11 = vpack.c.bf16 %v2963_v50, %v2960_v8  ;;  %v7005_v8 = vld [vmem:[%s9190_s11 + $0x144] sm:$0xf0]  ;;  %v5922_v50 = vor.u32 %v6997_v9, %v5919_v10  ;;  %v6010_v9 = vor.u32 %v7016_v60, %v6007_v62  ;;  %v5941_v10 = vld [vmem:[%s9190_s11 + $0x120] sm:$0xf] }
 0xf19   :  { %v5918_v63 = vor.u32 %v7005_v8, %v5917_v6  ;;  %v6015_v6 = vld [vmem:[%s9190_s11 + $0x1e8] sm:$0xf0]  ;;  %v7040_v60 = vld [vmem:[%s9191_s13 + $0x460] sm:$0xff] }
 0xf1a   :  { %5862 = vmatmul.msk.bf16.vlgmr.msra.gmra.mxu0 %vm213_vm9, %v2966_v11  ;;  %3462 = vmatpush.bf16.msrb.mxu2 %v5922_v50  ;;  %v7056_v62 = vld [vmem:[%s9191_s13 + $0x4e0] sm:$0xff] }
 0xf1b   :  { %5868 = vmatmul.msk.f32.gmra.mxu1 %vm249_vm10, %v3053_v12  ;;  %v5989_v12 = vld [vmem:[%s9190_s11 + $0x190] sm:$0xf] }
 0xf1c   :  { %3448 = vmatpush.bf16.msrb.mxu1 %v5918_v63  ;;  %v7008_v63 = vld [vmem:[%s9190_s11 + $0x15c] sm:$0xf0] }
 0xf7f   :  { %v2841_v55 = vpop.f32.mrf.mxu0 }
 0xf80   :  { %v2862_v19 = vadd.f32 %v8413_v61, %v2841_v55  ;;  %v5997_v55 = vld [vmem:[%s9190_s11 + $0x198] sm:$0xf] }
 0xf87   :  { %v2843_v17 = vpop.f32.mrf.mxu0 }
 0xf88   :  { %v2864_v51 = vadd.f32 %v8416_v7, %v2843_v17  ;;  %v7023_v17 = vld [vmem:[%s9190_s11 + $0x1d4] sm:$0xf0] }
 0xf90   :  { %v3083_v0 = vpop.f32.mrf.mxu1 }
 0xf97   :  { %v2982_v18 = vpop.f32.mrf.mxu0 }
 0xf98   :  { %v3086_v15 = vpop.f32.mrf.mxu1  ;;  %v2987_v20 = vadd.f32 %v2982_v18, %v2862_v19  ;;  %v5998_v19 = vor.u32 %v7023_v17, %v5997_v55  ;;  %v5942_v55 = vor.u32 %v7008_v63, %v5941_v10  ;;  %v7038_v10 = vld [vmem:[%s9191_s13 + $0x450] sm:$0xff]  ;;  %v7029_v63 = vld [vmem:[%s9191_s13 + $0x408] sm:$0xff] }
 0xf99   :  { %v3089_v16 = vpack.c.bf16 %v3086_v15, %v3083_v0  ;;  %v5990_v15 = vor.u32 %v7022_v13, %v5989_v12  ;;  %v7000_v12 = vld [vmem:[%s9190_s11 + $0x124] sm:$0xf] }
 0xf9a   :  { %3503 = vmatpush.bf16.msra.mxu1 %v5998_v19  ;;  %v5943_v13 = vld [vmem:[%s9190_s11 + $0x160] sm:$0xf0] }
 0xf9b   :  { %5869 = vmatmul.msk.bf16.vlgmr.msra.gmra.mxu2 %vm213_vm9, %v3089_v16  ;;  %v5991_v16 = vld [vmem:[%s9190_s11 + $0x1d0] sm:$0xf0]  ;;  %3475 = vmatpush.bf16.msra.mxu0 %v5990_v15  ;;  %v7001_v15 = vld [vmem:[%s9190_s11 + $0x12c] sm:$0xf]  ;;  %v5946_v17 = vor.u32 %v7000_v12, %v5943_v13  ;;  %v7028_v13 = vld [vmem:[%s9191_s13 + $0x400] sm:$0xff] }
 0xf9c   :  { %v5994_v18 = vor.u32 %v7014_v14, %v5991_v16  ;;  %v5949_v14 = vld [vmem:[%s9190_s11 + $0x128] sm:$0xf]  ;;  %v5951_v16 = vld [vmem:[%s9190_s11 + $0x168] sm:$0xf0] }
 0xf9d   :  { %v5954_v19 = vor.u32 %v7001_v15, %v5951_v16  ;;  %v7053_v12 = vld [vmem:[%s9191_s13 + $0x4c8] sm:$0xff]  ;;  %v7083_v15 = vld [vmem:[%s9191_s13 + $0x5b8] sm:$0xff]  ;;  %v7036_v16 = vld [vmem:[%s9191_s13 + $0x440] sm:$0xff] }
 0xf9e   :  { %3489 = vmatpush.bf16.msra.mxu3 %v5994_v18 }
 0xf9f   :  { %v2984_v24 = vpop.f32.mrf.mxu0 }
 0xfa0   :  { %v2988_v2 = vadd.f32 %v2984_v24, %v2864_v51  ;;  %v7006_v51 = vld [vmem:[%s9190_s11 + $0x14c] sm:$0xf0] }
0x101e   :  { %v3105_v34 = vpop.f32.mrf.mxu2 }
0x101f   :  { %v3110_v22 = vadd.f32 %v3105_v34, %v2987_v20  ;;  %v7015_v20 = vld [vmem:[%s9190_s11 + $0x19c] sm:$0xf]  ;;  %v5925_v34 = vld [vmem:[%s9190_s11 + $0x110] sm:$0xf] }
0x1021   :  { %v3117_v23 = vadd.f32 %v7231_v21, %v3110_v22 }
0x1023   :  { %v3119_v25 = vadd.f32 %v3117_v23, %v8336_v41 }
0x1025   :  { %v3125_v26 = vsel %vm189_vm8, %v3119_v25, 0.0 }
0x1026   :  { %v3107_v27 = vpop.f32.mrf.mxu2  ;;  %3126 = vadd.xlane.f32.xlu2 %v3125_v26  ;;  %v5926_v26 = vor.u32 %v7006_v51, %v5925_v34  ;;  %v7018_v34 = vld [vmem:[%s9190_s11 + $0x1b4] sm:$0xf]  ;;  %v7019_v51 = vld [vmem:[%s9190_s11 + $0x1bc] sm:$0xf] }
0x1027   :  { %v3111_v28 = vadd.f32 %v3107_v27, %v2988_v2  ;;  %v5927_v27 = vld [vmem:[%s9190_s11 + $0x150] sm:$0xf0] }
0x1028   :  { %3476 = vmatpush.bf16.msra.mxu0 %v5926_v26 }
0x1029   :  { %v3118_v61 = vadd.f32 %v7231_v21, %v3111_v28  ;;  %v5999_v21 = vld [vmem:[%s9190_s11 + $0x1d8] sm:$0xf0]  ;;  %v5933_v28 = vld [vmem:[%s9190_s11 + $0x118] sm:$0xf] }
0x102a   :  { %v6002_v24 = vor.u32 %v7015_v20, %v5999_v21  ;;  %v6021_v20 = vld [vmem:[%s9190_s11 + $0x1b0] sm:$0xf] }
0x102b   :  { %v3120_v29 = vadd.f32 %v3118_v61, %v8338_v42  ;;  %v7007_v61 = vld [vmem:[%s9190_s11 + $0x154] sm:$0xf0]  ;;  %v7026_v21 = vld [vmem:[%s9190_s11 + $0x1ec] sm:$0xf0] }
0x102c   :  { %3517 = vmatpush.bf16.msra.mxu2 %v6002_v24  ;;  %v7027_v24 = vld [vmem:[%s9190_s11 + $0x1f4] sm:$0xf0] }
0x102d   :  { %v3128_v30 = vsel %vm189_vm8, %v3120_v29, 0.0 }
0x102e   :  { %3129 = vadd.xlane.f32.xlu0 %v3128_v30  ;;  %v5934_v30 = vor.u32 %v7007_v61, %v5933_v28  ;;  %v7010_v28 = vld [vmem:[%s9190_s11 + $0x16c] sm:$0xf0] }
0x1030   :  { %3504 = vmatpush.bf16.msra.mxu1 %v5934_v30  ;;  %v7002_v30 = vld [vmem:[%s9190_s11 + $0x134] sm:$0xf] }
0x1099   :  { %v3127_v52 = vpop.xlane.xlu2 %3126 }
0x109a   :  { %v3131_v31 = vmul.f32 %v3127_v52, %v7640_v39  ;;  %v6999_v52 = vld [vmem:[%s9190_s11 + $0x11c] sm:$0xf] }
0x109c   :  { %v8462_v32 = vsub.f32 %v3119_v25, %v3131_v31  ;;  %v6998_v25 = vld [vmem:[%s9190_s11 + $0x114] sm:$0xf]  ;;  %v5935_v31 = vld [vmem:[%s9190_s11 + $0x158] sm:$0xf0] }
0x109e   :  { %v3135_v41 = vmul.f32 %v8462_v32, %v8462_v32 }
0x10a0   :  { %v3137_v7 = vsel %vm189_vm8, %v3135_v41, 0.0 }
0x10a1   :  { %v3130_v33 = vpop.xlane.xlu0 %3129  ;;  %3138 = vadd.xlane.f32.xlu1 %v3137_v7  ;;  %v5938_v7 = vor.u32 %v6999_v52, %v5935_v31  ;;  %v5959_v52 = vld [vmem:[%s9190_s11 + $0x170] sm:$0xf0]  ;;  %v5965_v31 = vld [vmem:[%s9190_s11 + $0x138] sm:$0xf] }
0x10a2   :  { %v3132_v40 = vmul.f32 %v3130_v33, %v7640_v39 }
0x10a3   :  { %3518 = vmatpush.bf16.msra.mxu2 %v5938_v7  ;;  %v7003_v7 = vld [vmem:[%s9190_s11 + $0x13c] sm:$0xf] }
0x10a4   :  { %v8468_v59 = vsub.f32 %v3120_v29, %v3132_v40  ;;  %v5930_v29 = vor.u32 %v6998_v25, %v5927_v27  ;;  %v6031_v25 = vld [vmem:[%s9190_s11 + $0x1f8] sm:$0xf0]  ;;  %v5957_v27 = vld [vmem:[%s9190_s11 + $0x130] sm:$0xf] }
0x10a6   :  { %v3136_v42 = vmul.f32 %v8468_v59, %v8468_v59  ;;  %3490 = vmatpush.bf16.msra.mxu3 %v5930_v29  ;;  %v6034_v29 = vor.u32 %v7019_v51, %v6031_v25  ;;  %v7080_v51 = vld [vmem:[%s9191_s13 + $0x5a0] sm:$0xff]  ;;  %v7073_v25 = vld [vmem:[%s9191_s13 + $0x568] sm:$0xff] }
0x10a8   :  { %v3140_v35 = vsel %vm189_vm8, %v3136_v42, 0.0 }
0x10a9   :  { %3141 = vadd.xlane.f32.xlu2 %v3140_v35 }
0x1114   :  { %v3139_v3 = vpop.xlane.xlu1 %3138 }
0x1115   :  { %v3143_v57 = vmul.f32 %v3139_v3, %v7640_v39 }
0x1117   :  { %v8507_v49 = vadd.f32 1e-05, %v3143_v57 }
0x1119   :  { %7314 = vrsqrt.f32 %v8507_v49  ;;  %vm3153_vm11 = vweird.f32 %v8507_v49 }
0x111c   :  { %v3142_v11 = vpop.xlane.xlu2 %3141 }
0x111d   :  { %v3144_v0 = vmul.f32 %v3142_v11, %v7640_v39  ;;  %v6018_v11 = vor.u32 %v7017_v5, %v6015_v6  ;;  %v7039_v5 = vld [vmem:[%s9191_s13 + $0x458] sm:$0xff] }
0x111e   :  { %v7055_v6 = vld [vmem:[%s9191_s13 + $0x4d8] sm:$0xff] }
0x111f   :  { %v7315_v22 = vpop.eup %7314  ;;  %v3146_v23 = vadd.f32 1e-05, %v3144_v0  ;;  %v7009_v0 = vld [vmem:[%s9190_s11 + $0x164] sm:$0xf0] }
0x1120   :  { %v3148_v2 = vmul.f32 %v7315_v22, %v8507_v49  ;;  %vm3154_vm9 = vweird.f32 %v7315_v22  ;;  %v5950_v18 = vor.u32 %v7009_v0, %v5949_v14  ;;  %v7044_v14 = vld [vmem:[%s9191_s13 + $0x480] sm:$0xff]  ;;  %v7067_v0 = vld [vmem:[%s9191_s13 + $0x538] sm:$0xff] }
0x1121   :  { %7316 = vrsqrt.f32 %v3146_v23  ;;  %vm3155_vm13 = vmor %vm3153_vm11, %vm3154_vm9  ;;  %vm3163_vm15 = vweird.f32 %v3146_v23 }
0x1122   :  { %v3149_v41 = vmul.f32 %v7315_v22, %v3148_v2  ;;  %v6022_v2 = vor.u32 %v7026_v21, %v6021_v20  ;;  %v7082_v20 = vld [vmem:[%s9191_s13 + $0x5b0] sm:$0xff] }
0x1123   :  { %v7074_v21 = vld [vmem:[%s9191_s13 + $0x570] sm:$0xff] }
0x1124   :  { %v3150_v33 = vmul.f32 0.5, %v3149_v41  ;;  %v7011_v41 = vld [vmem:[%s9190_s11 + $0x174] sm:$0xf0] }
0x1126   :  { %v3151_v40 = vsub.f32 1.5, %v3150_v33  ;;  %v5967_v33 = vld [vmem:[%s9190_s11 + $0x178] sm:$0xf0] }
0x1127   :  { %v7317_v42 = vpop.eup %7316 }
0x1128   :  { %v3152_v35 = vmul.f32 %v7315_v22, %v3151_v40  ;;  %v3158_v36 = vmul.f32 %v7317_v42, %v3146_v23  ;;  %vm3164_vm14 = vweird.f32 %v7317_v42  ;;  %v6029_v23 = vld [vmem:[%s9190_s11 + $0x1b8] sm:$0xf]  ;;  %v5958_v40 = vor.u32 %v7010_v28, %v5957_v27  ;;  %v7072_v28 = vld [vmem:[%s9191_s13 + $0x560] sm:$0xff] }
0x1129   :  { %vm3165_vm0 = vmor %vm3163_vm15, %vm3164_vm14  ;;  %v6030_v61 = vor.u32 %v7027_v24, %v6029_v23  ;;  %v7081_v23 = vld [vmem:[%s9191_s13 + $0x5a8] sm:$0xff]  ;;  %v7064_v24 = vld [vmem:[%s9191_s13 + $0x520] sm:$0xff]  ;;  %vm5116_vm15 = vcmask 1024  }
0x112a   :  { %v3159_v38 = vmul.f32 %v7317_v42, %v3158_v36  ;;  %v3156_v43 = vsel %vm3155_vm13, %v7315_v22, %v3152_v35  ;;  %v6023_v22 = vld [vmem:[%s9190_s11 + $0x1f0] sm:$0xf0]  ;;  %v5966_v35 = vor.u32 %v7011_v41, %v5965_v31  ;;  %v5970_v36 = vor.u32 %v7003_v7, %v5967_v33  ;;  %v7079_v27 = vld [vmem:[%s9191_s13 + $0x598] sm:$0xff]  ;;  %v7061_v41 = vld [vmem:[%s9191_s13 + $0x508] sm:$0xff] }
0x112b   :  { %v3167_v48 = vmul.f32 %v3156_v43, %v8462_v32  ;;  %v7024_v32 = vld [vmem:[%s9190_s11 + $0x1dc] sm:$0xf0]  ;;  %v6026_v26 = vor.u32 %v7018_v34, %v6023_v22  ;;  %v7051_v43 = vld [vmem:[%s9191_s13 + $0x4b8] sm:$0xff]  ;;  %v7090_v34 = vld [vmem:[%s9191_s13 + $0x5f0] sm:$0xff] }
0x112c   :  { %v3160_v44 = vmul.f32 0.5, %v3159_v38  ;;  %v6006_v8 = vor.u32 %v7024_v32, %v6005_v58  ;;  %v7035_v38 = vld [vmem:[%s9191_s13 + $0x438] sm:$0xff]  ;;  %v7032_v58 = vld [vmem:[%s9191_s13 + $0x420] sm:$0xff]  ;;  %v7065_v22 = vld [vmem:[%s9191_s13 + $0x528] sm:$0xff] }
0x112d   :  { %v3172_v54 = vmul.f32 %v7232_v47, %v3167_v48  ;;  %v7050_v48 = vld [vmem:[%s9191_s13 + $0x4b0] sm:$0xff]  ;;  %v7048_v32 = vld [vmem:[%s9191_s13 + $0x4a0] sm:$0xff]  ;;  %v7087_v31 = vld [vmem:[%s9191_s13 + $0x5d8] sm:$0xff] }
0x112e   :  { %v3161_v45 = vsub.f32 1.5, %v3160_v44  ;;  %v7043_v44 = vld [vmem:[%s9191_s13 + $0x478] sm:$0xff]  ;;  %v7077_v7 = vld [vmem:[%s9191_s13 + $0x588] sm:$0xff]  ;;  %v7070_v33 = vld [vmem:[%s9191_s13 + $0x550] sm:$0xff] }
0x112f   :  { %v8599_v37 = vadd.f32 %v7233_v46, %v3172_v54  ;;  %v7049_v54 = vld [vmem:[%s9191_s13 + $0x4a8] sm:$0xff] }
0x1130   :  { %v3162_v3 = vmul.f32 %v7317_v42, %v3161_v45  ;;  %v7059_v45 = vld [vmem:[%s9191_s13 + $0x4f8] sm:$0xff] }
0x1132   :  { %v3166_v53 = vsel %vm3165_vm0, %v7317_v42, %v3162_v3  ;;  %v5962_v42 = vor.u32 %v7002_v30, %v5959_v52  ;;  %v7042_v3 = vld [vmem:[%s9191_s13 + $0x470] sm:$0xff]  ;;  %v7071_v52 = vld [vmem:[%s9191_s13 + $0x558] sm:$0xff] }
0x1133   :  { %v3168_v56 = vmul.f32 %v3166_v53, %v8468_v59  ;;  %v6013_v59 = vld [vmem:[%s9190_s11 + $0x1a8] sm:$0xf]  ;;  %v7058_v53 = vld [vmem:[%s9191_s13 + $0x4f0] sm:$0xff] }
0x1134   :  { %v6014_v50 = vor.u32 %v7025_v1, %v6013_v59  ;;  %v7031_v59 = vld [vmem:[%s9191_s13 + $0x418] sm:$0xff]  ;;  %v7078_v30 = vld [vmem:[%s9191_s13 + $0x590] sm:$0xff] }
0x1135   :  { %v3173_v57 = vmul.f32 %v7232_v47, %v3168_v56  ;;  %v7034_v47 = vld [vmem:[%s9191_s13 + $0x430] sm:$0xff]  ;;  %v7041_v56 = vld [vmem:[%s9191_s13 + $0x468] sm:$0xff]  ;;  %v7047_v1 = vld [vmem:[%s9191_s13 + $0x498] sm:$0xff] }
0x1137   :  { %v8601_v49 = vadd.f32 %v7233_v46, %v3173_v57  ;;  %v7033_v46 = vld [vmem:[%s9191_s13 + $0x428] sm:$0xff] }
0x1138   :  { %v7057_v57 = vld [vmem:[%s9191_s13 + $0x4e8] sm:$0xff] }
0x1139   :  { %v8614_v4 = vpack.c.bf16 %v8601_v49, %v8599_v37 }
0x113b   :  { %6035 = vmatmul.msk.bf16.vlgmr.msrb.gmra.mxu0 %vm189_vm8, %v8614_v4  ;;  %6036 = vmatmul.msk.bf16.vlgmr.msrb.gmra.mxu3 %vm189_vm8, %v8614_v4 }
0x113c   :  { %6037 = vmatmul.msk.bf16.vlgmr.msrb.gmra.mxu1 %vm189_vm8, %v8614_v4  ;;  %6038 = vmatmul.msk.bf16.vlgmr.msrb.gmra.mxu2 %vm189_vm8, %v8614_v4 }
0x113d   :  { %3531 = vmatpush.bf16.msrb.mxu0 %v6006_v8  ;;  %3545 = vmatpush.bf16.msrb.mxu3 %v6010_v9  ;;  %v7030_v8 = vld [vmem:[%s9191_s13 + $0x410] sm:$0xff] }
0x113e   :  { %3559 = vmatpush.bf16.msrb.mxu1 %v6014_v50  ;;  %3573 = vmatpush.bf16.msrb.mxu2 %v6018_v11  ;;  %v7046_v9 = vld [vmem:[%s9191_s13 + $0x490] sm:$0xff]  ;;  %v7045_v50 = vld [vmem:[%s9191_s13 + $0x488] sm:$0xff] }
0x113f   :  { %v7037_v11 = vld [vmem:[%s9191_s13 + $0x448] sm:$0xff] }
0x1141   :  { %3532 = vmatpush.bf16.msrb.mxu0 %v5942_v55  ;;  %3546 = vmatpush.bf16.msrb.mxu3 %v5946_v17  ;;  %v7052_v55 = vld [vmem:[%s9191_s13 + $0x4c0] sm:$0xff]  ;;  %v7075_v17 = vld [vmem:[%s9191_s13 + $0x578] sm:$0xff] }
0x1142   :  { %3560 = vmatpush.bf16.msrb.mxu1 %v5950_v18  ;;  %3574 = vmatpush.bf16.msrb.mxu2 %v5954_v19  ;;  %v7091_v18 = vld [vmem:[%s9191_s13 + $0x5f8] sm:$0xff]  ;;  %v7066_v19 = vld [vmem:[%s9191_s13 + $0x530] sm:$0xff] }
0x114b   :  { %6039 = vmatmul.msk.bf16.vlgmr.msra.gmra.mxu0 %vm189_vm8, %v8614_v4  ;;  %6040 = vmatmul.msk.bf16.vlgmr.msra.gmra.mxu3 %vm189_vm8, %v8614_v4 }
0x114c   :  { %6041 = vmatmul.msk.bf16.vlgmr.msra.gmra.mxu1 %vm189_vm8, %v8614_v4  ;;  %6042 = vmatmul.msk.bf16.vlgmr.msra.gmra.mxu2 %vm189_vm8, %v8614_v4 }
0x114d   :  { %3587 = vmatpush.bf16.msra.mxu0 %v6022_v2  ;;  %3601 = vmatpush.bf16.msra.mxu3 %v6026_v26  ;;  %v7089_v2 = vld [vmem:[%s9191_s13 + $0x5e8] sm:$0xff]  ;;  %v7063_v26 = vld [vmem:[%s9191_s13 + $0x518] sm:$0xff] }
0x114e   :  { %3615 = vmatpush.bf16.msra.mxu1 %v6030_v61  ;;  %3629 = vmatpush.bf16.msra.mxu2 %v6034_v29  ;;  %v7088_v61 = vld [vmem:[%s9191_s13 + $0x5e0] sm:$0xff]  ;;  %v7062_v29 = vld [vmem:[%s9191_s13 + $0x510] sm:$0xff] }
0x1151   :  { %3588 = vmatpush.bf16.msra.mxu0 %v5958_v40  ;;  %3602 = vmatpush.bf16.msra.mxu3 %v5962_v42  ;;  %v7086_v40 = vld [vmem:[%s9191_s13 + $0x5d0] sm:$0xff]  ;;  %v7060_v42 = vld [vmem:[%s9191_s13 + $0x500] sm:$0xff] }
0x1152   :  { %3616 = vmatpush.bf16.msra.mxu1 %v5966_v35  ;;  %3630 = vmatpush.bf16.msra.mxu2 %v5970_v36  ;;  %v7076_v35 = vld [vmem:[%s9191_s13 + $0x580] sm:$0xff]  ;;  %v7069_v36 = vld [vmem:[%s9191_s13 + $0x548] sm:$0xff] }
0x115b   :  { %6043 = vmatmul.msk.bf16.vlgmr.msrb.gmra.mxu0 %vm189_vm8, %v8614_v4  ;;  %6044 = vmatmul.msk.bf16.vlgmr.msrb.gmra.mxu3 %vm189_vm8, %v8614_v4 }
0x115c   :  { %6045 = vmatmul.msk.bf16.vlgmr.msrb.gmra.mxu1 %vm189_vm8, %v8614_v4  ;;  %6046 = vmatmul.msk.bf16.vlgmr.msrb.gmra.mxu2 %vm189_vm8, %v8614_v4 }
0x115d   :  { %4715 = vmatpush.bf16.msrb.mxu0 %v7035_v38  ;;  %4743 = vmatpush.bf16.msrb.mxu1 %v7051_v43  ;;  %v7085_v38 = vld [vmem:[%s9191_s13 + $0x5c8] sm:$0xff]  ;;  %v7068_v43 = vld [vmem:[%s9191_s13 + $0x540] sm:$0xff] }
0x115e   :  { %4729 = vmatpush.bf16.msrb.mxu3 %v7043_v44  ;;  %4757 = vmatpush.bf16.msrb.mxu2 %v7059_v45  ;;  %v7084_v44 = vld [vmem:[%s9191_s13 + $0x5c0] sm:$0xff]  ;;  %v8915_v45 = vld [vmem:[%s9192_s12 + $0x10] sm:$0xff] }
0x1161   :  { %4716 = vmatpush.bf16.msrb.mxu0 %v7034_v47  ;;  %4744 = vmatpush.bf16.msrb.mxu1 %v7050_v48 }
0x1162   :  { %4730 = vmatpush.bf16.msrb.mxu3 %v7042_v3  ;;  %4758 = vmatpush.bf16.msrb.mxu2 %v7058_v53  ;;  %v3218_v3 = vperm.slane %v8915_v45, 0  ;;  %v3220_v53 = vperm.slane %v8915_v45, 2 }
0x1165   :  { %4717 = vmatpush.bf16.msrb.mxu0 %v7033_v46  ;;  %4745 = vmatpush.bf16.msrb.mxu1 %v7049_v54 }
0x1166   :  { %4731 = vmatpush.bf16.msrb.mxu3 %v7041_v56  ;;  %4759 = vmatpush.bf16.msrb.mxu2 %v7057_v57 }
0x1169   :  { %4718 = vmatpush.bf16.msrb.mxu0 %v7032_v58  ;;  %4746 = vmatpush.bf16.msrb.mxu1 %v7048_v32  ;;  %v3219_v32 = vperm.slane %v8915_v45, 1 }
0x116a   :  { %4732 = vmatpush.bf16.msrb.mxu3 %v7040_v60  ;;  %4760 = vmatpush.bf16.msrb.mxu2 %v7056_v62 }
0x116b   :  { %6047 = vmatmul.msk.bf16.vlgmr.msra.gmra.mxu0 %vm189_vm8, %v8614_v4  ;;  %6048 = vmatmul.msk.bf16.vlgmr.msra.gmra.mxu3 %vm189_vm8, %v8614_v4 }
0x116c   :  { %6049 = vmatmul.msk.bf16.vlgmr.msra.gmra.mxu1 %vm189_vm8, %v8614_v4  ;;  %6050 = vmatmul.msk.bf16.vlgmr.msra.gmra.mxu2 %vm189_vm8, %v8614_v4  ;;  %v7054_v4 = vld [vmem:[%s9191_s13 + $0x4d0] sm:$0xff] }
0x116d   :  { %4719 = vmatpush.bf16.msrb.mxu0 %v7031_v59  ;;  %4747 = vmatpush.bf16.msrb.mxu1 %v7047_v1  ;;  %v3221_v59 = vperm.slane %v8915_v45, 3 }
0x116e   :  { %4733 = vmatpush.bf16.msrb.mxu3 %v7039_v5  ;;  %4761 = vmatpush.bf16.msrb.mxu2 %v7055_v6 }
0x1171   :  { %4720 = vmatpush.bf16.msrb.mxu0 %v7030_v8  ;;  %4748 = vmatpush.bf16.msrb.mxu1 %v7046_v9 }
0x1172   :  { %4734 = vmatpush.bf16.msrb.mxu3 %v7038_v10  ;;  %4762 = vmatpush.bf16.msrb.mxu2 %v7054_v4  ;;  %v7099_v10 = vld [vmem:[%s9191_s13 + $0x638] sm:$0xff] }
0x1175   :  { %4721 = vmatpush.bf16.msrb.mxu0 %v7029_v63  ;;  %4749 = vmatpush.bf16.msrb.mxu1 %v7045_v50  ;;  %v7115_v50 = vld [vmem:[%s9191_s13 + $0x6b8] sm:$0xff] }
0x1176   :  { %4735 = vmatpush.bf16.msrb.mxu3 %v7037_v11  ;;  %4763 = vmatpush.bf16.msrb.mxu2 %v7053_v12 }
0x1179   :  { %4722 = vmatpush.bf16.msrb.mxu0 %v7028_v13  ;;  %4750 = vmatpush.bf16.msrb.mxu1 %v7044_v14 }
0x117a   :  { %4736 = vmatpush.bf16.msrb.mxu3 %v7036_v16  ;;  %4764 = vmatpush.bf16.msrb.mxu2 %v7052_v55  ;;  %v7098_v55 = vld [vmem:[%s9191_s13 + $0x630] sm:$0xff] }
0x117d   :  { %4771 = vmatpush.bf16.msra.mxu0 %v7067_v0  ;;  %4799 = vmatpush.bf16.msra.mxu1 %v7083_v15 }
0x117e   :  { %4785 = vmatpush.bf16.msra.mxu3 %v7075_v17  ;;  %4813 = vmatpush.bf16.msra.mxu2 %v7091_v18 }
0x1181   :  { %4772 = vmatpush.bf16.msra.mxu0 %v7066_v19  ;;  %4800 = vmatpush.bf16.msra.mxu1 %v7082_v20  ;;  %v7114_v20 = vld [vmem:[%s9191_s13 + $0x6b0] sm:$0xff] }
0x1182   :  { %4786 = vmatpush.bf16.msra.mxu3 %v7074_v21  ;;  %4814 = vmatpush.bf16.msra.mxu2 %v7090_v34 }
0x1185   :  { %4773 = vmatpush.bf16.msra.mxu0 %v7065_v22  ;;  %4801 = vmatpush.bf16.msra.mxu1 %v7081_v23  ;;  %v7107_v22 = vld [vmem:[%s9191_s13 + $0x678] sm:$0xff] }
0x1186   :  { %4787 = vmatpush.bf16.msra.mxu3 %v7073_v25  ;;  %4815 = vmatpush.bf16.msra.mxu2 %v7089_v2  ;;  %v3224_v2 = vperm.slane %v8915_v45, 6 }
0x1189   :  { %4774 = vmatpush.bf16.msra.mxu0 %v7064_v24  ;;  %4802 = vmatpush.bf16.msra.mxu1 %v7080_v51  ;;  %v3222_v24 = vperm.slane %v8915_v45, 4  ;;  %v7123_v51 = vld [vmem:[%s9191_s13 + $0x6f8] sm:$0xff] }
0x118a   :  { %4788 = vmatpush.bf16.msra.mxu3 %v7072_v28  ;;  %4816 = vmatpush.bf16.msra.mxu2 %v7088_v61  ;;  %v7106_v61 = vld [vmem:[%s9191_s13 + $0x670] sm:$0xff] }
0x118d   :  { %4775 = vmatpush.bf16.msra.mxu0 %v7063_v26  ;;  %4803 = vmatpush.bf16.msra.mxu1 %v7079_v27  ;;  %v7097_v26 = vld [vmem:[%s9191_s13 + $0x628] sm:$0xff] }
0x118e   :  { %4789 = vmatpush.bf16.msra.mxu3 %v7071_v52  ;;  %4817 = vmatpush.bf16.msra.mxu2 %v7087_v31  ;;  %v7113_v27 = vld [vmem:[%s9191_s13 + $0x6a8] sm:$0xff]  ;;  %v7122_v52 = vld [vmem:[%s9191_s13 + $0x6f0] sm:$0xff] }
0x1191   :  { %4776 = vmatpush.bf16.msra.mxu0 %v7062_v29  ;;  %4804 = vmatpush.bf16.msra.mxu1 %v7078_v30 }
0x1192   :  { %4790 = vmatpush.bf16.msra.mxu3 %v7070_v33  ;;  %4818 = vmatpush.bf16.msra.mxu2 %v7086_v40  ;;  %v3223_v33 = vperm.slane %v8915_v45, 5 }
0x1195   :  { %4777 = vmatpush.bf16.msra.mxu0 %v7061_v41  ;;  %4805 = vmatpush.bf16.msra.mxu1 %v7077_v7  ;;  %v7096_v7 = vld [vmem:[%s9191_s13 + $0x620] sm:$0xff] }
0x1196   :  { %4791 = vmatpush.bf16.msra.mxu3 %v7069_v36  ;;  %4819 = vmatpush.bf16.msra.mxu2 %v7085_v38  ;;  %v3225_v36 = vperm.slane %v8915_v45, 7  ;;  %v7095_v45 = vld [vmem:[%s9191_s13 + $0x618] sm:$0xff] }
0x1199   :  { %4778 = vmatpush.bf16.msra.mxu0 %v7060_v42  ;;  %4806 = vmatpush.bf16.msra.mxu1 %v7076_v35  ;;  %v7112_v35 = vld [vmem:[%s9191_s13 + $0x6a0] sm:$0xff] }
0x119a   :  { %4792 = vmatpush.bf16.msra.mxu3 %v7068_v43  ;;  %4820 = vmatpush.bf16.msra.mxu2 %v7084_v44  ;;  %v7105_v43 = vld [vmem:[%s9191_s13 + $0x668] sm:$0xff] }
0x11b8   :  { %v3422_v47 = vpop.f32.mrf.mxu0 }
0x11b9   :  { %v3450_v48 = vpop.f32.mrf.mxu1  ;;  %v3423_v54 = vadd.f32 %v3422_v47, %v3218_v3 }
0x11ba   :  { %v3451_v57 = vadd.f32 %v3450_v48, %v3220_v53  ;;  %v7121_v48 = vld [vmem:[%s9191_s13 + $0x6e8] sm:$0xff] }
0x11bb   :  { %v3637_v5 = vmax.f32 %v3423_v54, 0.0 }
0x11bc   :  { %v3639_v8 = vmax.f32 %v3451_v57, 0.0 }
0x11be   :  { %v3436_v46 = vpop.f32.mrf.mxu3 }
0x11bf   :  { %v3464_v56 = vpop.f32.mrf.mxu2  ;;  %v3437_v4 = vadd.f32 %v3436_v46, %v3219_v32 }
0x11c0   :  { %v3424_v58 = vpop.f32.mrf.mxu0  ;;  %v3465_v11 = vadd.f32 %v3464_v56, %v3221_v59  ;;  %v7111_v56 = vld [vmem:[%s9191_s13 + $0x698] sm:$0xff] }
0x11c1   :  { %v3425_v60 = vadd.f32 %v3424_v58, %v3218_v3  ;;  %v3452_v62 = vpop.f32.mrf.mxu1  ;;  %v3638_v17 = vmax.f32 %v3437_v4, 0.0 }
0x11c2   :  { %v3453_v1 = vadd.f32 %v3452_v62, %v3220_v53  ;;  %v3640_v21 = vmax.f32 %v3465_v11, 0.0 }
0x11c3   :  { %v3653_v6 = vmax.f32 %v3425_v60, 0.0  ;;  %v7104_v60 = vld [vmem:[%s9191_s13 + $0x660] sm:$0xff] }
0x11c4   :  { %v3655_v9 = vmax.f32 %v3453_v1, 0.0  ;;  %v7120_v1 = vld [vmem:[%s9191_s13 + $0x6e0] sm:$0xff] }
0x11c5   :  { %v3669_v63 = vpack.c.bf16 %v3653_v6, %v3637_v5  ;;  %v8982_v6 = vld [vmem:[%s9192_s12 + $0x18] sm:$0xff] }
0x11c6   :  { %v3671_v12 = vpack.c.bf16 %v3655_v9, %v3639_v8  ;;  %v3438_v13 = vpop.f32.mrf.mxu3  ;;  %v7094_v9 = vld [vmem:[%s9191_s13 + $0x610] sm:$0xff] }
0x11c7   :  { %v3439_v14 = vadd.f32 %v3438_v13, %v3219_v32  ;;  %v3466_v0 = vpop.f32.mrf.mxu2  ;;  %4723 = vmatmul.bf16.vlgmr.msrb.gmra.mxu0 %v3669_v63  ;;  %v7103_v13 = vld [vmem:[%s9191_s13 + $0x658] sm:$0xff] }
0x11c8   :  { %v3467_v15 = vadd.f32 %v3466_v0, %v3221_v59  ;;  %4751 = vmatmul.bf16.vlgmr.msrb.gmra.mxu1 %v3671_v12  ;;  %4827 = vmatpush.bf16.msrb.mxu0 %v7099_v10  ;;  %v3478_v16 = vpop.f32.mrf.mxu0  ;;  %v3226_v0 = vperm.slane %v8982_v6, 0 }
0x11c9   :  { %v3654_v18 = vmax.f32 %v3439_v14, 0.0  ;;  %4855 = vmatpush.bf16.msrb.mxu1 %v7115_v50  ;;  %v3506_v19 = vpop.f32.mrf.mxu1  ;;  %v3479_v29 = vadd.f32 %v3478_v16, %v3222_v24  ;;  %v7110_v50 = vld [vmem:[%s9191_s13 + $0x690] sm:$0xff] }
0x11ca   :  { %v3656_v34 = vmax.f32 %v3467_v15, 0.0  ;;  %v3507_v31 = vadd.f32 %v3506_v19, %v3224_v2  ;;  %v7119_v15 = vld [vmem:[%s9191_s13 + $0x6d8] sm:$0xff] }
0x11cb   :  { %v3670_v23 = vpack.c.bf16 %v3654_v18, %v3638_v17  ;;  %v3641_v44 = vmax.f32 %v3479_v29, 0.0  ;;  %v7093_v17 = vld [vmem:[%s9191_s13 + $0x608] sm:$0xff] }
0x11cc   :  { %v3672_v25 = vpack.c.bf16 %v3656_v34, %v3640_v21  ;;  %4828 = vmatpush.bf16.msrb.mxu0 %v7098_v55  ;;  %v3643_v3 = vmax.f32 %v3507_v31, 0.0  ;;  %v3228_v55 = vperm.slane %v8982_v6, 2  ;;  %v7109_v18 = vld [vmem:[%s9191_s13 + $0x688] sm:$0xff] }
0x11cd   :  { %4856 = vmatpush.bf16.msrb.mxu1 %v7114_v20  ;;  %4737 = vmatmul.bf16.vlgmr.msrb.gmra.mxu3 %v3670_v23  ;;  %v7102_v20 = vld [vmem:[%s9191_s13 + $0x650] sm:$0xff] }
0x11ce   :  { %4765 = vmatmul.bf16.vlgmr.msrb.gmra.mxu2 %v3672_v25  ;;  %4841 = vmatpush.bf16.msrb.mxu3 %v7107_v22  ;;  %v3492_v28 = vpop.f32.mrf.mxu3  ;;  %v7118_v22 = vld [vmem:[%s9191_s13 + $0x6d0] sm:$0xff]  ;;  %v3227_v25 = vperm.slane %v8982_v6, 1 }
0x11cf   :  { %4869 = vmatpush.bf16.msrb.mxu2 %v7123_v51  ;;  %v3520_v30 = vpop.f32.mrf.mxu2  ;;  %v3493_v46 = vadd.f32 %v3492_v28, %v3223_v33  ;;  %v7092_v51 = vld [vmem:[%s9191_s13 + $0x600] sm:$0xff]  ;;  %v7131_v28 = vld [vmem:[%s9191_s13 + $0x738] sm:$0xff] }
0x11d0   :  { %4829 = vmatpush.bf16.msrb.mxu0 %v7097_v26  ;;  %v3480_v41 = vpop.f32.mrf.mxu0  ;;  %v3521_v57 = vadd.f32 %v3520_v30, %v3225_v36  ;;  %v7147_v30 = vld [vmem:[%s9191_s13 + $0x7b8] sm:$0xff] }
0x11d1   :  { %4857 = vmatpush.bf16.msrb.mxu1 %v7113_v27  ;;  %v3481_v40 = vadd.f32 %v3480_v41, %v3222_v24  ;;  %v3508_v42 = vpop.f32.mrf.mxu1  ;;  %v3642_v10 = vmax.f32 %v3493_v46, 0.0  ;;  %v7108_v27 = vld [vmem:[%s9191_s13 + $0x680] sm:$0xff]  ;;  %v7139_v46 = vld [vmem:[%s9191_s13 + $0x778] sm:$0xff] }
0x11d2   :  { %v3509_v38 = vadd.f32 %v3508_v42, %v3224_v2  ;;  %4842 = vmatpush.bf16.msrb.mxu3 %v7106_v61  ;;  %v3644_v11 = vmax.f32 %v3521_v57, 0.0  ;;  %v3229_v61 = vperm.slane %v8982_v6, 3 }
0x11d3   :  { %v3657_v47 = vmax.f32 %v3481_v40, 0.0  ;;  %4870 = vmatpush.bf16.msrb.mxu2 %v7122_v52  ;;  %v7101_v52 = vld [vmem:[%s9191_s13 + $0x648] sm:$0xff] }
0x11d4   :  { %v3659_v53 = vmax.f32 %v3509_v38, 0.0  ;;  %4830 = vmatpush.bf16.msrb.mxu0 %v7096_v7  ;;  %v7117_v7 = vld [vmem:[%s9191_s13 + $0x6c8] sm:$0xff] }
0x11d5   :  { %v3673_v54 = vpack.c.bf16 %v3657_v47, %v3641_v44  ;;  %4858 = vmatpush.bf16.msrb.mxu1 %v7112_v35  ;;  %v7146_v47 = vld [vmem:[%s9191_s13 + $0x7b0] sm:$0xff] }
0x11d6   :  { %v3675_v58 = vpack.c.bf16 %v3659_v53, %v3643_v3  ;;  %4843 = vmatpush.bf16.msrb.mxu3 %v7105_v43  ;;  %v3494_v32 = vpop.f32.mrf.mxu3 }
0x11d7   :  { %4871 = vmatpush.bf16.msrb.mxu2 %v7121_v48  ;;  %v3495_v62 = vadd.f32 %v3494_v32, %v3223_v33  ;;  %v3522_v59 = vpop.f32.mrf.mxu2  ;;  %4779 = vmatmul.bf16.vlgmr.msra.gmra.mxu0 %v3673_v54  ;;  %v7100_v48 = vld [vmem:[%s9191_s13 + $0x640] sm:$0xff]  ;;  %v7129_v32 = vld [vmem:[%s9191_s13 + $0x728] sm:$0xff] }
0x11d8   :  { %v3523_v5 = vadd.f32 %v3522_v59, %v3225_v36  ;;  %4807 = vmatmul.bf16.vlgmr.msra.gmra.mxu1 %v3675_v58  ;;  %4831 = vmatpush.bf16.msrb.mxu0 %v7095_v45  ;;  %v3534_v8 = vpop.f32.mrf.mxu0  ;;  %v7130_v36 = vld [vmem:[%s9191_s13 + $0x730] sm:$0xff]  ;;  %v7116_v45 = vld [vmem:[%s9191_s13 + $0x6c0] sm:$0xff]  ;;  %v7145_v59 = vld [vmem:[%s9191_s13 + $0x7a8] sm:$0xff] }
0x11d9   :  { %v3658_v4 = vmax.f32 %v3495_v62, 0.0  ;;  %4859 = vmatpush.bf16.msrb.mxu1 %v7111_v56  ;;  %v3562_v63 = vpop.f32.mrf.mxu1  ;;  %v3535_v21 = vadd.f32 %v3534_v8, %v3226_v0  ;;  %v7155_v56 = vld [vmem:[%s9191_s13 + $0x7f8] sm:$0xff] }
0x11da   :  { %v3660_v12 = vmax.f32 %v3523_v5, 0.0  ;;  %4844 = vmatpush.bf16.msrb.mxu3 %v7104_v60  ;;  %v3563_v23 = vadd.f32 %v3562_v63, %v3228_v55  ;;  %v7138_v5 = vld [vmem:[%s9191_s13 + $0x770] sm:$0xff] }
0x11db   :  { %v3674_v14 = vpack.c.bf16 %v3658_v4, %v3642_v10  ;;  %4872 = vmatpush.bf16.msrb.mxu2 %v7120_v1  ;;  %v3645_v31 = vmax.f32 %v3535_v21, 0.0  ;;  %v7128_v4 = vld [vmem:[%s9191_s13 + $0x720] sm:$0xff]  ;;  %v3230_v21 = vperm.slane %v8982_v6, 4 }
0x11dc   :  { %v3676_v16 = vpack.c.bf16 %v3660_v12, %v3644_v11  ;;  %4832 = vmatpush.bf16.msrb.mxu0 %v7094_v9  ;;  %v3647_v33 = vmax.f32 %v3563_v23, 0.0  ;;  %v7154_v9 = vld [vmem:[%s9191_s13 + $0x7f0] sm:$0xff]  ;;  %v7137_v11 = vld [vmem:[%s9191_s13 + $0x768] sm:$0xff]  ;;  %v3232_v23 = vperm.slane %v8982_v6, 6 }
0x11dd   :  { %4860 = vmatpush.bf16.msrb.mxu1 %v7110_v50  ;;  %4793 = vmatmul.bf16.vlgmr.msra.gmra.mxu3 %v3674_v14  ;;  %v7144_v50 = vld [vmem:[%s9191_s13 + $0x7a0] sm:$0xff]  ;;  %v7153_v12 = vld [vmem:[%s9191_s13 + $0x7e8] sm:$0xff]  ;;  %v7143_v14 = vld [vmem:[%s9191_s13 + $0x798] sm:$0xff] }
0x11de   :  { %4821 = vmatmul.bf16.vlgmr.msra.gmra.mxu2 %v3676_v16  ;;  %4845 = vmatpush.bf16.msrb.mxu3 %v7103_v13  ;;  %v3548_v19 = vpop.f32.mrf.mxu3  ;;  %v7127_v13 = vld [vmem:[%s9191_s13 + $0x718] sm:$0xff] }
0x11df   :  { %4873 = vmatpush.bf16.msrb.mxu2 %v7119_v15  ;;  %v3576_v34 = vpop.f32.mrf.mxu2  ;;  %v3549_v42 = vadd.f32 %v3548_v19, %v3227_v25  ;;  %v7136_v15 = vld [vmem:[%s9191_s13 + $0x760] sm:$0xff] }
0x11e0   :  { %4833 = vmatpush.bf16.msrb.mxu0 %v7093_v17  ;;  %v3536_v24 = vpop.f32.mrf.mxu0  ;;  %v3577_v38 = vadd.f32 %v3576_v34, %v3229_v61  ;;  %v7126_v17 = vld [vmem:[%s9191_s13 + $0x710] sm:$0xff] }
0x11e1   :  { %4861 = vmatpush.bf16.msrb.mxu1 %v7109_v18  ;;  %v3537_v2 = vadd.f32 %v3536_v24, %v3226_v0  ;;  %v3564_v26 = vpop.f32.mrf.mxu1  ;;  %v3646_v57 = vmax.f32 %v3549_v42, 0.0  ;;  %v7142_v18 = vld [vmem:[%s9191_s13 + $0x790] sm:$0xff]  ;;  %v7125_v24 = vld [vmem:[%s9191_s13 + $0x708] sm:$0xff] }
0x11e2   :  { %v3565_v29 = vadd.f32 %v3564_v26, %v3228_v55  ;;  %4846 = vmatpush.bf16.msrb.mxu3 %v7102_v20  ;;  %v3648_v60 = vmax.f32 %v3577_v38, 0.0  ;;  %v7152_v55 = vld [vmem:[%s9191_s13 + $0x7e0] sm:$0xff]  ;;  %v7135_v20 = vld [vmem:[%s9191_s13 + $0x758] sm:$0xff]  ;;  %v7134_v26 = vld [vmem:[%s9191_s13 + $0x750] sm:$0xff] }
0x11e3   :  { %v3661_v41 = vmax.f32 %v3537_v2, 0.0  ;;  %4874 = vmatpush.bf16.msrb.mxu2 %v7118_v22  ;;  %v7151_v22 = vld [vmem:[%s9191_s13 + $0x7d8] sm:$0xff]  ;;  %v7133_v42 = vld [vmem:[%s9191_s13 + $0x748] sm:$0xff] }
0x11e4   :  { %v3663_v40 = vmax.f32 %v3565_v29, 0.0  ;;  %4834 = vmatpush.bf16.msrb.mxu0 %v7092_v51  ;;  %v7149_v38 = vld [vmem:[%s9191_s13 + $0x7c8] sm:$0xff] }
0x11e5   :  { %v3677_v35 = vpack.c.bf16 %v3661_v41, %v3645_v31  ;;  %4862 = vmatpush.bf16.msrb.mxu1 %v7108_v27 }
0x11e6   :  { %v3679_v43 = vpack.c.bf16 %v3663_v40, %v3647_v33  ;;  %4847 = vmatpush.bf16.msrb.mxu3 %v7101_v52  ;;  %v3550_v44 = vpop.f32.mrf.mxu3  ;;  %v3231_v52 = vperm.slane %v8982_v6, 5  ;;  %v3233_v33 = vperm.slane %v8982_v6, 7 }
0x11e7   :  { %4875 = vmatpush.bf16.msrb.mxu2 %v7117_v7  ;;  %v3551_v3 = vadd.f32 %v3550_v44, %v3227_v25  ;;  %v3578_v53 = vpop.f32.mrf.mxu2  ;;  %4835 = vmatmul.bf16.vlgmr.msrb.gmra.mxu0 %v3677_v35  ;;  %v7141_v25 = vld [vmem:[%s9191_s13 + $0x788] sm:$0xff]  ;;  %v7140_v7 = vld [vmem:[%s9191_s13 + $0x780] sm:$0xff] }
0x11e8   :  { %4883 = vmatpush.bf16.msra.mxu0 %v7131_v28  ;;  %v3579_v54 = vadd.f32 %v3578_v53, %v3229_v61  ;;  %4863 = vmatmul.bf16.vlgmr.msrb.gmra.mxu1 %v3679_v43  ;;  %v3590_v10 = vpop.f32.mrf.mxu0  ;;  %v7150_v28 = vld [vmem:[%s9191_s13 + $0x7d0] sm:$0xff]  ;;  %v7132_v53 = vld [vmem:[%s9191_s13 + $0x740] sm:$0xff] }
0x11e9   :  { %4911 = vmatpush.bf16.msra.mxu1 %v7147_v30  ;;  %v3662_v58 = vmax.f32 %v3551_v3, 0.0  ;;  %v3618_v63 = vpop.f32.mrf.mxu1  ;;  %v3591_v27 = vadd.f32 %v3590_v10, %v3230_v21  ;;  %v7124_v30 = vld [vmem:[%s9191_s13 + $0x700] sm:$0xff] }
0x11ea   :  { %v3664_v62 = vmax.f32 %v3579_v54, 0.0  ;;  %4848 = vmatpush.bf16.msrb.mxu3 %v7100_v48  ;;  %v3619_v61 = vadd.f32 %v3618_v63, %v3232_v23 }
0x11eb   :  { %v3678_v1 = vpack.c.bf16 %v3662_v58, %v3646_v57  ;;  %4876 = vmatpush.bf16.msrb.mxu2 %v7116_v45  ;;  %v3649_v35 = vmax.f32 %v3591_v27, 0.0 }
0x11ec   :  { %4884 = vmatpush.bf16.msra.mxu0 %v7130_v36  ;;  %v3680_v8 = vpack.c.bf16 %v3664_v62, %v3648_v60  ;;  %v3651_v43 = vmax.f32 %v3619_v61, 0.0 }
0x11ed   :  { %4912 = vmatpush.bf16.msra.mxu1 %v7146_v47  ;;  %4849 = vmatmul.bf16.vlgmr.msrb.gmra.mxu3 %v3678_v1 }
0x11ee   :  { %4897 = vmatpush.bf16.msra.mxu3 %v7139_v46  ;;  %4877 = vmatmul.bf16.vlgmr.msrb.gmra.mxu2 %v3680_v8  ;;  %v3604_v0 = vpop.f32.mrf.mxu3  ;;  %v7148_v46 = vld [vmem:[%s9191_s13 + $0x7c0] sm:$0xff] }
0x11ef   :  { %4925 = vmatpush.bf16.msra.mxu2 %v7155_v56  ;;  %v3632_v16 = vpop.f32.mrf.mxu2  ;;  %v3605_v47 = vadd.f32 %v3604_v0, %v3231_v52 }
0x11f0   :  { %4885 = vmatpush.bf16.msra.mxu0 %v7129_v32  ;;  %v3592_v19 = vpop.f32.mrf.mxu0  ;;  %v3633_v6 = vadd.f32 %v3632_v16, %v3233_v33 }
0x11f1   :  { %4913 = vmatpush.bf16.msra.mxu1 %v7145_v59  ;;  %v3620_v34 = vpop.f32.mrf.mxu1  ;;  %v3593_v51 = vadd.f32 %v3592_v19, %v3230_v21  ;;  %v3650_v56 = vmax.f32 %v3605_v47, 0.0 }
0x11f2   :  { %4898 = vmatpush.bf16.msra.mxu3 %v7138_v5  ;;  %v3621_v2 = vadd.f32 %v3620_v34, %v3232_v23  ;;  %v3652_v57 = vmax.f32 %v3633_v6, 0.0 }
0x11f3   :  { %4926 = vmatpush.bf16.msra.mxu2 %v7154_v9  ;;  %v3665_v31 = vmax.f32 %v3593_v51, 0.0 }
0x11f4   :  { %4886 = vmatpush.bf16.msra.mxu0 %v7128_v4  ;;  %v3667_v40 = vmax.f32 %v3621_v2, 0.0  ;;  %v7234_v4 = vld [vmem:[%s9193_s14 + $0x1] ss:$0 sm:$0xff] }
0x11f5   :  { %4914 = vmatpush.bf16.msra.mxu1 %v7144_v50  ;;  %v3681_v48 = vpack.c.bf16 %v3665_v31, %v3649_v35 }
0x11f6   :  { %4899 = vmatpush.bf16.msra.mxu3 %v7137_v11  ;;  %v3606_v29 = vpop.f32.mrf.mxu3  ;;  %v3683_v3 = vpack.c.bf16 %v3667_v40, %v3651_v43 }
0x11f7   :  { %4927 = vmatpush.bf16.msra.mxu2 %v7153_v12  ;;  %v3634_v41 = vpop.f32.mrf.mxu2  ;;  %v3607_v36 = vadd.f32 %v3606_v29, %v3231_v52 }
0x11f8   :  { %4887 = vmatpush.bf16.msra.mxu0 %v7127_v13  ;;  %v3635_v44 = vadd.f32 %v3634_v41, %v3233_v33 }
0x11f9   :  { %4915 = vmatpush.bf16.msra.mxu1 %v7143_v14  ;;  %v3666_v45 = vmax.f32 %v3607_v36, 0.0 }
0x11fa   :  { %4900 = vmatpush.bf16.msra.mxu3 %v7136_v15  ;;  %v3668_v54 = vmax.f32 %v3635_v44, 0.0 }
0x11fb   :  { %4928 = vmatpush.bf16.msra.mxu2 %v7152_v55  ;;  %v3682_v58 = vpack.c.bf16 %v3666_v45, %v3650_v56 }
0x11fc   :  { %4888 = vmatpush.bf16.msra.mxu0 %v7126_v17  ;;  %v3684_v32 = vpack.c.bf16 %v3668_v54, %v3652_v57 }
0x11fd   :  { %4916 = vmatpush.bf16.msra.mxu1 %v7142_v18 }
0x11fe   :  { %4901 = vmatpush.bf16.msra.mxu3 %v7135_v20 }
0x11ff   :  { %4929 = vmatpush.bf16.msra.mxu2 %v7151_v22 }
0x1200   :  { %4889 = vmatpush.bf16.msra.mxu0 %v7125_v24 }
0x1201   :  { %4917 = vmatpush.bf16.msra.mxu1 %v7141_v25 }
0x1202   :  { %4902 = vmatpush.bf16.msra.mxu3 %v7134_v26 }
0x1203   :  { %4930 = vmatpush.bf16.msra.mxu2 %v7150_v28 }
0x1204   :  { %4890 = vmatpush.bf16.msra.mxu0 %v7124_v30 }
0x1205   :  { %4918 = vmatpush.bf16.msra.mxu1 %v7140_v7 }
0x1206   :  { %4903 = vmatpush.bf16.msra.mxu3 %v7133_v42 }
0x1207   :  { %4931 = vmatpush.bf16.msra.mxu2 %v7149_v38  ;;  %4891 = vmatmul.bf16.vlgmr.msra.gmra.mxu0 %v3681_v48 }
0x1208   :  { %4919 = vmatmul.bf16.vlgmr.msra.gmra.mxu1 %v3683_v3 }
0x120a   :  { %4904 = vmatpush.bf16.msra.mxu3 %v7132_v53 }
0x120b   :  { %4932 = vmatpush.bf16.msra.mxu2 %v7148_v46 }
0x120d   :  { %4905 = vmatmul.bf16.vlgmr.msra.gmra.mxu3 %v3682_v58 }
0x120e   :  { %4933 = vmatmul.bf16.vlgmr.msra.gmra.mxu2 %v3684_v32 }
0x1244   :  { %v4724_v60 = vpop.f32.mrf.mxu0 }
0x1245   :  { %v4752_v62 = vpop.f32.mrf.mxu1  ;;  %v4725_v50 = vadd.f32 %v7234_v4, %v4724_v60 }
0x124c   :  { %v4726_v5 = vpop.f32.mrf.mxu0 }
0x124d   :  { %v4754_v8 = vpop.f32.mrf.mxu1  ;;  %v4727_v16 = vadd.f32 %v7234_v4, %v4726_v5 }
0x1250   :  { %v4738_v59 = vpop.f32.mrf.mxu3 }
0x1251   :  { %v4766_v1 = vpop.f32.mrf.mxu2  ;;  %v4739_v11 = vadd.f32 %v4738_v59, %v4725_v50 }
0x1253   :  { %v4753_v0 = vadd.f32 %v4752_v62, %v4739_v11 }
0x1254   :  { %v4780_v63 = vpop.f32.mrf.mxu0 }
0x1255   :  { %v4808_v12 = vpop.f32.mrf.mxu1  ;;  %v4767_v55 = vadd.f32 %v4766_v1, %v4753_v0 }
0x1257   :  { %v4781_v20 = vadd.f32 %v4780_v63, %v4767_v55 }
0x1258   :  { %v4740_v9 = vpop.f32.mrf.mxu3 }
0x1259   :  { %v4768_v10 = vpop.f32.mrf.mxu2  ;;  %v4741_v17 = vadd.f32 %v4740_v9, %v4727_v16 }
0x125b   :  { %v4755_v21 = vadd.f32 %v4754_v8, %v4741_v17 }
0x125c   :  { %v4782_v15 = vpop.f32.mrf.mxu0 }
0x125d   :  { %v4810_v18 = vpop.f32.mrf.mxu1  ;;  %v4769_v24 = vadd.f32 %v4768_v10, %v4755_v21 }
0x125f   :  { %v4783_v25 = vadd.f32 %v4782_v15, %v4769_v24 }
0x1260   :  { %v4794_v13 = vpop.f32.mrf.mxu3 }
0x1261   :  { %v4822_v14 = vpop.f32.mrf.mxu2  ;;  %v4795_v22 = vadd.f32 %v4794_v13, %v4781_v20 }
0x1263   :  { %v4809_v51 = vadd.f32 %v4808_v12, %v4795_v22 }
0x1264   :  { %v4836_v23 = vpop.f32.mrf.mxu0 }
0x1265   :  { %v4864_v2 = vpop.f32.mrf.mxu1  ;;  %v4823_v27 = vadd.f32 %v4822_v14, %v4809_v51 }
0x1267   :  { %v4837_v30 = vadd.f32 %v4836_v23, %v4823_v27 }
0x1268   :  { %v4796_v19 = vpop.f32.mrf.mxu3 }
0x1269   :  { %v4824_v34 = vpop.f32.mrf.mxu2  ;;  %v4797_v28 = vadd.f32 %v4796_v19, %v4783_v25 }
0x126b   :  { %v4811_v52 = vadd.f32 %v4810_v18, %v4797_v28 }
0x126c   :  { %v4838_v29 = vpop.f32.mrf.mxu0 }
0x126d   :  { %v4825_v41 = vadd.f32 %v4824_v34, %v4811_v52  ;;  %v4866_v7 = vpop.f32.mrf.mxu1 }
0x126f   :  { %v4839_v36 = vadd.f32 %v4838_v29, %v4825_v41 }
0x1270   :  { %v4850_v26 = vpop.f32.mrf.mxu3 }
0x1271   :  { %v4878_v61 = vpop.f32.mrf.mxu2  ;;  %v4851_v31 = vadd.f32 %v4850_v26, %v4837_v30 }
0x1273   :  { %v4865_v40 = vadd.f32 %v4864_v2, %v4851_v31  ;;  %v7235_v2 = vld [vmem:[%s9194_s15 + $0x1] ss:$0 sm:$0xff] }
0x1275   :  { %v4879_v38 = vadd.f32 %v4878_v61, %v4865_v40  ;;  %v7236_v61 = vld [vmem:[%s9195_s16 + $0x1] ss:$0 sm:$0xff] }
0x1278   :  { %v4852_v33 = vpop.f32.mrf.mxu3 }
0x1279   :  { %v4880_v42 = vpop.f32.mrf.mxu2  ;;  %v4853_v43 = vadd.f32 %v4852_v33, %v4839_v36 }
0x127b   :  { %v4867_v6 = vadd.f32 %v4866_v7, %v4853_v43 }
0x127d   :  { %v4881_v54 = vadd.f32 %v4880_v42, %v4867_v6 }
0x1284   :  { %v4892_v35 = vpop.f32.mrf.mxu0 }
0x1285   :  { %v4893_v44 = vadd.f32 %v4892_v35, %v4879_v38  ;;  %v4920_v47 = vpop.f32.mrf.mxu1 }
0x128c   :  { %v4894_v46 = vpop.f32.mrf.mxu0 }
0x128d   :  { %v4895_v57 = vadd.f32 %v4894_v46, %v4881_v54  ;;  %v4922_v59 = vpop.f32.mrf.mxu1 }
0x1290   :  { %v4906_v48 = vpop.f32.mrf.mxu3 }
0x1291   :  { %v4907_v3 = vadd.f32 %v4906_v48, %v4893_v44  ;;  %v4934_v53 = vpop.f32.mrf.mxu2 }
0x1293   :  { %v4921_v45 = vadd.f32 %v4920_v47, %v4907_v3 }
0x1295   :  { %v4935_v56 = vadd.f32 %v4934_v53, %v4921_v45 }
0x1297   :  { %v4939_v58 = vadd.f32 %v4935_v56, %v8599_v37 }
0x1298   :  { %v4908_v32 = vpop.f32.mrf.mxu3 }
0x1299   :  { %v4909_v60 = vadd.f32 %v4908_v32, %v4895_v57  ;;  %v4945_v62 = vsel %vm189_vm8, %v4939_v58, 0.0  ;;  %v4936_v5 = vpop.f32.mrf.mxu2  ;;  %v7157_v32 = vld [vmem:[%s9198_s19 + $0x8] sm:$0xff] }
0x129a   :  { %4946 = vadd.xlane.f32.xlu2 %v4945_v62  ;;  %5109 = vmatpush.bf16.msrb.mxu3 %v7157_v32 }
0x129b   :  { %v4923_v1 = vadd.f32 %v4922_v59, %v4909_v60 }
0x129d   :  { %v4937_v8 = vadd.f32 %v4936_v5, %v4923_v1 }
0x129f   :  { %v4940_v9 = vadd.f32 %v4937_v8, %v8601_v49 }
0x12a1   :  { %v4948_v10 = vsel %vm189_vm8, %v4940_v9, 0.0 }
0x12a2   :  { %4949 = vadd.xlane.f32.xlu1 %v4948_v10 }
0x130d   :  { %v4947_v4 = vpop.xlane.xlu2 %4946 }
0x130e   :  { %v4951_v63 = vmul.f32 %v4947_v4, %v7640_v39 }
0x1310   :  { %v4953_v50 = vsub.f32 %v4939_v58, %v4951_v63 }
0x1312   :  { %v4955_v11 = vmul.f32 %v4953_v50, %v4953_v50 }
0x1314   :  { %v4957_v37 = vsel %vm189_vm8, %v4955_v11, 0.0 }
0x1315   :  { %v4950_v12 = vpop.xlane.xlu1 %4949  ;;  %4958 = vadd.xlane.f32.xlu0 %v4957_v37 }
0x1316   :  { %v4952_v13 = vmul.f32 %v4950_v12, %v7640_v39 }
0x1318   :  { %v4954_v14 = vsub.f32 %v4940_v9, %v4952_v13  ;;  %v7237_v13 = vld [vmem:[%s9196_s17] ss:$0 sm:$0xff] }
0x131a   :  { %v4956_v0 = vmul.f32 %v4954_v14, %v4954_v14 }
0x131c   :  { %v4960_v15 = vsel %vm189_vm8, %v4956_v0, 0.0 }
0x131d   :  { %4961 = vadd.xlane.f32.xlu1 %v4960_v15 }
0x1388   :  { %v4959_v49 = vpop.xlane.xlu0 %4958 }
0x1389   :  { %v4963_v16 = vmul.f32 %v4959_v49, %v7640_v39 }
0x138b   :  { %v4965_v55 = vadd.f32 1e-05, %v4963_v16  ;;  %v7238_v16 = vld [vmem:[%s9197_s18] ss:$0 sm:$0xff] }
0x138d   :  { %7318 = vrsqrt.f32 %v4965_v55  ;;  %vm4973_vm2 = vweird.f32 %v4965_v55 }
0x1390   :  { %v4962_v17 = vpop.xlane.xlu1 %4961 }
0x1391   :  { %v4964_v18 = vmul.f32 %v4962_v17, %v7640_v39 }
0x1393   :  { %v7319_v19 = vpop.eup %7318  ;;  %v4966_v20 = vadd.f32 1e-05, %v4964_v18 }
0x1394   :  { %v4968_v21 = vmul.f32 %v7319_v19, %v4965_v55  ;;  %vm4974_vm1 = vweird.f32 %v7319_v19 }
0x1395   :  { %7320 = vrsqrt.f32 %v4966_v20  ;;  %vm4975_vm3 = vmor %vm4973_vm2, %vm4974_vm1  ;;  %vm4983_vm5 = vweird.f32 %v4966_v20 }
0x1396   :  { %v4969_v34 = vmul.f32 %v7319_v19, %v4968_v21  ;;  %v26_v21 = vstv %s9200_s20 }
0x1397   :  { %27 = vst [vmem:[#allocation2] sm:$0x1] %v26_v21 }
0x1398   :  { %v4970_v22 = vmul.f32 0.5, %v4969_v34 }
0x139a   :  { %v4971_v23 = vsub.f32 1.5, %v4970_v22 }
0x139b   :  { %v7321_v24 = vpop.eup %7320 }
0x139c   :  { %v4972_v51 = vmul.f32 %v7319_v19, %v4971_v23  ;;  %v4978_v25 = vmul.f32 %v7321_v24, %v4966_v20  ;;  %vm4984_vm4 = vweird.f32 %v7321_v24  ;;  %v7156_v20 = vld [vmem:[%s9198_s19] sm:$0xff] }
0x139d   :  { %vm4985_vm6 = vmor %vm4983_vm5, %vm4984_vm4  ;;  %5110 = vmatpush.bf16.msrb.mxu3 %v7156_v20 }
0x139e   :  { %v4979_v26 = vmul.f32 %v7321_v24, %v4978_v25  ;;  %v4976_v27 = vsel %vm4975_vm3, %v7319_v19, %v4972_v51  ;;  %v5055_v19 = vld [vmem:[%s9199_s4] sm:$0x3] }
0x139f   :  { %v4987_v28 = vmul.f32 %v4976_v27, %v4953_v50  ;;  %v7239_v23 = vld [vmem:[#allocation2] ss:$0 sm:$0xff] }
0x13a0   :  { %v4980_v29 = vmul.f32 0.5, %v4979_v26 }
0x13a1   :  { %v4992_v30 = vmul.f32 %v7235_v2, %v4987_v28 }
0x13a2   :  { %v4981_v52 = vsub.f32 1.5, %v4980_v29 }
0x13a3   :  { %v4997_v31 = vadd.f32 %v7236_v61, %v4992_v30 }
0x13a4   :  { %v4982_v41 = vmul.f32 %v7321_v24, %v4981_v52 }
0x13a5   :  { %v5001_v7 = vsel %vm189_vm8, %v4997_v31, 0.0 }
0x13a6   :  { %5002 = vadd.xlane.f32.xlu1 %v5001_v7  ;;  %v4986_v33 = vsel %vm4985_vm6, %v7321_v24, %v4982_v41 }
0x13a7   :  { %v4988_v40 = vmul.f32 %v4986_v33, %v4954_v14 }
0x13a9   :  { %v4993_v42 = vmul.f32 %v7235_v2, %v4988_v40 }
0x13ab   :  { %v4998_v35 = vadd.f32 %v7236_v61, %v4993_v42 }
0x13ad   :  { %v5004_v36 = vsel %vm189_vm8, %v4998_v35, 0.0 }
0x13ae   :  { %5005 = vadd.xlane.f32.xlu2 %v5004_v36 }
0x1419   :  { %v5003_v38 = vpop.xlane.xlu1 %5002 }
0x141a   :  { %v5007_v43 = vmul.f32 %v5003_v38, %v7640_v39 }
0x141c   :  { %v5009_v44 = vsub.f32 %v4997_v31, %v5007_v43 }
0x141e   :  { %v5011_v47 = vmul.f32 %v5009_v44, %v5009_v44 }
0x1420   :  { %v5013_v48 = vsel %vm189_vm8, %v5011_v47, 0.0 }
0x1421   :  { %5014 = vadd.xlane.f32.xlu2 %v5013_v48  ;;  %v5006_v6 = vpop.xlane.xlu2 %5005 }
0x1422   :  { %v5008_v3 = vmul.f32 %v5006_v6, %v7640_v39 }
0x1424   :  { %v5010_v53 = vsub.f32 %v4998_v35, %v5008_v3 }
0x1426   :  { %v5012_v45 = vmul.f32 %v5010_v53, %v5010_v53 }
0x1428   :  { %v5016_v46 = vsel %vm189_vm8, %v5012_v45, 0.0 }
0x1429   :  { %5017 = vadd.xlane.f32.xlu0 %v5016_v46 }
0x1494   :  { %v5015_v54 = vpop.xlane.xlu2 %5014 }
0x1495   :  { %v5019_v56 = vmul.f32 %v5015_v54, %v7640_v39 }
0x1497   :  { %v5021_v57 = vadd.f32 1e-05, %v5019_v56 }
0x1499   :  { %7322 = vrsqrt.f32 %v5021_v57  ;;  %vm5029_vm12 = vweird.f32 %v5021_v57 }
0x149c   :  { %v5018_v58 = vpop.xlane.xlu0 %5017 }
0x149d   :  { %v5020_v60 = vmul.f32 %v5018_v58, %v7640_v39 }
0x149f   :  { %v7323_v62 = vpop.eup %7322  ;;  %v5022_v59 = vadd.f32 1e-05, %v5020_v60 }
0x14a0   :  { %v5024_v1 = vmul.f32 %v7323_v62, %v5021_v57  ;;  %vm5030_vm7 = vweird.f32 %v7323_v62 }
0x14a1   :  { %7324 = vrsqrt.f32 %v5022_v59  ;;  %vm5031_vm9 = vmor %vm5029_vm12, %vm5030_vm7  ;;  %vm5039_vm13 = vweird.f32 %v5022_v59 }
0x14a2   :  { %v5025_v5 = vmul.f32 %v7323_v62, %v5024_v1 }
0x14a4   :  { %v5026_v8 = vmul.f32 0.5, %v5025_v5 }
0x14a6   :  { %v5027_v9 = vsub.f32 1.5, %v5026_v8 }
0x14a7   :  { %v7325_v10 = vpop.eup %7324 }
0x14a8   :  { %v5034_v4 = vmul.f32 %v7325_v10, %v5022_v59  ;;  %v5028_v63 = vmul.f32 %v7323_v62, %v5027_v9  ;;  %vm5040_vm11 = vweird.f32 %v7325_v10 }
0x14a9   :  { %vm5041_vm14 = vmor %vm5039_vm13, %vm5040_vm11 }
0x14aa   :  { %v5035_v50 = vmul.f32 %v7325_v10, %v5034_v4  ;;  %v5032_v37 = vsel %vm5031_vm9, %v7323_v62, %v5028_v63 }
0x14ab   :  { %v5043_v14 = vmul.f32 %v5032_v37, %v5009_v44 }
0x14ac   :  { %v5036_v11 = vmul.f32 0.5, %v5035_v50 }
0x14ad   :  { %v5048_v55 = vmul.f32 %v7237_v13, %v5043_v14 }
0x14ae   :  { %v5037_v12 = vsub.f32 1.5, %v5036_v11 }
0x14af   :  { %v5053_v18 = vadd.f32 %v7238_v16, %v5048_v55 }
0x14b0   :  { %v5038_v39 = vmul.f32 %v7325_v10, %v5037_v12 }
0x14b2   :  { %v5042_v0 = vsel %vm5041_vm14, %v7325_v10, %v5038_v39 }
0x14b3   :  { %v5044_v15 = vmul.f32 %v5042_v0, %v5010_v53 }
0x14b5   :  { %v5049_v49 = vmul.f32 %v7237_v13, %v5044_v15 }
0x14b7   :  { %v5054_v17 = vadd.f32 %v7238_v16, %v5049_v49 }
0x14b9   :  { %5073 = vmatpush.msrb.mxu0 %v5054_v17 }
0x14bb   :  { %5074 = vmatpush.msrb.mxu0 %v5053_v18 }
0x14bc   :  { %6822 = vmatmul.msk.f32.vlgmr.msrb.gmra.mxu0 %vm249_vm10, %v5055_v19 }
0x1539   :  { %v5076_v34 = vpop.f32.mrf.mxu0 }
0x153a   :  { %v5079_v22 = vpack.c.bf16 %v5076_v34, %v5076_v34 }
0x153c   :  { %6831 = vmatmul.msk.bf16.vlgmr.msrb.gmra.mxu3 %vm189_vm8, %v5079_v22 }
0x15bf   :  { %v5112_v24 = vpop.f32.mrf.mxu3 }
0x15c0   :  { %v5113_v51 = vadd.f32 %v7239_v23, %v5112_v24 }
0x15c2   :  { %5117 = vst.msk [vmem:[%s9201_s21] sm:$0x3] %vm5116_vm15, %v5113_v51 }
0x15c7   :  { %v5114_v25 = vpop.f32.mrf.mxu3 }

</bundles_post_ra>
